<compile_context>
chip_gen: v5e
topology: v5e:2x2
jax: 0.10.0
libtpu: 0.0.40
codegen_flags: <defaults>
</compile_context>

<pallas_src>
import functools

import jax
import jax.numpy as jnp
from jax.experimental import pallas as pl
from jax.experimental.pallas import tpu as pltpu

OMEGA_0 = 30.0  # SIREN default omega_0 used by SineLayer


def _siren_plucker_kernel(num_layers, od_ref, w0_ref, *refs):
    """SIREN MLP over one lane tile of rays.

    od_ref : (6, tm)  rows = (ox, oy, oz, dx, dy, dz); rays are lane-dense.
    w0_ref : (h0, 7)  first-layer weight, omega_0 folded in, bias appended as
                      the last column (the embedding carries a ones row).
    refs   : (W1_T, b1, ..., W_{L-1}_T, b_{L-1}, out_ref); W_T is (out, in),
             b is (out, 1), omega_0 folded in.
    out_ref: (out_dim, tm)
    """
    out_ref = refs[-1]
    wb_refs = refs[:-1]

    od = od_ref[...]                                  # (6, tm)
    ox, oy, oz = od[0:1, :], od[1:2, :], od[2:3, :]
    dx, dy, dz = od[3:4, :], od[4:5, :], od[5:6, :]
    d = od[3:6, :]                                    # (3, tm)

    # cross(origin, dir)
    cx = oy * dz - oz * dy
    cy = oz * dx - ox * dz
    cz = ox * dy - oy * dx
    ones = jnp.ones_like(cx)

    # Augmented Plücker embedding [dir ; origin x dir ; 1] -> (7, tm).
    # The ones row folds the first-layer bias into the MXU matmul.
    x = jnp.concatenate([d, cx, cy, cz, ones], axis=0)

    # Layer 0: sin(W0_aug @ x)   (bias already inside W0_aug).
    x = jnp.sin(
        jnp.dot(w0_ref[...], x,
                preferred_element_type=jnp.float32,
                precision=jax.lax.Precision.HIGHEST))

    # Remaining layers: sin(W' x + b')  with omega_0 pre-folded into W'/b'.
    for li in range(num_layers - 1):
        wt = wb_refs[2 * li][...]       # (out, in)
        b = wb_refs[2 * li + 1][...]    # (out, 1)
        x = jnp.sin(
            jnp.dot(wt, x,
                    preferred_element_type=jnp.float32,
                    precision=jax.lax.Precision.HIGHEST) + b)

    out_ref[...] = x


def init_siren_params(key, hidden_dims, mode="rgb"):
    """Deterministic SIREN-style init (same scheme as SineLayer.init_weights)."""
    out_dim = 3 if mode == "rgb" else 4
    dims = [6] + list(hidden_dims) + [out_dim]
    weights, biases = [], []
    for i in range(len(dims) - 1):
        fan_in, fan_out = dims[i], dims[i + 1]
        key, wk, bk = jax.random.split(key, 3)
        if i == 0:
            w_bound = 1.0 / fan_in
        else:
            w_bound = (6.0 / fan_in) ** 0.5 / OMEGA_0
        W = jax.random.uniform(wk, (fan_in, fan_out), jnp.float32, -w_bound, w_bound)
        b_bound = 1.0 / (fan_in ** 0.5)  # torch.nn.Linear default bias init
        b = jax.random.uniform(bk, (fan_out,), jnp.float32, -b_bound, b_bound)
        weights.append(W)
        biases.append(b)
    return weights, biases


def siren_plucker_forward(inputs, weights, biases, *, tm=4096):
    """inputs = (ray_origin, ray_dir_world, _) each (B, N, 3); third is unused."""
    ray_origin, ray_dir_world, _ = inputs
    B, N, _c = ray_origin.shape
    M = B * N
    num_layers = len(weights)
    out_dim = weights[-1].shape[1]
    hidden = [w.shape[1] for w in weights[:-1]]

    # ---- lane-tile selection: largest tile (multiple of 128) amortizes the
    # per-grid-step overhead; only 2-TC chips (v7x) benefit from >= 2 steps.
    m_lanes = ((M + 127) // 128) * 128
    tm_eff = max(128, (min(tm, m_lanes) // 128) * 128)
    try:
        multi_tc = "v7" in jax.devices()[0].device_kind.lower()
    except Exception:  # pragma: no cover - defensive
        multi_tc = False
    if multi_tc and m_lanes >= 256 and m_lanes // tm_eff < 2:
        tm_eff = max(128, ((m_lanes // 2) // 128) * 128)
    m_pad = ((M + tm_eff - 1) // tm_eff) * tm_eff

    # ---- one packed, lane-dense input: rows = (ox, oy, oz, dx, dy, dz).
    od = jnp.concatenate(
        [ray_origin.reshape(M, 3), ray_dir_world.reshape(M, 3)], axis=1
    ).astype(jnp.float32)                                   # (M, 6)
    if m_pad != M:
        od = jnp.pad(od, ((0, m_pad - M), (0, 0)))
    od_t = od.T                                             # (6, m_pad)

    # ---- params: fold omega_0; fold layer-0 bias into its weight matrix.
    w0 = (OMEGA_0 * weights[0]).T.astype(jnp.float32)              # (h0, 6)
    b0 = (OMEGA_0 * biases[0]).reshape(-1, 1).astype(jnp.float32)  # (h0, 1)
    w0_aug = jnp.concatenate([w0, b0], axis=1)                     # (h0, 7)

    flat_params = [w0_aug]
    in_specs = [
        pl.BlockSpec((6, tm_eff), lambda i: (0, i)),        # packed rays, tile i
        pl.BlockSpec(w0_aug.shape, lambda i: (0, 0)),       # resident W0_aug
    ]
    for w, b in zip(weights[1:], biases[1:]):
        wt = (OMEGA_0 * w).T.astype(jnp.float32)                 # (out, in)
        b2 = (OMEGA_0 * b).reshape(-1, 1).astype(jnp.float32)    # (out, 1)
        flat_params.extend([wt, b2])
        in_specs.append(pl.BlockSpec(wt.shape, lambda i: (0, 0)))
        in_specs.append(pl.BlockSpec(b2.shape, lambda i: (0, 0)))

    # ---- advisory cost estimate for XLA's scheduler.
    dims = [7] + hidden + [out_dim]
    flops = 2 * m_pad * sum(a * b for a, b in zip(dims[:-1], dims[1:]))
    transcendentals = m_pad * sum(dims[1:])
    param_bytes = sum(int(p.size) for p in flat_params) * 4
    bytes_accessed = 4 * m_pad * (6 + out_dim) + param_bytes

    kernel = functools.partial(_siren_plucker_kernel, num_layers)

    out_t = pl.pallas_call(
        kernel,
        out_shape=jax.ShapeDtypeStruct((out_dim, m_pad), jnp.float32),
        grid=(m_pad // tm_eff,),
        in_specs=in_specs,
        out_specs=pl.BlockSpec((out_dim, tm_eff), lambda i: (0, i)),
        compiler_params=pltpu.CompilerParams(dimension_semantics=("parallel",)),
        cost_estimate=pl.CostEstimate(
            flops=flops,
            transcendentals=transcendentals,
            bytes_accessed=bytes_accessed),
    )(od_t, *flat_params)

    # back to (B, N, out_dim); drop padded rays (out_dim is tiny -> cheap).
    return out_t[:, :M].T.reshape(B, N, out_dim)


def _reference_forward(inputs, weights, biases):
    """Pure-JAX reference (matches the PyTorch module's forward)."""
    ray_origin, ray_dir_world, _ = inputs
    cross = jnp.cross(ray_origin, ray_dir_world, axis=-1)
    x = jnp.concatenate([ray_dir_world, cross], axis=-1)
    for w, b in zip(weights, biases):
        x = jnp.sin(OMEGA_0 * (
            jnp.dot(x, w, precision=jax.lax.Precision.HIGHEST) + b))
    return x


if __name__ == "__main__":
    key = jax.random.PRNGKey(0)
    k_o, k_d, k_p = jax.random.split(key, 3)

    B, N = 2, 128  # small shapes; M = 256 rays
    hidden_dims = [32, 32]
    mode = "rgb"

    ray_origin = jax.random.normal(k_o, (B, N, 3), jnp.float32)
    ray_dir = jax.random.normal(k_d, (B, N, 3), jnp.float32)
    ray_dir = ray_dir / jnp.linalg.norm(ray_dir, axis=-1, keepdims=True)
    dummy_uv = jnp.zeros((B, N, 2), jnp.float32)  # third tuple element is ignored

    weights, biases = init_siren_params(k_p, hidden_dims, mode)

    out = siren_plucker_forward((ray_origin, ray_dir, dummy_uv), weights, biases)
    out = jax.block_until_ready(out)

    ref = _reference_forward((ray_origin, ray_dir, dummy_uv), weights, biases)
    assert out.shape == (B, N, 3), out.shape
    max_err = float(jnp.max(jnp.abs(out - ref)))
    assert jnp.allclose(out, ref, atol=2e-3, rtol=2e-3), (
        f"mismatch vs reference (max abs err {max_err})")

    print("KERNEL_OK")
</pallas_src>

<mosaic_0001>
module attributes {stable_mosaic.version = 11 : i64} {
  func.func @_siren_plucker_kernel(%arg0: i32, %arg1: memref<6x256xf32, #tpu.memory_space<vmem>>, %arg2: memref<32x7xf32, #tpu.memory_space<vmem>>, %arg3: memref<32x32xf32, #tpu.memory_space<vmem>>, %arg4: memref<32x1xf32, #tpu.memory_space<vmem>>, %arg5: memref<3x32xf32, #tpu.memory_space<vmem>>, %arg6: memref<3x1xf32, #tpu.memory_space<vmem>>, %arg7: memref<3x256xf32, #tpu.memory_space<vmem>>) attributes {dimension_semantics = [#tpu.dimension_semantics<parallel>], iteration_bounds = array<i64: 1>, scalar_prefetch = 0 : i64, scratch_operands = 0 : i64, tpu.core_type = #tpu.core_type<tc>, window_params = [{transform_indices = @transform_0, window_bounds = array<i64: 6, 256>}, {pipeline_mode = #tpu.pipeline_mode<synchronous>, transform_indices = @transform_1, window_bounds = array<i64: 32, 7>}, {pipeline_mode = #tpu.pipeline_mode<synchronous>, transform_indices = @transform_2, window_bounds = array<i64: 32, 32>}, {pipeline_mode = #tpu.pipeline_mode<synchronous>, transform_indices = @transform_3, window_bounds = array<i64: 32, 1>}, {pipeline_mode = #tpu.pipeline_mode<synchronous>, transform_indices = @transform_4, window_bounds = array<i64: 3, 32>}, {pipeline_mode = #tpu.pipeline_mode<synchronous>, transform_indices = @transform_5, window_bounds = array<i64: 3, 1>}, {transform_indices = @transform_6, window_bounds = array<i64: 3, 256>}]} {
    %c0 = arith.constant 0 : index
    %c0_0 = arith.constant 0 : index
    %0 = vector.load %arg1[%c0, %c0_0] : memref<6x256xf32, #tpu.memory_space<vmem>>, vector<6x256xf32>
    %1 = vector.extract_strided_slice %0 {offsets = [0, 0], sizes = [1, 256], strides = [1, 1]} : vector<6x256xf32> to vector<1x256xf32>
    %2 = vector.extract_strided_slice %0 {offsets = [1, 0], sizes = [1, 256], strides = [1, 1]} : vector<6x256xf32> to vector<1x256xf32>
    %3 = vector.extract_strided_slice %0 {offsets = [2, 0], sizes = [1, 256], strides = [1, 1]} : vector<6x256xf32> to vector<1x256xf32>
    %4 = vector.extract_strided_slice %0 {offsets = [3, 0], sizes = [1, 256], strides = [1, 1]} : vector<6x256xf32> to vector<1x256xf32>
    %5 = vector.extract_strided_slice %0 {offsets = [4, 0], sizes = [1, 256], strides = [1, 1]} : vector<6x256xf32> to vector<1x256xf32>
    %6 = vector.extract_strided_slice %0 {offsets = [5, 0], sizes = [1, 256], strides = [1, 1]} : vector<6x256xf32> to vector<1x256xf32>
    %7 = vector.extract_strided_slice %0 {offsets = [3, 0], sizes = [3, 256], strides = [1, 1]} : vector<6x256xf32> to vector<3x256xf32>
    %8 = arith.mulf %2, %6 : vector<1x256xf32>
    %9 = arith.mulf %3, %5 : vector<1x256xf32>
    %10 = arith.subf %8, %9 : vector<1x256xf32>
    %11 = arith.mulf %3, %4 : vector<1x256xf32>
    %12 = arith.mulf %1, %6 : vector<1x256xf32>
    %13 = arith.subf %11, %12 : vector<1x256xf32>
    %14 = arith.mulf %1, %5 : vector<1x256xf32>
    %15 = arith.mulf %2, %4 : vector<1x256xf32>
    %16 = arith.subf %14, %15 : vector<1x256xf32>
    %cst = arith.constant 1.000000e+00 : f32
    %17 = vector.broadcast %cst : f32 to vector<1x256xf32>
    %18 = tpu.concatenate %7, %10, %13, %16, %17 in 0 : vector<3x256xf32>, vector<1x256xf32>, vector<1x256xf32>, vector<1x256xf32>, vector<1x256xf32> -> vector<7x256xf32>
    %c0_1 = arith.constant 0 : index
    %c0_2 = arith.constant 0 : index
    %19 = vector.load %arg2[%c0_1, %c0_2] : memref<32x7xf32, #tpu.memory_space<vmem>>, vector<32x7xf32>
    %cst_3 = arith.constant dense<0.000000e+00> : vector<32x256xf32>
    %20 = tpu.matmul %19, %18, %cst_3 {dimension_numbers = #tpu.dot_dimension_numbers<[1], [0], [0], [1], [0, 0, 1, 1], [], []>, precision = #tpu.contract_precision<fp32>} : vector<32x7xf32>, vector<7x256xf32>, vector<32x256xf32> -> vector<32x256xf32>
    %21 = math.sin %20 : vector<32x256xf32>
    %c0_4 = arith.constant 0 : index
    %c0_5 = arith.constant 0 : index
    %22 = vector.load %arg3[%c0_4, %c0_5] : memref<32x32xf32, #tpu.memory_space<vmem>>, vector<32x32xf32>
    %c0_6 = arith.constant 0 : index
    %c0_7 = arith.constant 0 : index
    %23 = vector.load %arg4[%c0_6, %c0_7] : memref<32x1xf32, #tpu.memory_space<vmem>>, vector<32x1xf32>
    %cst_8 = arith.constant dense<0.000000e+00> : vector<32x256xf32>
    %24 = tpu.matmul %22, %21, %cst_8 {dimension_numbers = #tpu.dot_dimension_numbers<[1], [0], [0], [1], [0, 0, 1, 1], [], []>, precision = #tpu.contract_precision<fp32>} : vector<32x32xf32>, vector<32x256xf32>, vector<32x256xf32> -> vector<32x256xf32>
    %25 = vector.broadcast %23 : vector<32x1xf32> to vector<32x256xf32>
    %26 = arith.addf %24, %25 : vector<32x256xf32>
    %27 = math.sin %26 : vector<32x256xf32>
    %c0_9 = arith.constant 0 : index
    %c0_10 = arith.constant 0 : index
    %28 = vector.load %arg5[%c0_9, %c0_10] : memref<3x32xf32, #tpu.memory_space<vmem>>, vector<3x32xf32>
    %c0_11 = arith.constant 0 : index
    %c0_12 = arith.constant 0 : index
    %29 = vector.load %arg6[%c0_11, %c0_12] : memref<3x1xf32, #tpu.memory_space<vmem>>, vector<3x1xf32>
    %cst_13 = arith.constant dense<0.000000e+00> : vector<3x256xf32>
    %30 = tpu.matmul %28, %27, %cst_13 {dimension_numbers = #tpu.dot_dimension_numbers<[1], [0], [0], [1], [0, 0, 1, 1], [], []>, precision = #tpu.contract_precision<fp32>} : vector<3x32xf32>, vector<32x256xf32>, vector<3x256xf32> -> vector<3x256xf32>
    %31 = vector.broadcast %29 : vector<3x1xf32> to vector<3x256xf32>
    %32 = arith.addf %30, %31 : vector<3x256xf32>
    %33 = math.sin %32 : vector<3x256xf32>
    %c0_14 = arith.constant 0 : index
    %c0_15 = arith.constant 0 : index
    %34 = vector.load %arg7[%c0_14, %c0_15] : memref<3x256xf32, #tpu.memory_space<vmem>>, vector<3x256xf32>
    tpu.vector_store %arg7[%c0_14, %c0_15], %33 {strides = array<i32>} : memref<3x256xf32, #tpu.memory_space<vmem>>, vector<3x256xf32>,
    return
  }
  func.func @transform_0(%arg0: i32) -> (i32, i32) {
    %c0_i32 = arith.constant 0 : i32
    %c0_i32_0 = arith.constant 0 : i32
    return %c0_i32, %arg0 : i32, i32
  }
  func.func @transform_1(%arg0: i32) -> (i32, i32) {
    %c0_i32 = arith.constant 0 : i32
    %c0_i32_0 = arith.constant 0 : i32
    %c0_i32_1 = arith.constant 0 : i32
    return %c0_i32, %c0_i32_0 : i32, i32
  }
  func.func @transform_2(%arg0: i32) -> (i32, i32) {
    %c0_i32 = arith.constant 0 : i32
    %c0_i32_0 = arith.constant 0 : i32
    %c0_i32_1 = arith.constant 0 : i32
    return %c0_i32, %c0_i32_0 : i32, i32
  }
  func.func @transform_3(%arg0: i32) -> (i32, i32) {
    %c0_i32 = arith.constant 0 : i32
    %c0_i32_0 = arith.constant 0 : i32
    %c0_i32_1 = arith.constant 0 : i32
    return %c0_i32, %c0_i32_0 : i32, i32
  }
  func.func @transform_4(%arg0: i32) -> (i32, i32) {
    %c0_i32 = arith.constant 0 : i32
    %c0_i32_0 = arith.constant 0 : i32
    %c0_i32_1 = arith.constant 0 : i32
    return %c0_i32, %c0_i32_0 : i32, i32
  }
  func.func @transform_5(%arg0: i32) -> (i32, i32) {
    %c0_i32 = arith.constant 0 : i32
    %c0_i32_0 = arith.constant 0 : i32
    %c0_i32_1 = arith.constant 0 : i32
    return %c0_i32, %c0_i32_0 : i32, i32
  }
  func.func @transform_6(%arg0: i32) -> (i32, i32) {
    %c0_i32 = arith.constant 0 : i32
    %c0_i32_0 = arith.constant 0 : i32
    return %c0_i32, %arg0 : i32, i32
  }
}

</mosaic_0001>

<bundles_post_ra>
// kernel: tpu_custom_call.1
= control target key start
LH: loop header
LB: loop body
LE: loop exit
PB: predicated region body
PF: predicated region fallthrough
CT: control target
= control target key end

     0   :  { %vm104_vm0 = vcmask 56320   ;;  %s7216_s0 = inlined_call_operand.vmem [shape: f32[6,256], index: 0, kind: input, shape index: {}]   ;;  %s7217_s1 = inlined_call_operand.vmem [shape: f32[32,7], index: 1, kind: input, shape index: {}]   ;;  %s7218_s2 = inlined_call_operand.vmem [shape: f32[32,32], index: 2, kind: input, shape index: {}]   ;;  %s7219_s3 = inlined_call_operand.vmem [shape: f32[32,1], index: 3, kind: input, shape index: {}]   ;;  %s7220_s4 = inlined_call_operand.vmem [shape: f32[3,32], index: 4, kind: input, shape index: {}]   ;;  %s7221_s5 = inlined_call_operand.vmem [shape: f32[3,1], index: 5, kind: input, shape index: {}]   ;;  %s7222_s6 = inlined_call_operand.hbm [shape: f32[3,256], index: 6, kind: output, shape index: {}]  }
   0x1   :  { %v24_v0 = vld [vmem:[%s7216_s0] sm:$0x3f]  ;;  %v101_v6 = vld [vmem:[%s7217_s1 + $0x8] sm:$0xff] }
   0x2   :  { %v28_v1 = vrot.slane %v24_v0, 4  ;;  %v34_v2 = vrot.slane %v24_v0, 2  ;;  %v48_v3 = vrot.slane %v24_v0, 1  ;;  %v54_v4 = vrot.slane %v24_v0, 5  ;;  %v100_v5 = vld [vmem:[%s7217_s1] sm:$0xff] }
   0x3   :  { %v25_v11 = vld [vmem:[%s7216_s0 + $0x8] sm:$0x3f] }
   0x4   :  { %v32_v7 = vmul.f32 %v28_v1, %v24_v0  ;;  %v38_v8 = vmul.f32 %v34_v2, %v24_v0  ;;  %v52_v9 = vmul.f32 %v48_v3, %v24_v0  ;;  %v58_v10 = vmul.f32 %v54_v4, %v24_v0 }
   0x5   :  { %11 = vsyncpa [#allocation3], 0  ;;  %v106_v12 = vsel %vm104_vm0, %v100_v5, 0  ;;  %v109_v13 = vsel %vm104_vm0, %v101_v6, 0  ;;  %vm88_vm1 = vcmask 1042432   ;;  %v29_v18 = vrot.slane %v25_v11, 4 }
   0x6   :  { %v42_v14 = vrot.slane %v38_v8, 1  ;;  %v62_v15 = vrot.slane %v58_v10, 6  ;;  %v4539_v16 = vand.u32 4294901760, %v106_v12  ;;  %v4541_v17 = vand.u32 4294901760, %v109_v13  ;;  %v102_v24 = vld [vmem:[%s7217_s1 + $0x10] sm:$0xff]  ;;  %v103_v51 = vld [vmem:[%s7217_s1 + $0x18] sm:$0xff] }
   0x7   :  { %v35_v19 = vrot.slane %v25_v11, 2  ;;  %v68_v22 = vrot.slane %v24_v0, 3  ;;  %vm7276_vm2 = vcmask 1043456   ;;  %vm94_vm3 = vcmask 1044480   ;;  %s4382_s27 = sshll.u32 %s7222_s6, 4  ;;  %s4383_s27 = int_to_ptr.hbm [resolvable:$true] %s4382_s27 }
   0x8   :  { %v46_v20 = vsub.f32 %v32_v7, %v42_v14  ;;  %v66_v21 = vsub.f32 %v52_v9, %v62_v15  ;;  %v4544_v23 = vsub.f32 %v106_v12, %v4539_v16  ;;  %v33_v25 = vmul.f32 %v29_v18, %v25_v11 }
   0x9   :  { %v39_v26 = vmul.f32 %v35_v19, %v25_v11  ;;  %vm97_vm4 = vcmask 1045504   ;;  %v4553_v31 = vsub.f32 %v109_v13, %v4541_v17  ;;  %v112_v32 = vsel %vm104_vm0, %v102_v24, 0 }
   0xa   :  { %v74_v27 = vrot.slane %v46_v20, 6  ;;  %v80_v28 = vrot.slane %v66_v21, 6  ;;  %v84_v29 = vrot.slane %v46_v20, 3  ;;  %v4550_v30 = vand.u32 4294901760, %v4544_v23 }
   0xb   :  { %v43_v33 = vrot.slane %v39_v26, 1  ;;  %v49_v36 = vrot.slane %v25_v11, 1  ;;  %v55_v37 = vrot.slane %v25_v11, 5  ;;  %vm117_vm5 = vcmask 1046528  }
   0xc   :  { %v89_v34 = vsel %vm88_vm1, %v68_v22, %v74_v27  ;;  %v144_v35 = vsub.f32 %v4544_v23, %v4550_v30  ;;  %v4563_v42 = vand.u32 4294901760, %v4553_v31  ;;  %v4565_v43 = vand.u32 4294901760, %v112_v32 }
   0xd   :  { %v92_v38 = vsel %vm7276_vm2, %v89_v34, %v80_v28  ;;  %v47_v40 = vsub.f32 %v33_v25, %v43_v33  ;;  %v53_v46 = vmul.f32 %v49_v36, %v25_v11  ;;  %v59_v47 = vmul.f32 %v55_v37, %v25_v11 }
   0xe   :  { %v95_v39 = vsel %vm94_vm3, %v92_v38, %v84_v29  ;;  %v4568_v45 = vand.u32 4294901760, %v144_v35  ;;  %v69_v49 = vrot.slane %v25_v11, 3  ;;  %v152_v54 = vsub.f32 %v4553_v31, %v4563_v42 }
   0xf   :  { %v98_v41 = vsel %vm97_vm4, %v95_v39, 1.0  ;;  %v75_v50 = vrot.slane %v47_v40, 6  ;;  %v63_v52 = vrot.slane %v59_v47, 6  ;;  %v4578_v55 = vsub.f32 %v112_v32, %v4565_v43 }
  0x10   :  { %v119_v44 = vsel %vm117_vm5, %v98_v41, 0  ;;  %v115_v58 = vsel %vm104_vm0, %v103_v51, 0  ;;  %v85_v59 = vrot.slane %v47_v40, 3  ;;  %v153_v63 = vand.u32 4294901760, %v152_v54 }
  0x11   :  { %v139_v48 = vand.u32 4294901760, %v119_v44  ;;  %v67_v56 = vsub.f32 %v53_v46, %v63_v52  ;;  %v90_v60 = vsel %vm88_vm1, %v69_v49, %v75_v50  ;;  %v4584_v0 = vand.u32 4294901760, %v4578_v55 }
  0x12   :  { %v4586_v1 = vand.u32 4294901760, %v115_v58  ;;  %v7237_v36 = vmov 0  }
  0x13   :  { %140 = vmatpush.msra.mxu0 %v139_v48  ;;  %v190_v53 = vsub.f32 %v119_v44, %v139_v48  ;;  %267 = vmatpush.msra.mxu3 %v139_v48  ;;  %v81_v61 = vrot.slane %v67_v56, 6  ;;  %v160_v7 = vsub.f32 %v4578_v55, %v4584_v0 }
  0x14   :  { %146 = vmatmul.f32.vlgmr.msra.gmra.mxu0 %v4568_v45  ;;  %271 = vmatmul.f32.vlgmr.msra.gmra.mxu3 %v4550_v30  ;;  %v166_v8 = vsub.f32 %v115_v58, %v4586_v1 }
  0x15   :  { %229 = vmatpush.msra.mxu2 %v190_v53  ;;  %v191_v57 = vand.u32 4294901760, %v190_v53  ;;  %v93_v2 = vsel %vm7276_vm2, %v90_v60, %v81_v61  ;;  %v161_v11 = vand.u32 4294901760, %v160_v7  ;;  %4454 = vset.pattern.permute.xlu1 %v7237_v36 }
  0x16   :  { %232 = vmatmul.f32.vlgmr.msra.gmra.mxu2 %v4544_v23  ;;  %v96_v4 = vsel %vm94_vm3, %v93_v2, %v85_v59  ;;  %v167_v12 = vand.u32 4294901760, %v166_v8  ;;  %4453 = vset.pattern.permute.xlu0 %v7237_v36 }
  0x17   :  { %v192_v62 = vsub.f32 %v190_v53, %v191_v57  ;;  %311 = vmatpush.msrb.mxu0 %v191_v57  ;;  %v99_v5 = vsel %vm97_vm4, %v96_v4, 1.0  ;;  %4455 = vset.pattern.permute.xlu2 %v7237_v36 }
  0x18   :  { %v122_v6 = vsel %vm117_vm5, %v99_v5, 0  ;;  %v168_v15 = vsub.f32 %v166_v8, %v167_v12  ;;  %v7233_v5 = vmov 2131351028  }
  0x19   :  { %v193_v3 = vand.u32 4294901760, %v192_v62  ;;  %v378_v9 = vand.u32 4294901760, %v122_v6 }
  0x1a   :  { %v169_v19 = vand.u32 4294901760, %v168_v15 }
  0x1b   :  { %194 = vmatpush.msra.mxu1 %v193_v3  ;;  %v429_v10 = vsub.f32 %v122_v6, %v378_v9  ;;  %379 = vmatpush.msrb.mxu2 %v378_v9 }
  0x1c   :  { %154 = vmatmul.f32.gmra.mxu0 %v153_v63  ;;  %196 = vmatmul.f32.vlgmr.msra.gmra.mxu1 %v4539_v16 }
  0x1d   :  { %277 = vmatmul.f32.gmra.mxu3 %v4563_v42  ;;  %345 = vmatpush.msrb.mxu1 %v139_v48  ;;  %v430_v13 = vand.u32 4294901760, %v429_v10 }
  0x1e   :  { %237 = vmatmul.f32.gmra.mxu2 %v4553_v31  ;;  %468 = vmatpush.msra.mxu0 %v429_v10 }
  0x1f   :  { %506 = vmatpush.msra.mxu1 %v378_v9  ;;  %v431_v14 = vsub.f32 %v429_v10, %v430_v13  ;;  %550 = vmatpush.msra.mxu2 %v430_v13 }
  0x21   :  { %v432_v18 = vand.u32 4294901760, %v431_v14  ;;  %v7226_v14 = vmov 1326507024  }
  0x23   :  { %433 = vmatpush.msrb.mxu3 %v432_v18 }
  0x24   :  { %162 = vmatmul.f32.gmra.mxu0 %v161_v11  ;;  %200 = vmatmul.f32.gmra.mxu1 %v4541_v17 }
  0x25   :  { %283 = vmatmul.f32.gmra.mxu3 %v4584_v0 }
  0x26   :  { %242 = vmatmul.f32.gmra.mxu2 %v4578_v55  ;;  %584 = vmatpush.msra.mxu3 %v378_v9 }
  0x2c   :  { %170 = vmatmul.f32.gmra.mxu0 %v169_v19  ;;  %204 = vmatmul.f32.gmra.mxu1 %v4565_v43 }
  0x2d   :  { %289 = vmatmul.f32.gmra.mxu3 %v167_v12 }
  0x2e   :  { %247 = vmatmul.f32.gmra.mxu2 %v166_v8 }
  0x34   :  { %208 = vmatmul.f32.gmra.mxu1 %v4586_v1  ;;  %313 = vmatmul.f32.vlgmr.msrb.gmra.mxu0 %v4539_v16 }
  0x35   :  { %435 = vmatmul.f32.vlgmr.msrb.gmra.mxu3 %v4539_v16 }
  0x36   :  { %385 = vmatmul.f32.vlgmr.msrb.gmra.mxu2 %v4568_v45 }
  0x3c   :  { %317 = vmatmul.f32.gmra.mxu0 %v4541_v17  ;;  %347 = vmatmul.f32.vlgmr.msrb.gmra.mxu1 %v4539_v16 }
  0x3d   :  { %439 = vmatmul.f32.gmra.mxu3 %v4541_v17 }
  0x3e   :  { %393 = vmatmul.f32.gmra.mxu2 %v153_v63  ;;  %v7239_v63 = vmov 683565275  }
  0x44   :  { %321 = vmatmul.f32.gmra.mxu0 %v4565_v43  ;;  %351 = vmatmul.f32.gmra.mxu1 %v4541_v17 }
  0x45   :  { %443 = vmatmul.f32.gmra.mxu3 %v4565_v43 }
  0x46   :  { %401 = vmatmul.f32.gmra.mxu2 %v161_v11  ;;  %v7228_v11 = vmov 920167782  }
  0x4c   :  { %325 = vmatmul.f32.gmra.mxu0 %v4586_v1  ;;  %355 = vmatmul.f32.gmra.mxu1 %v4565_v43 }
  0x4d   :  { %447 = vmatmul.f32.gmra.mxu3 %v4586_v1 }
  0x4e   :  { %409 = vmatmul.f32.gmra.mxu2 %v169_v19 }
  0x54   :  { %359 = vmatmul.f32.gmra.mxu1 %v4586_v1  ;;  %471 = vmatmul.f32.vlgmr.msra.gmra.mxu0 %v4544_v23 }
  0x55   :  { %586 = vmatmul.f32.vlgmr.msra.gmra.mxu3 %v4539_v16 }
  0x56   :  { %552 = vmatmul.f32.vlgmr.msra.gmra.mxu2 %v4539_v16 }
  0x5c   :  { %476 = vmatmul.f32.gmra.mxu0 %v4553_v31  ;;  %510 = vmatmul.f32.vlgmr.msra.gmra.mxu1 %v4550_v30 }
  0x5d   :  { %590 = vmatmul.f32.gmra.mxu3 %v4541_v17 }
  0x5e   :  { %556 = vmatmul.f32.gmra.mxu2 %v4541_v17 }
  0x64   :  { %481 = vmatmul.f32.gmra.mxu0 %v4578_v55  ;;  %516 = vmatmul.f32.gmra.mxu1 %v4563_v42 }
  0x65   :  { %594 = vmatmul.f32.gmra.mxu3 %v4565_v43 }
  0x66   :  { %560 = vmatmul.f32.gmra.mxu2 %v4565_v43 }
  0x6c   :  { %486 = vmatmul.f32.gmra.mxu0 %v166_v8  ;;  %522 = vmatmul.f32.gmra.mxu1 %v4584_v0  ;;  %v7231_v8 = vmov 2102212464  }
  0x6d   :  { %598 = vmatmul.f32.gmra.mxu3 %v4586_v1 }
  0x6e   :  { %564 = vmatmul.f32.gmra.mxu2 %v4586_v1  ;;  %v7235_v1 = vmov 2475754826  }
  0x74   :  { %528 = vmatmul.f32.gmra.mxu1 %v167_v12 }
  0x91   :  { %v147_v16 = vpop.f32.mrf.mxu0 }
  0x97   :  { %v272_v29 = vpop.f32.mrf.mxu3 }
  0x99   :  { %v155_v20 = vpop.f32.mrf.mxu0  ;;  %v197_v21 = vpop.f32.mrf.mxu1 }
  0x9a   :  { %v233_v25 = vpop.f32.mrf.mxu2  ;;  %v198_v26 = vadd.f32 %v197_v21, %v147_v16 }
  0x9c   :  { %v234_v28 = vadd.f32 %v233_v25, %v198_v26 }
  0x9e   :  { %v273_v31 = vadd.f32 %v272_v29, %v234_v28 }
  0xa0   :  { %v278_v41 = vpop.f32.mrf.mxu3 }
  0xa1   :  { %v163_v17 = vpop.f32.mrf.mxu0  ;;  %v201_v22 = vpop.f32.mrf.mxu1 }
  0xa2   :  { %v202_v32 = vadd.f32 %v201_v22, %v155_v20  ;;  %v238_v33 = vpop.f32.mrf.mxu2 }
  0xa4   :  { %v239_v37 = vadd.f32 %v238_v33, %v202_v32 }
  0xa6   :  { %v279_v43 = vadd.f32 %v278_v41, %v239_v37 }
  0xa9   :  { %v4630_v23 = vpop.f32.mrf.mxu0  ;;  %v205_v24 = vpop.f32.mrf.mxu1 }
  0xaa   :  { %v206_v57 = vadd.f32 %v205_v24, %v163_v17 }
  0xb1   :  { %v4632_v27 = vpop.f32.mrf.mxu1  ;;  %v314_v30 = vpop.f32.mrf.mxu0 }
  0xb2   :  { %v315_v34 = vadd.f32 %v314_v30, %v273_v31  ;;  %v243_v31 = vpop.f32.mrf.mxu2 }
  0xb9   :  { %v348_v35 = vpop.f32.mrf.mxu1  ;;  %v318_v42 = vpop.f32.mrf.mxu0 }
  0xba   :  { %v4636_v38 = vadd.f32 %v348_v35, %v315_v34  ;;  %v319_v46 = vadd.f32 %v318_v42, %v279_v43 }
  0xbc   :  { %7278 = vst [vmem:[#allocation5_spill] sm:$0xff] %v4636_v38  ;;  %v602_v39 = vand.u32 2147483647, %v4636_v38  ;;  %v605_v40 = vand.u32 2139095040, %v4636_v38 }
  0xbe   :  { %v606_v44 = vshrl.u32 %v605_v40, 23  ;;  %v609_v45 = vand.u32 8388607, %v602_v39 }
  0xc0   :  { %v4391_v47 = vadd.s32 4294967169, %v606_v44  ;;  %v610_v48 = vor.u32 8388608, %v609_v45  ;;  %v244_v45 = vadd.f32 %v243_v31, %v206_v57 }
  0xc1   :  { %v352_v49 = vpop.f32.mrf.mxu1 }
  0xc2   :  { %v612_v50 = vadd.s32 1, %v4391_v47  ;;  %v4643_v51 = vadd.f32 %v352_v49, %v319_v46  ;;  %v4645_v52 = vshll.u32 %v610_v48, 8 }
  0xc4   :  { %vm613_vm6 = vcmp.gt.s32.totalorder %v612_v50, 0  ;;  %v912_v54 = vand.u32 2147483647, %v4643_v51  ;;  %v915_v55 = vand.u32 2139095040, %v4643_v51  ;;  %v651_v59 = vand.u32 65535, %v4645_v52 }
  0xc5   :  { %v614_v53 = vsel %vm613_vm6, %v612_v50, 0  ;;  %v652_v60 = vshrl.u32 %v4645_v52, 16 }
  0xc6   :  { %v616_v56 = vand.u32 31, %v614_v53  ;;  %v916_v61 = vshrl.u32 %v915_v55, 23  ;;  %v615_v62 = vshrl.u32 %v614_v53, 5  ;;  %v4655_v3 = vand.u32 8388607, %v912_v54 }
  0xc8   :  { %v617_v58 = vsub.s32 32, %v616_v56  ;;  %v619_v0 = vshll.u32 %v7239_v63, %v616_v56  ;;  %v622_v2 = vshll.u32 %v7235_v1, %v616_v56  ;;  %v625_v7 = vshll.u32 %v7233_v5, %v616_v56 }
  0xc9   :  { %v628_v10 = vshll.u32 %v7231_v8, %v616_v56  ;;  %v631_v13 = vshll.u32 %v7228_v11, %v616_v56  ;;  %v4397_v20 = vadd.s32 4294967169, %v916_v61  ;;  %vm634_vm7 = vcmp.lt.s32.totalorder %v615_v62, 1 }
  0xca   :  { %v620_v4 = vshrl.u32 %v7235_v1, %v617_v58  ;;  %v623_v6 = vshrl.u32 %v7233_v5, %v617_v58  ;;  %v626_v9 = vshrl.u32 %v7231_v8, %v617_v58  ;;  %v629_v12 = vshrl.u32 %v7228_v11, %v617_v58 }
  0xcb   :  { %v632_v15 = vshrl.u32 %v7226_v14, %v617_v58  ;;  %vm637_vm8 = vcmp.lt.s32.totalorder %v615_v62, 4  ;;  %v618_v22 = vshrl.u32 %v7239_v63, %v617_v58  ;;  %vm636_vm9 = vcmp.lt.s32.totalorder %v615_v62, 3 }
  0xcc   :  { %v621_v18 = vor.u32 %v620_v4, %v619_v0  ;;  %v624_v19 = vor.u32 %v623_v6, %v622_v2  ;;  %v627_v16 = vor.u32 %v626_v9, %v625_v7  ;;  %v630_v21 = vor.u32 %v629_v12, %v628_v10 }
  0xcd   :  { %v633_v17 = vor.u32 %v632_v15, %v631_v13  ;;  %v922_v30 = vadd.s32 1, %v4397_v20  ;;  %vm635_vm10 = vcmp.lt.s32.totalorder %v615_v62, 2  ;;  %v920_v46 = vor.u32 8388608, %v4655_v3 }
  0xce   :  { %v639_v24 = vsel %vm637_vm8, %v627_v16, 2102212464  ;;  %v642_v25 = vsel %vm634_vm7, %v621_v18, %v624_v19  ;;  %v646_v26 = vsel %vm634_vm7, %v624_v19, %v627_v16  ;;  %v643_v28 = vsel %vm637_vm8, %v630_v21, 920167782 }
  0xcf   :  { %v647_v29 = vsel %vm637_vm8, %v633_v17, 1326507024  ;;  %v638_v32 = vsel %vm634_vm7, %v618_v22, %v621_v18  ;;  %v644_v33 = vsel %vm636_vm9, %v627_v16, %v643_v28  ;;  %v640_v35 = vsel %vm636_vm9, %v624_v19, %v639_v24 }
  0xd0   :  { %v648_v34 = vsel %vm636_vm9, %v630_v21, %v647_v29  ;;  %v645_v37 = vsel %vm635_vm10, %v642_v25, %v644_v33  ;;  %vm923_vm11 = vcmp.gt.s32.totalorder %v922_v30, 0  ;;  %v4667_v47 = vsel %vm635_vm10, %v638_v32, %v640_v35 }
  0xd1   :  { %v649_v40 = vsel %vm635_vm10, %v646_v26, %v648_v34  ;;  %v675_v43 = vand.u32 65535, %v645_v37  ;;  %v676_v44 = vshrl.u32 %v645_v37, 16  ;;  %v924_v50 = vsel %vm923_vm11, %v922_v30, 0 }
  0xd2   :  { %v653_v41 = vand.u32 65535, %v649_v40  ;;  %v654_v42 = vshrl.u32 %v649_v40, 16  ;;  %v926_v10 = vand.u32 31, %v924_v50  ;;  %v4674_v20 = vshrl.u32 %v924_v50, 5 }
  0xd3   :  { %v678_v56 = vmul.u32 %v676_v44, %v651_v59  ;;  %v679_v58 = vmul.u32 %v675_v43, %v652_v60  ;;  %v677_v0 = vmul.u32 %v675_v43, %v651_v59  ;;  %v680_v2 = vmul.u32 %v676_v44, %v652_v60 }
  0xd4   :  { %v656_v48 = vmul.u32 %v654_v42, %v651_v59  ;;  %v657_v49 = vmul.u32 %v653_v41, %v652_v60  ;;  %v655_v53 = vmul.u32 %v653_v41, %v651_v59  ;;  %v658_v55 = vmul.u32 %v654_v42, %v652_v60  ;;  %v284_v41 = vpop.f32.mrf.mxu3 }
  0xd5   :  { %v681_v7 = vshll.u32 %v678_v56, 16  ;;  %v682_v9 = vshrl.u32 %v678_v56, 16  ;;  %v683_v3 = vshll.u32 %v679_v58, 16  ;;  %v684_v13 = vshrl.u32 %v679_v58, 16 }
  0xd6   :  { %v659_v61 = vshll.u32 %v656_v48, 16  ;;  %v660_v62 = vshrl.u32 %v656_v48, 16  ;;  %v661_v4 = vshll.u32 %v657_v49, 16  ;;  %v662_v6 = vshrl.u32 %v657_v49, 16 }
  0xd7   :  { %vm685_vm13 = vc.u32 %v677_v0, %v681_v7  ;;  %v687_v15 = vadd.s32 %v681_v7, %v677_v0  ;;  %v4671_v16 = vsub.s32 32, %v926_v10  ;;  %v929_v24 = vshll.u32 %v7239_v63, %v926_v10 }
  0xd8   :  { %vm663_vm12 = vc.u32 %v655_v53, %v659_v61  ;;  %v665_v57 = vadd.s32 %v659_v61, %v655_v53  ;;  %v686_v19 = vsel %vm685_vm13, 1, %v7237_v36  ;;  %v932_v28 = vshll.u32 %v7235_v1, %v926_v10 }
  0xd9   :  { %v664_v12 = vsel %vm663_vm12, 1, %v7237_v36  ;;  %v688_v60 = vadd.s32 %v686_v19, %v680_v2  ;;  %vm689_vm15 = vc.u32 %v687_v15, %v683_v3  ;;  %v4677_v22 = vadd.s32 %v687_v15, %v683_v3  ;;  %v356_v19 = vpop.f32.mrf.mxu1 }
  0xda   :  { %v666_v18 = vadd.s32 %v664_v12, %v658_v55  ;;  %vm667_vm14 = vc.u32 %v665_v57, %v661_v4  ;;  %v690_v17 = vsel %vm689_vm15, 1, %v7237_v36  ;;  %v930_v26 = vshrl.u32 %v7235_v1, %v4671_v16 }
  0xdb   :  { %v668_v59 = vsel %vm667_vm14, 1, %v7237_v36  ;;  %v692_v25 = vadd.s32 %v690_v17, %v688_v60  ;;  %v933_v29 = vshrl.u32 %v7233_v5, %v4671_v16  ;;  %v935_v31 = vshll.u32 %v7233_v5, %v926_v10 }
  0xdc   :  { %v670_v21 = vadd.s32 %v668_v59, %v666_v18  ;;  %v936_v32 = vshrl.u32 %v7231_v8, %v4671_v16  ;;  %v938_v33 = vshll.u32 %v7231_v8, %v926_v10  ;;  %v4689_v35 = vor.u32 %v930_v26, %v929_v24 }
  0xdd   :  { %v693_v34 = vadd.s32 %v692_v25, %v682_v9  ;;  %v4691_v37 = vor.u32 %v933_v29, %v932_v28  ;;  %v939_v40 = vshrl.u32 %v7228_v11, %v4671_v16  ;;  %v941_v44 = vshll.u32 %v7228_v11, %v926_v10 }
  0xde   :  { %v671_v30 = vadd.s32 %v670_v21, %v660_v62  ;;  %v4697_v43 = vor.u32 %v936_v32, %v935_v31  ;;  %v942_v48 = vshrl.u32 %v7226_v14, %v4671_v16  ;;  %v285_v49 = vadd.f32 %v284_v41, %v244_v45 }
  0xdf   :  { %v694_v50 = vadd.s32 %v693_v34, %v684_v13  ;;  %v940_v53 = vor.u32 %v939_v40, %v938_v33  ;;  %vm944_vm1 = vcmp.lt.s32.totalorder %v4674_v20, 1  ;;  %v4705_v56 = vshll.u32 %v920_v46, 8 }
  0xe0   :  { %v4695_v42 = vadd.s32 %v671_v30, %v662_v6  ;;  %v943_v55 = vor.u32 %v942_v48, %v941_v44  ;;  %v695_v58 = vmul.u32 %v4645_v52, %v4667_v47  ;;  %vm947_vm3 = vcmp.lt.s32.totalorder %v4674_v20, 4  ;;  %v322_v6 = vpop.f32.mrf.mxu0 }
  0xe1   :  { %v698_v61 = vadd.s32 1, %v694_v50  ;;  %v952_v45 = vsel %vm944_vm1, %v4689_v35, %v4691_v37  ;;  %vm946_vm4 = vcmp.lt.s32.totalorder %v4674_v20, 3  ;;  %v953_v62 = vsel %vm947_vm3, %v940_v53, 920167782 }
  0xe2   :  { %vm697_vm0 = vc.u32 %v4695_v42, %v4677_v22  ;;  %v956_v46 = vsel %vm944_vm1, %v4691_v37, %v4697_v43  ;;  %v957_v52 = vsel %vm947_vm3, %v943_v55, 1326507024  ;;  %vm945_vm5 = vcmp.lt.s32.totalorder %v4674_v20, 2 }
  0xe3   :  { %v699_v47 = vsel %vm697_vm0, %v698_v61, %v694_v50  ;;  %v954_v0 = vsel %vm946_vm4, %v4697_v43, %v953_v62  ;;  %v958_v2 = vsel %vm946_vm4, %v940_v53, %v957_v52  ;;  %v961_v57 = vand.u32 65535, %v4705_v56 }
  0xe4   :  { %v700_v4 = vadd.s32 %v699_v47, %v695_v58  ;;  %v955_v7 = vsel %vm945_vm5, %v952_v45, %v954_v0  ;;  %v959_v9 = vsel %vm945_vm5, %v956_v46, %v958_v2  ;;  %v962_v3 = vshrl.u32 %v4705_v56, 16 }
  0xe5   :  { %v963_v10 = vand.u32 65535, %v959_v9  ;;  %v964_v12 = vshrl.u32 %v959_v9, 16  ;;  %v986_v13 = vshrl.u32 %v955_v7, 16  ;;  %v985_v18 = vand.u32 65535, %v955_v7 }
  0xe6   :  { %v701_v15 = vadd.s32 536870912, %v700_v4  ;;  %v323_v59 = vadd.f32 %v322_v6, %v285_v49  ;;  %v928_v0 = vshrl.u32 %v7239_v63, %v4671_v16  ;;  %v949_v2 = vsel %vm947_vm3, %v4697_v43, 2102212464 }
  0xe7   :  { %v966_v60 = vmul.u32 %v964_v12, %v961_v57  ;;  %v967_v21 = vmul.u32 %v963_v10, %v962_v3  ;;  %v988_v24 = vmul.u32 %v986_v13, %v961_v57  ;;  %v965_v25 = vmul.u32 %v963_v10, %v961_v57 }
  0xe8   :  { %v4735_v17 = vshrl.u32 %v701_v15, 30  ;;  %v4737_v28 = vadd.f32 %v356_v19, %v323_v59  ;;  %v968_v30 = vmul.u32 %v964_v12, %v962_v3  ;;  %v989_v31 = vmul.u32 %v985_v18, %v962_v3 }
  0xe9   :  { %v969_v26 = vshll.u32 %v966_v60, 16  ;;  %v991_v32 = vshll.u32 %v988_v24, 16  ;;  %v971_v33 = vshll.u32 %v967_v21, 16  ;;  %v987_v40 = vmul.u32 %v985_v18, %v961_v57 }
  0xea   :  { %v703_v29 = vshll.u32 %v4735_v17, 30  ;;  %v970_v44 = vshrl.u32 %v966_v60, 16  ;;  %v990_v50 = vmul.u32 %v986_v13, %v962_v3  ;;  %v993_v58 = vshll.u32 %v989_v31, 16  ;;  %v248_v60 = vpop.f32.mrf.mxu2 }
  0xeb   :  { %vm973_vm6 = vc.u32 %v965_v25, %v969_v26  ;;  %v975_v34 = vadd.s32 %v969_v26, %v965_v25  ;;  %vm995_vm8 = vc.u32 %v987_v40, %v991_v32  ;;  %v997_v62 = vadd.s32 %v991_v32, %v987_v40 }
  0xec   :  { %v4740_v41 = vsub.s32 %v700_v4, %v703_v29  ;;  %v974_v48 = vsel %vm973_vm6, 1, %v7237_v36  ;;  %v996_v45 = vsel %vm995_vm8, 1, %v7237_v36  ;;  %v1225_v46 = vand.u32 2139095040, %v4737_v28 }
  0xed   :  { %v976_v49 = vadd.s32 %v974_v48, %v968_v30  ;;  %vm977_vm7 = vc.u32 %v975_v34, %v971_v33  ;;  %v998_v47 = vadd.s32 %v996_v45, %v990_v50  ;;  %vm999_vm10 = vc.u32 %v997_v62, %v993_v58  ;;  %v290_v33 = vpop.f32.mrf.mxu3 }
  0xee   :  { %vm705_vm9 = vcmp.lt.s32.totalorder %v4740_v41, 0  ;;  %v706_v53 = vsub.s32 0, %v4740_v41  ;;  %v978_v55 = vsel %vm977_vm7, 1, %v7237_v36  ;;  %v972_v7 = vshrl.u32 %v967_v21, 16 }
  0xef   :  { %v980_v61 = vadd.s32 %v978_v55, %v976_v49  ;;  %v1000_v9 = vsel %vm999_vm10, 1, %v7237_v36  ;;  %v1226_v57 = vshrl.u32 %v1225_v46, 23  ;;  %v992_v3 = vshrl.u32 %v988_v24, 16 }
  0xf0   :  { %v707_v52 = vsel %vm705_vm9, %v706_v53, %v4740_v41  ;;  %v1002_v10 = vadd.s32 %v1000_v9, %v998_v47  ;;  %v948_v12 = vsel %vm944_vm1, %v928_v0, %v4689_v35  ;;  %v950_v16 = vsel %vm946_vm4, %v4691_v37, %v949_v2 }
  0xf1   :  { %v981_v4 = vadd.s32 %v980_v61, %v970_v44  ;;  %v708_v6 = vclz %v707_v52  ;;  %v4403_v43 = vadd.s32 4294967169, %v1226_v57  ;;  %v210_v15 = vadd.f32 %v4632_v27, %v4630_v23  ;;  %v326_v52 = vpop.f32.mrf.mxu0 }
  0xf2   :  { %v994_v18 = vshrl.u32 %v989_v31, 16  ;;  %v1003_v19 = vadd.s32 %v1002_v10, %v992_v3  ;;  %v7224_v59 = vand.u32 2147483647, %v4737_v28  ;;  %v4766_v24 = vadd.s32 %v997_v62, %v993_v58 }
  0xf3   :  { %v4761_v13 = vadd.s32 %v981_v4, %v972_v7  ;;  %v4392_v21 = vadd.s32 4294967294, %v708_v6  ;;  %v1232_v25 = vadd.s32 1, %v4403_v43  ;;  %v951_v35 = vsel %vm945_vm5, %v948_v12, %v950_v16  ;;  %v360_v43 = vpop.f32.mrf.mxu1 }
  0xf4   :  { %v1004_v26 = vadd.s32 %v1003_v19, %v994_v18  ;;  %v249_v37 = vadd.f32 %v248_v60, %v210_v15  ;;  %v1229_v23 = vand.u32 8388607, %v7224_v59  ;;  %v1005_v30 = vmul.u32 %v4705_v56, %v951_v35  ;;  %v4807_v60 = vpop.f32.mrf.mxu2 }
  0xf5   :  { %vm1007_vm11 = vc.u32 %v4761_v13, %v4766_v24  ;;  %vm1233_vm12 = vcmp.gt.s32.totalorder %v1232_v25, 0  ;;  %vm4393_vm13 = vcmp.lt.s32.totalorder %v4392_v21, 0  ;;  %v696_v3 = vadd.s32 %v4677_v22, %v4695_v42 }
  0xf6   :  { %v1008_v29 = vadd.s32 1, %v1004_v26  ;;  %v1234_v27 = vsel %vm1233_vm12, %v1232_v25, 0  ;;  %v291_v40 = vadd.f32 %v290_v33, %v249_v37  ;;  %v711_v44 = vsel %vm4393_vm13, 0, %v4392_v21 }
  0xf7   :  { %v1236_v31 = vand.u32 31, %v1234_v27  ;;  %v1230_v48 = vor.u32 8388608, %v1229_v23  ;;  %v716_v62 = vsub.s32 4294967266, %v711_v44  ;;  %v4790_v47 = vshrl.u32 %v1234_v27, 5 }
  0xf8   :  { %v1009_v32 = vsel %vm1007_vm11, %v1008_v29, %v1004_v26  ;;  %v712_v10 = vsub.s32 32, %v711_v44  ;;  %v327_v12 = vadd.f32 %v326_v52, %v291_v40  ;;  %v713_v40 = vshll.u32 %v4740_v41, %v711_v44 }
  0xf9   :  { %v1010_v34 = vadd.s32 %v1009_v32, %v1005_v30  ;;  %v4775_v20 = vsub.s32 32, %v1236_v31  ;;  %v1239_v50 = vshll.u32 %v7239_v63, %v1236_v31  ;;  %v1242_v56 = vshll.u32 %v7235_v1, %v1236_v31 }
  0xfa   :  { %v1248_v61 = vshll.u32 %v7231_v8, %v1236_v31  ;;  %v1245_v6 = vshll.u32 %v7233_v5, %v1236_v31  ;;  %v1251_v57 = vshll.u32 %v7228_v11, %v1236_v31  ;;  %vm1254_vm14 = vcmp.lt.s32.totalorder %v4790_v47, 1 }
  0xfb   :  { %v1011_v49 = vadd.s32 536870912, %v1010_v34  ;;  %v1240_v53 = vshrl.u32 %v7235_v1, %v4775_v20  ;;  %v1243_v55 = vshrl.u32 %v7233_v5, %v4775_v20  ;;  %v1246_v58 = vshrl.u32 %v7231_v8, %v4775_v20 }
  0xfc   :  { %v1249_v45 = vshrl.u32 %v7228_v11, %v4775_v20  ;;  %v1252_v0 = vshrl.u32 %v7226_v14, %v4775_v20  ;;  %vm1257_vm15 = vcmp.lt.s32.totalorder %v4790_v47, 4  ;;  %v717_v19 = vadd.s32 127, %v716_v62 }
  0xfd   :  { %v4788_v46 = vshrl.u32 %v1011_v49, 30  ;;  %v4794_v2 = vor.u32 %v1240_v53, %v1239_v50  ;;  %v4796_v4 = vor.u32 %v1243_v55, %v1242_v56  ;;  %v1247_v16 = vor.u32 %v1246_v58, %v1245_v6 }
  0xfe   :  { %v1250_v7 = vor.u32 %v1249_v45, %v1248_v61  ;;  %v1253_v18 = vor.u32 %v1252_v0, %v1251_v57  ;;  %v4815_v42 = vshll.u32 %v1230_v48, 8  ;;  %vm1256_vm1 = vcmp.lt.s32.totalorder %v4790_v47, 3  ;;  %v4841_v0 = vpop.f32.mrf.mxu3 }
  0xff   :  { %v1013_v9 = vshll.u32 %v4788_v46, 30  ;;  %v1262_v21 = vsel %vm1254_vm14, %v4794_v2, %v4796_v4  ;;  %v4820_v35 = vadd.f32 %v360_v43, %v327_v12  ;;  %vm1255_vm3 = vcmp.lt.s32.totalorder %v4790_v47, 2 }
 0x100   :  { %v1263_v22 = vsel %vm1257_vm15, %v1250_v7, 920167782  ;;  %v1266_v37 = vsel %vm1254_vm14, %v4796_v4, %v1247_v16  ;;  %v714_v29 = vshrl.u32 %v696_v3, %v712_v10  ;;  %v1267_v30 = vsel %vm1257_vm15, %v1253_v18, 1326507024 }
 0x101   :  { %v4803_v15 = vsub.s32 %v1010_v34, %v1013_v9  ;;  %v1264_v26 = vsel %vm1256_vm1, %v1247_v16, %v1263_v22  ;;  %v718_v31 = vshll.u32 %v717_v19, 23  ;;  %v1268_v33 = vsel %vm1256_vm1, %v1250_v7, %v1267_v30  ;;  %v4845_v7 = vpop.f32.mrf.mxu2 }
 0x102   :  { %v1265_v27 = vsel %vm1255_vm3, %v1262_v21, %v1264_v26  ;;  %v1271_v34 = vand.u32 65535, %v4815_v42  ;;  %v1269_v48 = vsel %vm1255_vm3, %v1266_v37, %v1268_v33  ;;  %v1535_v50 = vand.u32 2139095040, %v4820_v35 }
 0x103   :  { %vm1015_vm0 = vcmp.lt.s32.totalorder %v4803_v15, 0  ;;  %v1016_v25 = vsub.s32 0, %v4803_v15  ;;  %v1296_v49 = vshrl.u32 %v1265_v27, 16  ;;  %v1273_v55 = vand.u32 65535, %v1269_v48 }
 0x104   :  { %v1274_v56 = vshrl.u32 %v1269_v48, 16  ;;  %v1295_v58 = vand.u32 65535, %v1265_v27  ;;  %v715_v61 = vor.u32 %v714_v29, %v713_v40  ;;  %v1272_v45 = vshrl.u32 %v4815_v42, 16 }
 0x105   :  { %v1017_v23 = vsel %vm1015_vm0, %v1016_v25, %v4803_v15  ;;  %v1298_v62 = vmul.u32 %v1296_v49, %v1271_v34  ;;  %v719_v52 = vor.u32 4788187, %v718_v31  ;;  %v7223_v57 = vand.u32 2147483647, %v4820_v35 }
 0x106   :  { %v1018_v32 = vclz %v1017_v23  ;;  %v1276_v6 = vmul.u32 %v1274_v56, %v1271_v34  ;;  %v1277_v41 = vmul.u32 %v1273_v55, %v1272_v45  ;;  %v1299_v9 = vmul.u32 %v1295_v58, %v1272_v45 }
 0x107   :  { %v1536_v3 = vshrl.u32 %v1535_v50, 23  ;;  %v722_v10 = vcvt.s32.f32 %v715_v61  ;;  %v1275_v12 = vmul.u32 %v1273_v55, %v1271_v34  ;;  %v1301_v18 = vshll.u32 %v1298_v62, 16 }
 0x108   :  { %v4398_v53 = vadd.s32 4294967294, %v1018_v32  ;;  %v1279_v43 = vshll.u32 %v1276_v6, 16  ;;  %v720_v19 = vand.u32 2147483647, %v719_v52  ;;  %v1238_v21 = vshrl.u32 %v7239_v63, %v4775_v20 }
 0x109   :  { %v1278_v22 = vmul.u32 %v1274_v56, %v1272_v45  ;;  %v1297_v25 = vmul.u32 %v1295_v58, %v1271_v34  ;;  %v1281_v37 = vshll.u32 %v1277_v41, 16  ;;  %v1259_v23 = vsel %vm1257_vm15, %v1247_v16, 2102212464  ;;  %v4860_v56 = vpop.f32.mrf.mxu3 }
 0x10a   :  { %vm4399_vm4 = vcmp.lt.s32.totalorder %v4398_v53, 0  ;;  %vm1283_vm5 = vc.u32 %v1275_v12, %v1279_v43  ;;  %v1285_v29 = vadd.s32 %v1279_v43, %v1275_v12  ;;  %v1303_v30 = vshll.u32 %v1299_v9, 16 }
 0x10b   :  { %v4843_v44 = vsel %vm4399_vm4, 0, %v4398_v53  ;;  %v1284_v27 = vsel %vm1283_vm5, 1, %v7237_v36  ;;  %v4409_v31 = vadd.s32 4294967169, %v1536_v3  ;;  %vm1305_vm7 = vc.u32 %v1297_v25, %v1301_v18 }
 0x10c   :  { %v1026_v26 = vsub.s32 4294967266, %v4843_v44  ;;  %v1286_v32 = vadd.s32 %v1284_v27, %v1278_v22  ;;  %vm1287_vm6 = vc.u32 %v1285_v29, %v1281_v37  ;;  %v1307_v33 = vadd.s32 %v1301_v18, %v1297_v25  ;;  %v4868_v18 = vpop.f32.mrf.mxu2 }
 0x10d   :  { %v1258_v20 = vsel %vm1254_vm14, %v1238_v21, %v4794_v2  ;;  %v1280_v34 = vshrl.u32 %v1276_v6, 16  ;;  %v1288_v40 = vsel %vm1287_vm6, 1, %v7237_v36  ;;  %v1300_v48 = vmul.u32 %v1296_v49, %v1272_v45 }
 0x10e   :  { %v1027_v50 = vadd.s32 127, %v1026_v26  ;;  %v1290_v53 = vadd.s32 %v1288_v40, %v1286_v32  ;;  %v1306_v16 = vsel %vm1305_vm7, 1, %v7237_v36  ;;  %vm1309_vm8 = vc.u32 %v1307_v33, %v1303_v30 }
 0x10f   :  { %v1022_v55 = vsub.s32 32, %v4843_v44  ;;  %v1260_v58 = vsel %vm1256_vm1, %v4796_v4, %v1259_v23  ;;  %v1308_v61 = vadd.s32 %v1306_v16, %v1300_v48  ;;  %v1310_v2 = vsel %vm1309_vm8, 1, %v7237_v36 }
 0x110   :  { %v1006_v52 = vadd.s32 %v4766_v24, %v4761_v13  ;;  %v1282_v49 = vshrl.u32 %v1277_v41, 16  ;;  %v1291_v45 = vadd.s32 %v1290_v53, %v1280_v34  ;;  %v1542_v6 = vadd.s32 1, %v4409_v31 }
 0x111   :  { %v723_v3 = vmul.f32 %v722_v10, %v720_v19  ;;  %v1302_v12 = vshrl.u32 %v1298_v62, 16  ;;  %v1312_v43 = vadd.s32 %v1310_v2, %v1308_v61  ;;  %v1539_v21 = vand.u32 8388607, %v7223_v57  ;;  %v4896_v40 = vpop.f32.mrf.mxu3 }
 0x112   :  { %v1028_v22 = vshll.u32 %v1027_v50, 23  ;;  %v1261_v4 = vsel %vm1255_vm3, %v1258_v20, %v1260_v58  ;;  %v4874_v25 = vadd.s32 %v1291_v45, %v1282_v49  ;;  %vm1543_vm9 = vcmp.gt.s32.totalorder %v1542_v6, 0 }
 0x113   :  { %v1024_v26 = vshrl.u32 %v1006_v52, %v1022_v55  ;;  %v1304_v13 = vshrl.u32 %v1299_v9, 16  ;;  %v1313_v24 = vadd.s32 %v1312_v43, %v1302_v12  ;;  %v1544_v41 = vsel %vm1543_vm9, %v1542_v6, 0 }
 0x114   :  { %vm604_vm10 = vcmp.lt.s32.totalorder %v4636_v38, 0  ;;  %v4877_v62 = vadd.s32 %v1307_v33, %v1303_v30  ;;  %v1546_v10 = vand.u32 31, %v1544_v41  ;;  %v724_v19 = vxor.u32 2147483648, %v723_v3  ;;  %v4911_v6 = vpop.f32.mrf.mxu2 }
 0x115   :  { %v1023_v37 = vshll.u32 %v4803_v15, %v4843_v44  ;;  %v1314_v29 = vadd.s32 %v1313_v24, %v1304_v13  ;;  %v1540_v23 = vor.u32 8388608, %v1539_v21  ;;  %v1029_v47 = vor.u32 4788187, %v1028_v22 }
 0x116   :  { %v1315_v27 = vmul.u32 %v4815_v42, %v1261_v4  ;;  %vm1317_vm11 = vc.u32 %v4874_v25, %v4877_v62  ;;  %v4884_v9 = vsub.s32 32, %v1546_v10  ;;  %v4886_v20 = vshrl.u32 %v1544_v41, 5 }
 0x117   :  { %v1025_v31 = vor.u32 %v1024_v26, %v1023_v37  ;;  %v1318_v32 = vadd.s32 1, %v1314_v29  ;;  %v1549_v30 = vshll.u32 %v7239_v63, %v1546_v10  ;;  %v1552_v15 = vshll.u32 %v7235_v1, %v1546_v10 }
 0x118   :  { %v1550_v33 = vshrl.u32 %v7235_v1, %v4884_v9  ;;  %v1553_v44 = vshrl.u32 %v7233_v5, %v4884_v9  ;;  %v1556_v42 = vshrl.u32 %v7231_v8, %v4884_v9  ;;  %v1555_v48 = vshll.u32 %v7233_v5, %v1546_v10 }
 0x119   :  { %v1319_v34 = vsel %vm1317_vm11, %v1318_v32, %v1314_v29  ;;  %v1558_v50 = vshll.u32 %v7231_v8, %v1546_v10  ;;  %v1559_v53 = vshrl.u32 %v7228_v11, %v4884_v9  ;;  %v1030_v16 = vand.u32 2147483647, %v1029_v47  ;;  %v511_v32 = vpop.f32.mrf.mxu1 }
 0x11a   :  { %v1320_v55 = vadd.s32 %v1319_v34, %v1315_v27  ;;  %v4902_v58 = vor.u32 %v1550_v33, %v1549_v30  ;;  %v4904_v61 = vor.u32 %v1553_v44, %v1552_v15  ;;  %v4906_v2 = vor.u32 %v1556_v42, %v1555_v48 }
 0x11b   :  { %v1560_v52 = vor.u32 %v1559_v53, %v1558_v50  ;;  %v1561_v49 = vshll.u32 %v7228_v11, %v1546_v10  ;;  %v1562_v45 = vshrl.u32 %v7226_v14, %v4884_v9  ;;  %v725_v12 = vsel %vm604_vm10, %v724_v19, %v723_v3  ;;  %v4962_v53 = vpop.f32.mrf.mxu3 }
 0x11c   :  { %v437_v43 = vadd.f32 %v4841_v0, %v4807_v60  ;;  %v1321_v21 = vadd.s32 536870912, %v1320_v55  ;;  %v4917_v22 = vshll.u32 %v1540_v23, 8  ;;  %v1032_v4 = vcvt.s32.f32 %v1025_v31  ;;  %v472_v0 = vpop.f32.mrf.mxu0 }
 0x11d   :  { %v1563_v26 = vor.u32 %v1562_v45, %v1561_v49  ;;  %vm1564_vm12 = vcmp.lt.s32.totalorder %v4886_v20, 1  ;;  %vm1567_vm13 = vcmp.lt.s32.totalorder %v4886_v20, 4  ;;  %vm1566_vm14 = vcmp.lt.s32.totalorder %v4886_v20, 3 }
 0x11e   :  { %v4921_v13 = vshrl.u32 %v1321_v21, 30  ;;  %v1572_v3 = vsel %vm1564_vm12, %v4902_v58, %v4904_v61  ;;  %v1573_v60 = vsel %vm1567_vm13, %v1560_v52, 920167782  ;;  %v1033_v24 = vmul.f32 %v1032_v4, %v1030_v16 }
 0x11f   :  { %vm1565_vm15 = vcmp.lt.s32.totalorder %v4886_v20, 2  ;;  %v1574_v41 = vsel %vm1566_vm14, %v4906_v2, %v1573_v60  ;;  %v1576_v10 = vsel %vm1564_vm12, %v4904_v61, %v4906_v2  ;;  %vm4940_vm0 = vcmp.le.f32.partialorder %v602_v39, 0.7853982 }
 0x120   :  { %v1323_v37 = vshll.u32 %v4921_v13, 30  ;;  %v1575_v29 = vsel %vm1565_vm15, %v1572_v3, %v1574_v41  ;;  %v1577_v23 = vsel %vm1567_vm13, %v1563_v26, 1326507024  ;;  %v4952_v47 = vsel %vm4940_vm0, %v4636_v38, %v725_v12  ;;  %v553_v12 = vpop.f32.mrf.mxu2 }
 0x121   :  { %v1578_v27 = vsel %vm1566_vm14, %v1560_v52, %v1577_v23  ;;  %v1581_v39 = vand.u32 65535, %v4917_v22  ;;  %v473_v31 = vadd.f32 %v472_v0, %v437_v43  ;;  %v1605_v15 = vand.u32 65535, %v1575_v29 }
 0x122   :  { %v4957_v30 = vsub.s32 %v1320_v55, %v1323_v37  ;;  %v1579_v33 = vsel %vm1565_vm15, %v1576_v10, %v1578_v27  ;;  %v1606_v44 = vshrl.u32 %v1575_v29, 16  ;;  %v1034_v42 = vxor.u32 2147483648, %v1033_v24 }
 0x123   :  { %v1582_v34 = vshrl.u32 %v4917_v22, 16  ;;  %v1583_v48 = vand.u32 65535, %v1579_v33  ;;  %v1584_v50 = vshrl.u32 %v1579_v33, 16  ;;  %v512_v52 = vadd.f32 %v511_v32, %v473_v31 }
 0x124   :  { %vm1325_vm1 = vcmp.lt.s32.totalorder %v4957_v30, 0  ;;  %v1326_v16 = vsub.s32 0, %v4957_v30  ;;  %v726_v55 = vsub.s32 4, %v4735_v17  ;;  %vm914_vm3 = vcmp.lt.s32.totalorder %v4643_v51, 0 }
 0x125   :  { %v1586_v49 = vmul.u32 %v1584_v50, %v1581_v39  ;;  %v1587_v45 = vmul.u32 %v1583_v48, %v1582_v34  ;;  %v4970_v43 = vmul.f32 %v4952_v47, %v4952_v47  ;;  %vm4974_vm4 = vcmp.le.f32.partialorder %v912_v54, 0.7853982 }
 0x126   :  { %v1327_v4 = vsel %vm1325_vm1, %v1326_v16, %v4957_v30  ;;  %v1608_v26 = vmul.u32 %v1606_v44, %v1581_v39  ;;  %v1609_v3 = vmul.u32 %v1605_v15, %v1582_v34  ;;  %v1035_v60 = vsel %vm914_vm3, %v1034_v42, %v1033_v24  ;;  %v587_v42 = vpop.f32.mrf.mxu3 }
 0x127   :  { %v1328_v0 = vclz %v1327_v4  ;;  %v1585_v41 = vmul.u32 %v1583_v48, %v1581_v39  ;;  %v1589_v10 = vshll.u32 %v1586_v49, 16  ;;  %v1588_v37 = vmul.u32 %v1584_v50, %v1582_v34 }
 0x128   :  { %v1607_v29 = vmul.u32 %v1605_v15, %v1581_v39  ;;  %v1611_v23 = vshll.u32 %v1608_v26, 16  ;;  %v554_v27 = vadd.f32 %v553_v12, %v512_v52  ;;  %v1591_v32 = vshll.u32 %v1587_v45, 16 }
 0x129   :  { %v4404_v31 = vadd.s32 4294967294, %v1328_v0  ;;  %vm1593_vm5 = vc.u32 %v1585_v41, %v1589_v10  ;;  %v1595_v54 = vadd.s32 %v1589_v10, %v1585_v41  ;;  %v1610_v57 = vmul.u32 %v1606_v44, %v1582_v34 }
 0x12a   :  { %v1594_v33 = vsel %vm1593_vm5, 1, %v7237_v36  ;;  %v1613_v16 = vshll.u32 %v1609_v3, 16  ;;  %vm1615_vm6 = vc.u32 %v1607_v29, %v1611_v23  ;;  %v1617_v15 = vadd.s32 %v1611_v23, %v1607_v29 }
 0x12b   :  { %vm4405_vm7 = vcmp.lt.s32.totalorder %v4404_v31, 0  ;;  %v1596_v59 = vadd.s32 %v1594_v33, %v1588_v37  ;;  %vm1597_vm8 = vc.u32 %v1595_v54, %v1591_v32  ;;  %v1616_v24 = vsel %vm1615_vm6, 1, %v7237_v36 }
 0x12c   :  { %v1331_v48 = vsel %vm4405_vm7, 0, %v4404_v31  ;;  %v1598_v39 = vsel %vm1597_vm8, 1, %v7237_v36  ;;  %v1618_v50 = vadd.s32 %v1616_v24, %v1610_v57  ;;  %v738_v52 = vmul.f32 -0.00019511016, %v4970_v43 }
 0x12d   :  { %v1336_v12 = vsub.s32 4294967266, %v1331_v48  ;;  %v1590_v4 = vshrl.u32 %v1586_v49, 16  ;;  %v1600_v0 = vadd.s32 %v1598_v39, %v1596_v59  ;;  %v1548_v44 = vshrl.u32 %v7239_v63, %v4884_v9 }
 0x12e   :  { %v1569_v34 = vsel %vm1567_vm13, %v4906_v2, 2102212464  ;;  %vm1619_vm9 = vc.u32 %v1617_v15, %v1613_v16  ;;  %v4990_v41 = vadd.f32 %v587_v42, %v554_v27  ;;  %v4995_v10 = vsel %vm4974_vm4, %v4643_v51, %v1035_v60 }
 0x12f   :  { %v1592_v57 = vshrl.u32 %v1587_v45, 16  ;;  %v1601_v37 = vadd.s32 %v1600_v0, %v1590_v4  ;;  %v1620_v49 = vsel %vm1619_vm9, 1, %v7237_v36  ;;  %v1568_v59 = vsel %vm1564_vm12, %v1548_v44, %v4902_v58  ;;  %v477_v0 = vpop.f32.mrf.mxu0 }
 0x130   :  { %v1612_v9 = vshrl.u32 %v1608_v26, 16  ;;  %v1622_v29 = vadd.s32 %v1620_v49, %v1618_v50  ;;  %v760_v2 = vand.u32 2139095040, %v4990_v41  ;;  %v1332_v23 = vsub.s32 32, %v1331_v48  ;;  %v517_v49 = vpop.f32.mrf.mxu1 }
 0x131   :  { %v1337_v27 = vadd.s32 127, %v1336_v12  ;;  %v1570_v31 = vsel %vm1566_vm14, %v4904_v61, %v1569_v34  ;;  %v5005_v60 = vadd.s32 %v1601_v37, %v1592_v57  ;;  %v727_v45 = vsel %vm604_vm10, %v726_v55, %v4735_v17 }
 0x132   :  { %v1614_v32 = vshrl.u32 %v1609_v3, 16  ;;  %v1623_v54 = vadd.s32 %v1622_v29, %v1612_v9  ;;  %v761_v33 = vshrl.u32 %v760_v2, 23  ;;  %v739_v58 = vadd.f32 0.008332121, %v738_v52 }
 0x133   :  { %v1036_v26 = vsub.s32 4, %v4788_v46  ;;  %v1316_v24 = vadd.s32 %v4877_v62, %v4874_v25  ;;  %v5013_v42 = vadd.s32 %v1617_v15, %v1613_v16  ;;  %v5017_v61 = vmul.f32 %v4995_v10, %v4995_v10 }
 0x134   :  { %v1571_v39 = vsel %vm1565_vm15, %v1568_v59, %v1570_v31  ;;  %v1624_v50 = vadd.s32 %v1623_v54, %v1614_v32  ;;  %v4394_v17 = vadd.s32 4294967169, %v761_v33  ;;  %v1338_v3 = vshll.u32 %v1337_v27, 23  ;;  %v557_v33 = vpop.f32.mrf.mxu2 }
 0x135   :  { %v1334_v55 = vshrl.u32 %v1316_v24, %v1332_v23  ;;  %vm1627_vm10 = vc.u32 %v5005_v60, %v5013_v42  ;;  %v441_v52 = vadd.f32 %v4860_v56, %v4845_v7  ;;  %v7225_v62 = vand.u32 2147483647, %v4990_v41 }
 0x136   :  { %v1628_v25 = vadd.s32 1, %v1624_v50  ;;  %v767_v16 = vadd.s32 1, %v4394_v17  ;;  %v729_v15 = vsel %vm4940_vm0, 0, %v727_v45  ;;  %v5031_v20 = vsel %vm914_vm3, %v1036_v26, %v4788_v46 }
 0x137   :  { %v1333_v12 = vshll.u32 %v4957_v30, %v1331_v48  ;;  %v1625_v4 = vmul.u32 %v4917_v22, %v1571_v39  ;;  %v740_v44 = vmul.f32 %v739_v58, %v4970_v43  ;;  %v1048_v7 = vmul.f32 -0.00019511016, %v5017_v61 }
 0x138   :  { %v1629_v56 = vsel %vm1627_vm10, %v1628_v25, %v1624_v50  ;;  %vm768_vm11 = vcmp.gt.s32.totalorder %v767_v16, 0  ;;  %v1339_v57 = vor.u32 4788187, %v1338_v3  ;;  %v478_v59 = vadd.f32 %v477_v0, %v441_v52  ;;  %v591_v0 = vpop.f32.mrf.mxu3 }
 0x139   :  { %v1335_v34 = vor.u32 %v1334_v55, %v1333_v12  ;;  %v1630_v19 = vadd.s32 %v1629_v56, %v1625_v4  ;;  %v769_v37 = vsel %vm768_vm11, %v767_v16, 0  ;;  %v764_v46 = vand.u32 8388607, %v7225_v62 }
 0x13a   :  { %v771_v9 = vand.u32 31, %v769_v37  ;;  %v5039_v30 = vadd.s32 3, %v729_v15  ;;  %v5043_v22 = vadd.f32 %v4896_v40, %v4868_v18  ;;  %v741_v29 = vadd.f32 -0.16666654, %v740_v44 }
 0x13b   :  { %v1631_v48 = vadd.s32 536870912, %v1630_v19  ;;  %v518_v27 = vadd.f32 %v517_v49, %v478_v59  ;;  %v1049_v31 = vadd.f32 0.008332121, %v1048_v7  ;;  %v1340_v45 = vand.u32 2147483647, %v1339_v57 }
 0x13c   :  { %7283 = vst [vmem:[#allocation6_spill] sm:$0xff] %v5039_v30  ;;  %v5048_v23 = vsub.s32 32, %v771_v9  ;;  %v1342_v32 = vcvt.s32.f32 %v1335_v34  ;;  %v765_v58 = vor.u32 8388608, %v764_v46  ;;  %v774_v39 = vshll.u32 %v7239_v63, %v771_v9 }
 0x13d   :  { %v5050_v54 = vshrl.u32 %v1631_v48, 30  ;;  %v777_v50 = vshll.u32 %v7235_v1, %v771_v9  ;;  %vm1224_vm12 = vcmp.lt.s32.totalorder %v4737_v28, 0  ;;  %v5064_v55 = vshrl.u32 %v769_v37, 5 }
 0x13e   :  { %v775_v18 = vshrl.u32 %v7235_v1, %v5048_v23  ;;  %v778_v40 = vshrl.u32 %v7233_v5, %v5048_v23  ;;  %v781_v26 = vshrl.u32 %v7231_v8, %v5048_v23  ;;  %v784_v17 = vshrl.u32 %v7228_v11, %v5048_v23 }
 0x13f   :  { %v1633_v24 = vshll.u32 %v5050_v54, 30  ;;  %v780_v3 = vshll.u32 %v7233_v5, %v771_v9  ;;  %v783_v52 = vshll.u32 %v7231_v8, %v771_v9  ;;  %v558_v25 = vadd.f32 %v557_v33, %v518_v27 }
 0x140   :  { %v1343_v16 = vmul.f32 %v1342_v32, %v1340_v45  ;;  %v776_v12 = vor.u32 %v775_v18, %v774_v39  ;;  %v5070_v4 = vor.u32 %v778_v40, %v777_v50  ;;  %v786_v56 = vshll.u32 %v7228_v11, %v771_v9 }
 0x141   :  { %v5068_v15 = vsub.s32 %v1630_v19, %v1633_v24  ;;  %v782_v44 = vor.u32 %v781_v26, %v780_v3  ;;  %v785_v7 = vor.u32 %v784_v17, %v783_v52  ;;  %v787_v34 = vshrl.u32 %v7226_v14, %v5048_v23 }
 0x142   :  { %v5076_v57 = vmul.f32 %v741_v29, %v4970_v43  ;;  %v1050_v37 = vmul.f32 %v1049_v31, %v5017_v61  ;;  %v7284_v49 = vand.u32 2147483647, %v4737_v28  ;;  %vm789_vm15 = vcmp.lt.s32.totalorder %v5064_v55, 1 }
 0x143   :  { %vm1635_vm14 = vcmp.lt.s32.totalorder %v5068_v15, 0  ;;  %v1636_v59 = vsub.s32 0, %v5068_v15  ;;  %v788_v46 = vor.u32 %v787_v34, %v786_v56  ;;  %v5088_v9 = vshll.u32 %v765_v58, 8 }
 0x144   :  { %vm5081_vm13 = vcmp.le.f32.partialorder %v7284_v49, 0.7853982  ;;  %v5090_v48 = vadd.f32 %v591_v0, %v558_v25  ;;  %v1344_v29 = vxor.u32 2147483648, %v1343_v16  ;;  %vm792_vm0 = vcmp.lt.s32.totalorder %v5064_v55, 4 }
 0x145   :  { %v1637_v27 = vsel %vm1635_vm14, %v1636_v59, %v5068_v15  ;;  %v797_v31 = vsel %vm789_vm15, %v776_v12, %v5070_v4  ;;  %vm791_vm1 = vcmp.lt.s32.totalorder %v5064_v55, 3  ;;  %v798_v32 = vsel %vm792_vm0, %v785_v7, 920167782 }
 0x146   :  { %v1638_v45 = vclz %v1637_v27  ;;  %v801_v33 = vsel %vm789_vm15, %v5070_v4, %v782_v44  ;;  %v5103_v58 = vadd.f32 -0.16666654, %v1050_v37  ;;  %vm790_vm3 = vcmp.lt.s32.totalorder %v5064_v55, 2 }
 0x147   :  { %v799_v18 = vsel %vm791_vm1, %v782_v44, %v798_v32  ;;  %v802_v40 = vsel %vm792_vm0, %v788_v46, 1326507024  ;;  %v806_v50 = vand.u32 65535, %v5088_v9  ;;  %v1345_v17 = vsel %vm1224_vm12, %v1344_v29, %v1343_v16 }
 0x148   :  { %v4410_v26 = vadd.s32 4294967294, %v1638_v45  ;;  %v800_v24 = vsel %vm790_vm3, %v797_v31, %v799_v18  ;;  %v803_v39 = vsel %vm791_vm1, %v785_v7, %v802_v40  ;;  %v1070_v25 = vand.u32 2139095040, %v5090_v48 }
 0x149   :  { %v804_v3 = vsel %vm790_vm3, %v801_v33, %v803_v39  ;;  %v831_v52 = vshrl.u32 %v800_v24, 16  ;;  %v830_v34 = vand.u32 65535, %v800_v24  ;;  %v1626_v37 = vadd.s32 %v5013_v42, %v5005_v60 }
 0x14a   :  { %vm4411_vm5 = vcmp.lt.s32.totalorder %v4410_v26, 0  ;;  %v808_v0 = vand.u32 65535, %v804_v3  ;;  %v809_v56 = vshrl.u32 %v804_v3, 16  ;;  %v773_v7 = vshrl.u32 %v7239_v63, %v5048_v23 }
 0x14b   :  { %v1641_v49 = vsel %vm4411_vm5, 0, %v4410_v26  ;;  %v807_v59 = vshrl.u32 %v5088_v9, 16  ;;  %v5128_v16 = vsel %vm5081_vm13, %v4737_v28, %v1345_v17  ;;  %v833_v27 = vmul.u32 %v831_v52, %v806_v50 }
 0x14c   :  { %v1642_v46 = vsub.s32 32, %v1641_v49  ;;  %v1646_v29 = vsub.s32 4294967266, %v1641_v49  ;;  %v793_v31 = vsel %vm789_vm15, %v773_v7, %v776_v12  ;;  %v794_v60 = vsel %vm792_vm0, %v782_v44, 2102212464 }
 0x14d   :  { %v811_v42 = vmul.u32 %v809_v56, %v806_v50  ;;  %v812_v45 = vmul.u32 %v808_v0, %v807_v59  ;;  %v834_v33 = vmul.u32 %v830_v34, %v807_v59  ;;  %v1071_v18 = vshrl.u32 %v1070_v25, 23 }
 0x14e   :  { %v1644_v32 = vshrl.u32 %v1626_v37, %v1642_v46  ;;  %v1647_v23 = vadd.s32 127, %v1646_v29  ;;  %v1643_v40 = vshll.u32 %v5068_v15, %v1641_v49  ;;  %v810_v26 = vmul.u32 %v808_v0, %v806_v50 }
 0x14f   :  { %v814_v24 = vshll.u32 %v811_v42, 16  ;;  %v832_v39 = vmul.u32 %v830_v34, %v806_v50  ;;  %v813_v3 = vmul.u32 %v809_v56, %v807_v59  ;;  %v835_v62 = vmul.u32 %v831_v52, %v807_v59 }
 0x150   :  { %v1648_v17 = vshll.u32 %v1647_v23, 23  ;;  %v836_v2 = vshll.u32 %v833_v27, 16  ;;  %v1645_v14 = vor.u32 %v1644_v32, %v1643_v40  ;;  %v816_v12 = vshll.u32 %v812_v45, 16 }
 0x151   :  { %vm818_vm6 = vc.u32 %v810_v26, %v814_v24  ;;  %v820_v7 = vadd.s32 %v814_v24, %v810_v26  ;;  %v838_v37 = vshll.u32 %v834_v33, 16  ;;  %v795_v50 = vsel %vm791_vm1, %v5070_v4, %v794_v60 }
 0x152   :  { %v1649_v44 = vor.u32 4788187, %v1648_v17  ;;  %v819_v11 = vsel %vm818_vm6, 1, %v7237_v36  ;;  %vm840_vm7 = vc.u32 %v832_v39, %v836_v2  ;;  %v842_v25 = vadd.s32 %v836_v2, %v832_v39 }
 0x153   :  { %v821_v46 = vadd.s32 %v819_v11, %v813_v3  ;;  %vm822_vm8 = vc.u32 %v820_v7, %v816_v12  ;;  %v841_v15 = vsel %vm840_vm7, 1, %v7237_v36  ;;  %v4400_v56 = vadd.s32 4294967169, %v1071_v18 }
 0x154   :  { %v823_v52 = vsel %vm822_vm8, 1, %v7237_v36  ;;  %v843_v0 = vadd.s32 %v841_v15, %v835_v62  ;;  %v1650_v34 = vand.u32 2147483647, %v1649_v44  ;;  %v815_v49 = vshrl.u32 %v811_v42, 16 }
 0x155   :  { %v825_v59 = vadd.s32 %v823_v52, %v821_v46  ;;  %vm844_vm9 = vc.u32 %v842_v25, %v838_v37  ;;  %v817_v29 = vshrl.u32 %v812_v45, 16  ;;  %v7230_v11 = vand.u32 2147483647, %v5090_v48 }
 0x156   :  { %v845_v32 = vsel %vm844_vm9, 1, %v7237_v36  ;;  %v1077_v23 = vadd.s32 1, %v4400_v56  ;;  %v1652_v40 = vcvt.s32.f32 %v1645_v14  ;;  %v837_v26 = vshrl.u32 %v833_v27, 16 }
 0x157   :  { %v826_v2 = vadd.s32 %v825_v59, %v815_v49  ;;  %v847_v24 = vadd.s32 %v845_v32, %v843_v0  ;;  %v5145_v4 = vmul.f32 %v5128_v16, %v5128_v16  ;;  %v796_v62 = vsel %vm790_vm3, %v793_v31, %v795_v50 }
 0x158   :  { %v839_v60 = vshrl.u32 %v834_v33, 16  ;;  %vm1078_vm10 = vcmp.gt.s32.totalorder %v1077_v23, 0  ;;  %vm1534_vm11 = vcmp.lt.s32.totalorder %v4820_v35, 0  ;;  %v1653_v42 = vmul.f32 %v1652_v40, %v1650_v34 }
 0x159   :  { %v5150_v45 = vadd.s32 %v826_v2, %v817_v29  ;;  %v848_v18 = vadd.s32 %v847_v24, %v837_v26  ;;  %v1079_v39 = vsel %vm1078_vm10, %v1077_v23, 0  ;;  %v5153_v14 = vadd.f32 1.0, %v5076_v57  ;;  %v482_v23 = vpop.f32.mrf.mxu0 }
 0x15a   :  { %v5157_v27 = vadd.f32 %v4962_v53, %v4911_v6  ;;  %v5159_v17 = vadd.s32 %v842_v25, %v838_v37  ;;  %v1081_v55 = vand.u32 31, %v1079_v39  ;;  %v1052_v31 = vmul.f32 %v5103_v58, %v5017_v61 }
 0x15b   :  { %v1346_v33 = vsub.s32 4, %v4921_v13  ;;  %v849_v3 = vadd.s32 %v848_v18, %v839_v60  ;;  %v1074_v12 = vand.u32 8388607, %v7230_v11  ;;  %v1358_v7 = vmul.f32 -0.00019511016, %v5145_v4 }
 0x15c   :  { %v7287_v57 = vand.u32 2147483647, %v4820_v35  ;;  %v850_v6 = vmul.u32 %v5088_v9, %v796_v62  ;;  %vm852_vm15 = vc.u32 %v5150_v45, %v5159_v17  ;;  %v5176_v53 = vsub.s32 32, %v1081_v55 }
 0x15d   :  { %v1654_v58 = vxor.u32 2147483648, %v1653_v42  ;;  %v853_v37 = vadd.s32 1, %v849_v3  ;;  %v1084_v46 = vshll.u32 %v7239_v63, %v1081_v55  ;;  %v1087_v15 = vshll.u32 %v7235_v1, %v1081_v55 }
 0x15e   :  { %vm5169_vm14 = vcmp.le.f32.partialorder %v7287_v57, 0.7853982  ;;  %v1085_v25 = vshrl.u32 %v7235_v1, %v5176_v53  ;;  %v1088_v50 = vshrl.u32 %v7233_v5, %v5176_v53  ;;  %v1093_v52 = vshll.u32 %v7231_v8, %v1081_v55 }
 0x15f   :  { %v7290_v9 = vmov 920167782   ;;  %v854_v56 = vsel %vm852_vm15, %v853_v37, %v849_v3  ;;  %v1091_v34 = vshrl.u32 %v7231_v8, %v5176_v53  ;;  %v7291_v59 = vmov 1326507024  }
 0x160   :  { %v1096_v0 = vshll.u32 %v7290_v9, %v1081_v55  ;;  %v1094_v49 = vshrl.u32 %v7290_v9, %v5176_v53  ;;  %v1097_v29 = vshrl.u32 %v7291_v59, %v5176_v53  ;;  %v855_v32 = vadd.s32 %v854_v56, %v850_v6 }
 0x161   :  { %v1075_v40 = vor.u32 8388608, %v1074_v12  ;;  %v5192_v2 = vshrl.u32 %v1079_v39, 5  ;;  %v1090_v26 = vshll.u32 %v7233_v5, %v1081_v55  ;;  %v5195_v24 = vor.u32 %v1085_v25, %v1084_v46 }
 0x162   :  { %v5197_v62 = vor.u32 %v1088_v50, %v1087_v15  ;;  %v1095_v60 = vor.u32 %v1094_v49, %v1093_v52  ;;  %v1098_v18 = vor.u32 %v1097_v29, %v1096_v0  ;;  %v5202_v3 = vsel %vm1224_vm12, %v1346_v33, %v4921_v13  ;;  %v523_v15 = vpop.f32.mrf.mxu1 }
 0x163   :  { %v1655_v57 = vsel %vm1534_vm11, %v1654_v58, %v1653_v42  ;;  %v856_v6 = vadd.s32 536870912, %v855_v32  ;;  %v1092_v12 = vor.u32 %v1091_v34, %v1090_v26  ;;  %v5206_v39 = vadd.f32 1.0, %v1052_v31  ;;  %v561_v34 = vpop.f32.mrf.mxu2 }
 0x164   :  { %v1359_v37 = vadd.f32 0.008332121, %v1358_v7  ;;  %v1656_v55 = vsub.s32 4, %v5050_v54  ;;  %v483_v46 = vadd.f32 %v482_v23, %v5043_v22  ;;  %vm1099_vm0 = vcmp.lt.s32.totalorder %v5192_v2, 1 }
 0x165   :  { %v5210_v25 = vshrl.u32 %v856_v6, 30  ;;  %vm1102_vm12 = vcmp.lt.s32.totalorder %v5192_v2, 4  ;;  %v5214_v13 = vshll.u32 %v1075_v40, 8  ;;  %v5219_v42 = vsel %vm5169_vm14, %v4820_v35, %v1655_v57 }
 0x166   :  { %v1107_v31 = vsel %vm1099_vm0, %v5195_v24, %v5197_v62  ;;  %v1108_v22 = vsel %vm1102_vm12, %v1095_v60, 920167782  ;;  %v1112_v33 = vsel %vm1102_vm12, %v1098_v18, 1326507024  ;;  %vm1101_vm1 = vcmp.lt.s32.totalorder %v5192_v2, 3 }
 0x167   :  { %v858_v7 = vshll.u32 %v5210_v25, 30  ;;  %v1111_v58 = vsel %vm1099_vm0, %v5197_v62, %v1092_v12  ;;  %v524_v50 = vadd.f32 %v523_v15, %v483_v46  ;;  %v1360_v52 = vmul.f32 %v1359_v37, %v5145_v4 }
 0x168   :  { %vm1100_vm3 = vcmp.lt.s32.totalorder %v5192_v2, 2  ;;  %v1109_v0 = vsel %vm1101_vm1, %v1092_v12, %v1108_v22  ;;  %v1113_v56 = vsel %vm1101_vm1, %v1095_v60, %v1112_v33  ;;  %v5243_v49 = vsel %vm1534_vm11, %v1656_v55, %v5050_v54  ;;  %v595_v22 = vpop.f32.mrf.mxu3 }
 0x169   :  { %v5247_v29 = vmul.f32 %v5219_v42, %v5219_v42  ;;  %v5249_v23 = vsub.s32 %v855_v32, %v858_v7  ;;  %v1110_v40 = vsel %vm1100_vm3, %v1107_v31, %v1109_v0  ;;  %v1114_v26 = vsel %vm1100_vm3, %v1111_v58, %v1113_v56 }
 0x16a   :  { %v1116_v60 = vand.u32 65535, %v5214_v13  ;;  %v1140_v18 = vand.u32 65535, %v1110_v40  ;;  %v1141_v57 = vshrl.u32 %v1110_v40, 16  ;;  %v1117_v6 = vshrl.u32 %v5214_v13, 16 }
 0x16b   :  { %vm860_vm5 = vcmp.lt.s32.totalorder %v5249_v23, 0  ;;  %v861_v54 = vsub.s32 0, %v5249_v23  ;;  %v562_v37 = vadd.f32 %v561_v34, %v524_v50  ;;  %v1361_v55 = vadd.f32 -0.16666654, %v1360_v52 }
 0x16c   :  { %v1118_v32 = vand.u32 65535, %v1114_v26  ;;  %v1119_v46 = vshrl.u32 %v1114_v26, 16  ;;  %v1143_v15 = vmul.u32 %v1141_v57, %v1116_v60  ;;  %v1668_v31 = vmul.f32 -0.00019511016, %v5247_v29 }
 0x16d   :  { %v862_v33 = vsel %vm860_vm5, %v861_v54, %v5249_v23  ;;  %v1083_v7 = vshrl.u32 %v7239_v63, %v5176_v53  ;;  %v1144_v58 = vmul.u32 %v1140_v18, %v1117_v6  ;;  %v1104_v56 = vsel %vm1102_vm12, %v1092_v12, 2102212464 }
 0x16e   :  { %v863_v0 = vclz %v862_v33  ;;  %v1121_v40 = vmul.u32 %v1119_v46, %v1116_v60  ;;  %v1122_v11 = vmul.u32 %v1118_v32, %v1117_v6  ;;  %v1142_v50 = vmul.u32 %v1140_v18, %v1116_v60 }
 0x16f   :  { %v1145_v52 = vmul.u32 %v1141_v57, %v1117_v6  ;;  %v1146_v34 = vshll.u32 %v1143_v15, 16  ;;  %v5265_v26 = vadd.f32 %v595_v22, %v562_v37  ;;  %v1120_v5 = vmul.u32 %v1118_v32, %v1116_v60 }
 0x170   :  { %v4395_v8 = vadd.s32 4294967294, %v863_v0  ;;  %v1123_v1 = vmul.u32 %v1119_v46, %v1117_v6  ;;  %v1124_v36 = vshll.u32 %v1121_v40, 16  ;;  %v1126_v54 = vshll.u32 %v1122_v11, 16  ;;  %v599_v19 = vpop.f32.mrf.mxu3 }
 0x171   :  { %v1148_v30 = vshll.u32 %v1144_v58, 16  ;;  %vm1150_vm6 = vc.u32 %v1142_v50, %v1146_v34  ;;  %v1152_v53 = vadd.s32 %v1146_v34, %v1142_v50  ;;  %v7292_v63 = vmov 0   ;;  %v487_v34 = vpop.f32.mrf.mxu0 }
 0x172   :  { %vm4396_vm7 = vcmp.lt.s32.totalorder %v4395_v8, 0  ;;  %vm1128_vm8 = vc.u32 %v1120_v5, %v1124_v36  ;;  %v1130_v33 = vadd.s32 %v1124_v36, %v1120_v5  ;;  %v1151_v12 = vsel %vm1150_vm6, 1, %v7292_v63 }
 0x173   :  { %v866_v38 = vsel %vm4396_vm7, 0, %v4395_v8  ;;  %v1129_v18 = vsel %vm1128_vm8, 1, %v7292_v63  ;;  %v1153_v57 = vadd.s32 %v1151_v12, %v1145_v52  ;;  %vm1154_vm9 = vc.u32 %v1152_v53, %v1148_v30 }
 0x174   :  { %v851_v37 = vadd.s32 %v5159_v17, %v5150_v45  ;;  %v871_v60 = vsub.s32 4294967266, %v866_v38  ;;  %v1103_v6 = vsel %vm1099_vm0, %v1083_v7, %v5195_v24  ;;  %v1131_v32 = vadd.s32 %v1129_v18, %v1123_v1 }
 0x175   :  { %v867_v46 = vsub.s32 32, %v866_v38  ;;  %v1105_v36 = vsel %vm1101_vm1, %v5197_v62, %v1104_v56  ;;  %vm1132_vm10 = vc.u32 %v1130_v33, %v1126_v54  ;;  %v1155_v5 = vsel %vm1154_vm9, 1, %v7292_v63 }
 0x176   :  { %v872_v8 = vadd.s32 127, %v871_v60  ;;  %v1133_v22 = vsel %vm1132_vm10, 1, %v7292_v63  ;;  %v1147_v0 = vshrl.u32 %v1143_v15, 16  ;;  %v1157_v50 = vadd.s32 %v1155_v5, %v1153_v57  ;;  %v529_v60 = vpop.f32.mrf.mxu1 }
 0x177   :  { %v1669_v45 = vadd.f32 0.008332121, %v1668_v31  ;;  %v1125_v17 = vshrl.u32 %v1121_v40, 16  ;;  %v1135_v52 = vadd.s32 %v1133_v22, %v1131_v32  ;;  %v1380_v24 = vand.u32 2139095040, %v5265_v26 }
 0x178   :  { %v873_v1 = vshll.u32 %v872_v8, 23  ;;  %v1106_v7 = vsel %vm1100_vm3, %v1103_v6, %v1105_v36  ;;  %v1149_v12 = vshrl.u32 %v1144_v58, 16  ;;  %v1158_v62 = vadd.s32 %v1157_v50, %v1147_v0 }
 0x179   :  { %v869_v56 = vshrl.u32 %v851_v37, %v867_v46  ;;  %v1127_v54 = vshrl.u32 %v1122_v11, 16  ;;  %v1136_v33 = vadd.s32 %v1135_v52, %v1125_v17  ;;  %v1381_v18 = vshrl.u32 %v1380_v24, 23 }
 0x17a   :  { %v1362_v15 = vmul.f32 %v1361_v55, %v5145_v4  ;;  %v868_v31 = vshll.u32 %v5249_v23, %v866_v38  ;;  %v1159_v40 = vadd.s32 %v1158_v62, %v1149_v12  ;;  %v488_v57 = vadd.f32 %v487_v34, %v5157_v27  ;;  %v565_v27 = vpop.f32.mrf.mxu2 }
 0x17b   :  { %v874_v32 = vor.u32 4788187, %v873_v1  ;;  %v5285_v5 = vadd.s32 %v1136_v33, %v1127_v54  ;;  %v5287_v8 = vadd.s32 %v1152_v53, %v1148_v30  ;;  %v4406_v2 = vadd.s32 4294967169, %v1381_v18 }
 0x17c   :  { %v1670_v58 = vmul.f32 %v1669_v45, %v5247_v29  ;;  %v1160_v11 = vmul.u32 %v5214_v13, %v1106_v7  ;;  %v1163_v37 = vadd.s32 1, %v1159_v40  ;;  %v530_v6 = vadd.f32 %v529_v60, %v488_v57 }
 0x17d   :  { %v870_v46 = vor.u32 %v869_v56, %v868_v31  ;;  %vm1162_vm11 = vc.u32 %v5285_v5, %v5287_v8  ;;  %v7244_v38 = vand.u32 2147483647, %v5265_v26  ;;  %v1387_v23 = vadd.s32 1, %v4406_v2 }
 0x17e   :  { %v5296_v55 = vmul.f32 %v5153_v14, %v4952_v47  ;;  %v5300_v30 = vmul.f32 %v5206_v39, %v4995_v10  ;;  %v1349_v13 = vsel %vm5081_vm13, 0, %v5202_v3  ;;  %v1164_v53 = vsel %vm1162_vm11, %v1163_v37, %v1159_v40 }
 0x17f   :  { %v1659_v36 = vsel %vm5169_vm14, 0, %v5243_v49  ;;  %v875_v22 = vand.u32 2147483647, %v874_v32  ;;  %v1165_v0 = vadd.s32 %v1164_v53, %v1160_v11  ;;  %vm1388_vm15 = vcmp.gt.s32.totalorder %v1387_v23, 0 }
 0x180   :  { %7293 = vst [vmem:[#allocation7_spill] sm:$0xff] %v5296_v55  ;;  %v1363_v50 = vadd.f32 1.0, %v1362_v15  ;;  %v1671_v45 = vadd.f32 -0.16666654, %v1670_v58  ;;  %v1389_v47 = vsel %vm1388_vm15, %v1387_v23, 0  ;;  %v566_v14 = vadd.f32 %v565_v27, %v530_v6 }
 0x181   :  { %v877_v17 = vcvt.s32.f32 %v870_v46  ;;  %v1166_v52 = vadd.s32 536870912, %v1165_v0  ;;  %v1384_v10 = vand.u32 8388607, %v7244_v38  ;;  %v1391_v39 = vand.u32 31, %v1389_v47 }
 0x182   :  { %v7294_v44 = vsel %vm4974_vm4, 0, %v5031_v20  ;;  %v5318_v24 = vadd.s32 3, %v1349_v13  ;;  %vm759_vm13 = vcmp.lt.s32.totalorder %v4990_v41, 0  ;;  %v5324_v62 = vmul.f32 %v1363_v50, %v5128_v16 }
 0x183   :  { %v5315_v49 = vadd.s32 3, %v7294_v44  ;;  %v878_v1 = vmul.f32 %v877_v17, %v875_v22  ;;  %v5321_v7 = vshrl.u32 %v1166_v52, 30  ;;  %v1392_v12 = vsub.s32 32, %v1391_v39 }
 0x184   :  { %v5327_v56 = vmul.f32 %v1671_v45, %v5247_v29  ;;  %v5329_v21 = vadd.s32 3, %v1659_v36  ;;  %v5331_v20 = vadd.f32 %v599_v19, %v566_v14  ;;  %v1385_v18 = vor.u32 8388608, %v1384_v10 }
 0x185   :  { %v1168_v33 = vshll.u32 %v5321_v7, 30  ;;  %v7296_v60 = vmov 2475754826   ;;  %v7297_v31 = vmov 683565275   ;;  %v1404_v58 = vshrl.u32 %v7290_v9, %v1392_v12 }
 0x186   :  { %7295 = vst [vmem:[#allocation8_spill] sm:$0xff] %v5331_v20  ;;  %v1395_v15 = vshrl.u32 %v7296_v60, %v1392_v12  ;;  %v1394_v40 = vshll.u32 %v7297_v31, %v1391_v39  ;;  %v7298_v57 = vmov 2131351028   ;;  %v7299_v16 = vmov 2102212464  }
 0x187   :  { %v1398_v32 = vshrl.u32 %v7298_v57, %v1392_v12  ;;  %v1401_v2 = vshrl.u32 %v7299_v16, %v1392_v12  ;;  %v7300_v11 = vand.u32 2147483647, %v4990_v41  ;;  %v879_v6 = vxor.u32 2147483648, %v878_v1 }
 0x188   :  { %v1169_v46 = vsub.s32 %v1165_v0, %v1168_v33  ;;  %v1397_v23 = vshll.u32 %v7296_v60, %v1391_v39  ;;  %v1403_v27 = vshll.u32 %v7299_v16, %v1391_v39  ;;  %v5348_v13 = vshrl.u32 %v1389_v47, 5 }
 0x189   :  { %vm5342_vm4 = vcmp.le.f32.partialorder %v7300_v11, 0.7853982  ;;  %v1396_v53 = vor.u32 %v1395_v15, %v1394_v40  ;;  %v1400_v36 = vshll.u32 %v7298_v57, %v1391_v39  ;;  %v1690_v22 = vand.u32 2139095040, %v5331_v20 }
 0x18a   :  { %vm1170_vm14 = vcmp.lt.s32.totalorder %v1169_v46, 0  ;;  %v1171_v50 = vsub.s32 0, %v1169_v46  ;;  %v5352_v45 = vor.u32 %v1398_v32, %v1397_v23  ;;  %v1405_v14 = vor.u32 %v1404_v58, %v1403_v27 }
 0x18b   :  { %v1402_v17 = vor.u32 %v1401_v2, %v1400_v36  ;;  %v1406_v52 = vshll.u32 %v7290_v9, %v1391_v39  ;;  %v1407_v0 = vshrl.u32 %v7291_v59, %v1392_v12  ;;  %v5356_v10 = vshll.u32 %v1385_v18, 8 }
 0x18c   :  { %v880_v47 = vsel %vm759_vm13, %v879_v6, %v878_v1  ;;  %v1161_v19 = vadd.s32 %v5287_v8, %v5285_v5  ;;  %v1172_v44 = vsel %vm1170_vm14, %v1171_v50, %v1169_v46  ;;  %v7243_v33 = vand.u32 2147483647, %v5331_v20 }
 0x18d   :  { %v1173_v15 = vclz %v1172_v44  ;;  %v1408_v40 = vor.u32 %v1407_v0, %v1406_v52  ;;  %vm1409_vm0 = vcmp.lt.s32.totalorder %v5348_v13, 1  ;;  %vm1412_vm12 = vcmp.lt.s32.totalorder %v5348_v13, 4 }
 0x18e   :  { %vm1411_vm1 = vcmp.lt.s32.totalorder %v5348_v13, 3  ;;  %v1417_v39 = vsel %vm1409_vm0, %v1396_v53, %v5352_v45  ;;  %v1418_v1 = vsel %vm1412_vm12, %v1405_v14, 920167782  ;;  %v1691_v18 = vshrl.u32 %v1690_v22, 23 }
 0x18f   :  { %v4401_v5 = vadd.s32 4294967294, %v1173_v15  ;;  %vm1410_vm3 = vcmp.lt.s32.totalorder %v5348_v13, 2  ;;  %v1419_v8 = vsel %vm1411_vm1, %v1402_v17, %v1418_v1  ;;  %v1421_v32 = vsel %vm1409_vm0, %v5352_v45, %v1402_v17 }
 0x190   :  { %v1420_v2 = vsel %vm1410_vm3, %v1417_v39, %v1419_v8  ;;  %v1422_v58 = vsel %vm1412_vm12, %v1408_v40, 1326507024  ;;  %v1426_v11 = vand.u32 65535, %v5356_v10  ;;  %v1427_v6 = vshrl.u32 %v5356_v10, 16 }
 0x191   :  { %v5386_v23 = vsel %vm5342_vm4, %v4990_v41, %v880_v47  ;;  %vm4402_vm5 = vcmp.lt.s32.totalorder %v4401_v5, 0  ;;  %v1423_v27 = vsel %vm1411_vm1, %v1405_v14, %v1422_v58  ;;  %v5392_v36 = vand.u32 8388607, %v7243_v33 }
 0x192   :  { %7303 = vst [vmem:[#allocation9_spill] sm:$0xff] %v5386_v23  ;;  %v1176_v22 = vsel %vm4402_vm5, 0, %v4401_v5  ;;  %v1424_v50 = vsel %vm1410_vm3, %v1421_v32, %v1423_v27  ;;  %v1450_v52 = vand.u32 65535, %v1420_v2  ;;  %v1451_v0 = vshrl.u32 %v1420_v2, 16 }
 0x193   :  { %v1177_v44 = vsub.s32 32, %v1176_v22  ;;  %v1181_v15 = vsub.s32 4294967266, %v1176_v22  ;;  %v1393_v40 = vshrl.u32 %v7297_v31, %v1392_v12  ;;  %v4412_v47 = vadd.s32 4294967169, %v1691_v18 }
 0x194   :  { %v5399_v39 = vmul.f32 %v5386_v23, %v5386_v23  ;;  %v1428_v14 = vand.u32 65535, %v1424_v50  ;;  %v1429_v1 = vshrl.u32 %v1424_v50, 16  ;;  %v1453_v8 = vmul.u32 %v1451_v0, %v1426_v11 }
 0x195   :  { %v1178_v58 = vshll.u32 %v1169_v46, %v1176_v22  ;;  %v1179_v33 = vshrl.u32 %v1161_v19, %v1177_v44  ;;  %v1182_v5 = vadd.s32 127, %v1181_v15  ;;  %v1413_v32 = vsel %vm1409_vm0, %v1393_v40, %v1396_v53 }
 0x196   :  { %v1414_v2 = vsel %vm1412_vm12, %v1402_v17, 2102212464  ;;  %v1431_v27 = vmul.u32 %v1429_v1, %v1426_v11  ;;  %v1432_v3 = vmul.u32 %v1428_v14, %v1427_v6  ;;  %v1454_v12 = vmul.u32 %v1450_v52, %v1427_v6 }
 0x197   :  { %v1180_v18 = vor.u32 %v1179_v33, %v1178_v58  ;;  %v1183_v34 = vshll.u32 %v1182_v5, 23  ;;  %v1456_v38 = vshll.u32 %v1453_v8, 16  ;;  %v1697_v54 = vadd.s32 1, %v4412_v47 }
 0x198   :  { %v1430_v23 = vmul.u32 %v1428_v14, %v1426_v11  ;;  %v1433_v20 = vmul.u32 %v1429_v1, %v1427_v6  ;;  %v1434_v50 = vshll.u32 %v1431_v27, 16  ;;  %v1452_v55 = vmul.u32 %v1450_v52, %v1426_v11 }
 0x199   :  { %v1184_v46 = vor.u32 4788187, %v1183_v34  ;;  %v1187_v19 = vcvt.s32.f32 %v1180_v18  ;;  %v1436_v22 = vshll.u32 %v1432_v3, 16  ;;  %v1455_v44 = vmul.u32 %v1451_v0, %v1427_v6 }
 0x19a   :  { %vm1438_vm6 = vc.u32 %v1430_v23, %v1434_v50  ;;  %v1440_v53 = vadd.s32 %v1434_v50, %v1430_v23  ;;  %v1458_v15 = vshll.u32 %v1454_v12, 16  ;;  %vm1460_vm7 = vc.u32 %v1452_v55, %v1456_v38 }
 0x19b   :  { %v1185_v17 = vand.u32 2147483647, %v1184_v46  ;;  %v1439_v40 = vsel %vm1438_vm6, 1, %v7292_v63  ;;  %v1461_v33 = vsel %vm1460_vm7, 1, %v7292_v63  ;;  %v1462_v58 = vadd.s32 %v1456_v38, %v1452_v55 }
 0x19c   :  { %vm1069_vm8 = vcmp.lt.s32.totalorder %v5090_v48, 0  ;;  %v1441_v47 = vadd.s32 %v1439_v40, %v1433_v20  ;;  %vm1442_vm9 = vc.u32 %v1440_v53, %v1436_v22  ;;  %v1463_v14 = vadd.s32 %v1461_v33, %v1455_v44 }
 0x19d   :  { %vm1698_vm10 = vcmp.gt.s32.totalorder %v1697_v54, 0  ;;  %v1188_v34 = vmul.f32 %v1187_v19, %v1185_v17  ;;  %v1415_v11 = vsel %vm1411_vm1, %v5352_v45, %v1414_v2  ;;  %v1443_v6 = vsel %vm1442_vm9, 1, %v7292_v63 }
 0x19e   :  { %vm1464_vm11 = vc.u32 %v1462_v58, %v1458_v15  ;;  %v1435_v23 = vshrl.u32 %v1431_v27, 16  ;;  %v1445_v52 = vadd.s32 %v1443_v6, %v1441_v47  ;;  %v1699_v1 = vsel %vm1698_vm10, %v1697_v54, 0 }
 0x19f   :  { %v1465_v0 = vsel %vm1464_vm11, 1, %v7292_v63  ;;  %v1673_v38 = vadd.f32 1.0, %v5327_v56  ;;  %v1457_v55 = vshrl.u32 %v1453_v8, 16  ;;  %v1701_v5 = vand.u32 31, %v1699_v1 }
 0x1a0   :  { %v1467_v20 = vadd.s32 %v1465_v0, %v1463_v14  ;;  %v7304_v18 = vsub.s32 4, %v5210_v25  ;;  %v7305_v45 = vand.u32 2147483647, %v5090_v48  ;;  %v1416_v54 = vsel %vm1410_vm3, %v1413_v32, %v1415_v11 }
 0x1a1   :  { %v1437_v56 = vshrl.u32 %v1432_v3, 16  ;;  %v1446_v8 = vadd.s32 %v1445_v52, %v1435_v23  ;;  %v1189_v27 = vxor.u32 2147483648, %v1188_v34  ;;  %v1459_v46 = vshrl.u32 %v1454_v12, 16 }
 0x1a2   :  { %v5419_v50 = vsel %vm759_vm13, %v7304_v18, %v5210_v25  ;;  %vm5423_vm15 = vcmp.le.f32.partialorder %v7305_v45, 0.7853982  ;;  %v1468_v19 = vadd.s32 %v1467_v20, %v1457_v55  ;;  %v1702_v22 = vsub.s32 32, %v1701_v5 }
 0x1a3   :  { %v893_v44 = vmul.f32 -0.00019511016, %v5399_v39  ;;  %v1447_v53 = vadd.s32 %v1446_v8, %v1437_v56  ;;  %v1466_v25 = vadd.s32 %v1462_v58, %v1458_v15  ;;  %v1695_v17 = vor.u32 8388608, %v5392_v36 }
 0x1a4   :  { %v1469_v40 = vadd.s32 %v1468_v19, %v1459_v46  ;;  %v1470_v33 = vmul.u32 %v5356_v10, %v1416_v54  ;;  %v1704_v47 = vshll.u32 %v7297_v31, %v1701_v5  ;;  %v1705_v13 = vshrl.u32 %v7296_v60, %v1702_v22 }
 0x1a5   :  { %vm1472_vm13 = vc.u32 %v1447_v53, %v1466_v25  ;;  %v1707_v3 = vshll.u32 %v7296_v60, %v1701_v5  ;;  %v1708_v32 = vshrl.u32 %v7298_v57, %v1702_v22  ;;  %v1711_v12 = vshrl.u32 %v7299_v16, %v1702_v22 }
 0x1a6   :  { %v1190_v14 = vsel %vm1069_vm8, %v1189_v27, %v1188_v34  ;;  %v1473_v15 = vadd.s32 1, %v1469_v40  ;;  %v5439_v58 = vshrl.u32 %v1699_v1, 5  ;;  %v1710_v36 = vshll.u32 %v7298_v57, %v1701_v5 }
 0x1a7   :  { %v1706_v10 = vor.u32 %v1705_v13, %v1704_v47  ;;  %v5442_v11 = vor.u32 %v1708_v32, %v1707_v3  ;;  %v1713_v6 = vshll.u32 %v7299_v16, %v1701_v5  ;;  %v1714_v23 = vshrl.u32 %v7290_v9, %v1702_v22 }
 0x1a8   :  { %v1474_v52 = vsel %vm1472_vm13, %v1473_v15, %v1469_v40  ;;  %v1712_v0 = vor.u32 %v1711_v12, %v1710_v36  ;;  %v1716_v55 = vshll.u32 %v7290_v9, %v1701_v5  ;;  %v1717_v20 = vshrl.u32 %v7291_v59, %v1702_v22 }
 0x1a9   :  { %v5449_v34 = vmul.f32 %v1673_v38, %v5219_v42  ;;  %v894_v1 = vadd.f32 0.008332121, %v893_v44  ;;  %v1475_v18 = vadd.s32 %v1474_v52, %v1470_v33  ;;  %v1715_v45 = vor.u32 %v1714_v23, %v1713_v6 }
 0x1aa   :  { %v5454_v54 = vsel %vm5423_vm15, %v5090_v48, %v1190_v14  ;;  %v1718_v56 = vor.u32 %v1717_v20, %v1716_v55  ;;  %vm1719_vm14 = vcmp.lt.s32.totalorder %v5439_v58, 1  ;;  %vm1722_vm0 = vcmp.lt.s32.totalorder %v5439_v58, 4 }
 0x1ab   :  { %v1476_v8 = vadd.s32 536870912, %v1475_v18  ;;  %vm1721_vm12 = vcmp.lt.s32.totalorder %v5439_v58, 3  ;;  %v1727_v42 = vsel %vm1719_vm14, %v1706_v10, %v5442_v11  ;;  %v1728_v38 = vsel %vm1722_vm0, %v1715_v45, 920167782 }
 0x1ac   :  { %vm1720_vm1 = vcmp.lt.s32.totalorder %v5439_v58, 2  ;;  %v1729_v5 = vsel %vm1721_vm12, %v1712_v0, %v1728_v38  ;;  %v1731_v27 = vsel %vm1719_vm14, %v5442_v11, %v1712_v0  ;;  %v5470_v46 = vshll.u32 %v1695_v17, 8 }
 0x1ad   :  { %v5473_v44 = vshrl.u32 %v1476_v8, 30  ;;  %v1730_v40 = vsel %vm1720_vm1, %v1727_v42, %v1729_v5  ;;  %v1732_v33 = vsel %vm1722_vm0, %v1718_v56, 1326507024  ;;  %v5484_v13 = vmul.f32 %v5454_v54, %v5454_v54 }
 0x1ae   :  { %v1733_v17 = vsel %vm1721_vm12, %v1715_v45, %v1732_v33  ;;  %v1761_v3 = vshrl.u32 %v1730_v40, 16  ;;  %v1760_v15 = vand.u32 65535, %v1730_v40  ;;  %v5493_v36 = vmul.f32 %v894_v1, %v5399_v39 }
 0x1af   :  { %v1478_v12 = vshll.u32 %v5473_v44, 30  ;;  %v1734_v14 = vsel %vm1720_vm1, %v1731_v27, %v1733_v17  ;;  %v1736_v6 = vand.u32 65535, %v5470_v46  ;;  %v1703_v20 = vshrl.u32 %v7297_v31, %v1702_v22 }
 0x1b0   :  { %v1738_v23 = vand.u32 65535, %v1734_v14  ;;  %v1739_v52 = vshrl.u32 %v1734_v14, 16  ;;  %v1737_v45 = vshrl.u32 %v5470_v46, 16  ;;  %v5499_v56 = vand.u32 3, %v5329_v21 }
 0x1b1   :  { %v1479_v55 = vsub.s32 %v1475_v18, %v1478_v12  ;;  %v1203_v8 = vmul.f32 -0.00019511016, %v5484_v13  ;;  %v1471_v42 = vadd.s32 %v1466_v25, %v1447_v53  ;;  %v1763_v5 = vmul.u32 %v1761_v3, %v1736_v6 }
 0x1b2   :  { %v1741_v38 = vmul.u32 %v1739_v52, %v1736_v6  ;;  %v1742_v27 = vmul.u32 %v1738_v23, %v1737_v45  ;;  %v1764_v40 = vmul.u32 %v1760_v15, %v1737_v45  ;;  %v1723_v33 = vsel %vm1719_vm14, %v1703_v20, %v1706_v10 }
 0x1b3   :  { %vm1480_vm3 = vcmp.lt.s32.totalorder %v1479_v55, 0  ;;  %v1481_v1 = vsub.s32 0, %v1479_v55  ;;  %v1724_v22 = vsel %vm1722_vm0, %v1712_v0, 2102212464  ;;  %v1740_v18 = vmul.u32 %v1738_v23, %v1736_v6 }
 0x1b4   :  { %v1744_v17 = vshll.u32 %v1741_v38, 16  ;;  %v1743_v21 = vmul.u32 %v1739_v52, %v1737_v45  ;;  %v1746_v14 = vshll.u32 %v1742_v27, 16  ;;  %v1762_v47 = vmul.u32 %v1760_v15, %v1736_v6 }
 0x1b5   :  { %v1482_v12 = vsel %vm1480_vm3, %v1481_v1, %v1479_v55  ;;  %v1766_v25 = vshll.u32 %v1763_v5, 16  ;;  %v1725_v32 = vsel %vm1721_vm12, %v5442_v11, %v1724_v22  ;;  %v1765_v10 = vmul.u32 %v1761_v3, %v1737_v45 }
 0x1b6   :  { %v1483_v19 = vclz %v1482_v12  ;;  %vm1748_vm5 = vc.u32 %v1740_v18, %v1744_v17  ;;  %v1750_v53 = vadd.s32 %v1744_v17, %v1740_v18  ;;  %v1768_v20 = vshll.u32 %v1764_v40, 16 }
 0x1b7   :  { %v1749_v59 = vsel %vm1748_vm5, 1, %v7292_v63  ;;  %vm1770_vm7 = vc.u32 %v1762_v47, %v1766_v25  ;;  %v1772_v6 = vadd.s32 %v1766_v25, %v1762_v47  ;;  %v1661_v52 = vmul.f32 -0.001358992, %v5247_v29 }
 0x1b8   :  { %v4407_v9 = vadd.s32 4294967294, %v1483_v19  ;;  %v1751_v0 = vadd.s32 %v1749_v59, %v1743_v21  ;;  %vm1752_vm6 = vc.u32 %v1750_v53, %v1746_v14  ;;  %v1771_v15 = vsel %vm1770_vm7, 1, %v7292_v63 }
 0x1b9   :  { %v1753_v23 = vsel %vm1752_vm6, 1, %v7292_v63  ;;  %v1745_v1 = vshrl.u32 %v1741_v38, 16  ;;  %v1773_v17 = vadd.s32 %v1771_v15, %v1765_v10  ;;  %v1204_v11 = vadd.f32 0.008332121, %v1203_v8 }
 0x1ba   :  { %vm4408_vm9 = vcmp.lt.s32.totalorder %v4407_v9, 0  ;;  %v1755_v18 = vadd.s32 %v1753_v23, %v1751_v0  ;;  %vm1774_vm10 = vc.u32 %v1772_v6, %v1768_v20  ;;  %v1662_v3 = vadd.f32 0.041655596, %v1661_v52 }
 0x1bb   :  { %v1486_v22 = vsel %vm4408_vm9, 0, %v4407_v9  ;;  %v1726_v59 = vsel %vm1720_vm1, %v1723_v33, %v1725_v32  ;;  %v1747_v21 = vshrl.u32 %v1742_v27, 16  ;;  %v1767_v14 = vshrl.u32 %v1763_v5, 16 }
 0x1bc   :  { %v1487_v45 = vsub.s32 32, %v1486_v22  ;;  %v1491_v19 = vsub.s32 4294967266, %v1486_v22  ;;  %v1756_v12 = vadd.s32 %v1755_v18, %v1745_v1  ;;  %v1775_v47 = vsel %vm1774_vm10, 1, %v7292_v63 }
 0x1bd   :  { %v1663_v53 = vmul.f32 %v1662_v3, %v5247_v29  ;;  %v1488_v25 = vshll.u32 %v1479_v55, %v1486_v22  ;;  %v1777_v10 = vadd.s32 %v1775_v47, %v1773_v17  ;;  %v5518_v9 = vmul.f32 %v1204_v11, %v5484_v13 }
 0x1be   :  { %v1489_v38 = vshrl.u32 %v1471_v42, %v1487_v45  ;;  %v1492_v0 = vadd.s32 127, %v1491_v19  ;;  %v5520_v8 = vadd.s32 %v1756_v12, %v1747_v21  ;;  %v1351_v58 = vmul.f32 -0.001358992, %v5145_v4 }
 0x1bf   :  { %v1664_v23 = vadd.f32 -0.4999988, %v1663_v53  ;;  %v1769_v27 = vshrl.u32 %v1764_v40, 16  ;;  %v1778_v5 = vadd.s32 %v1777_v10, %v1767_v14  ;;  %vm1675_vm11 = vweird.f32 %v4820_v35 }
 0x1c0   :  { %v1490_v32 = vor.u32 %v1489_v38, %v1488_v25  ;;  %v1493_v33 = vshll.u32 %v1492_v0, 23  ;;  %vm1379_vm13 = vcmp.lt.s32.totalorder %v5265_v26, 0  ;;  %v5525_v55 = vadd.s32 %v1772_v6, %v1768_v20 }
 0x1c1   :  { %v1780_v42 = vmul.u32 %v5470_v46, %v1726_v59  ;;  %v1665_v15 = vmul.f32 %v1664_v23, %v5247_v29  ;;  %v1352_v52 = vadd.f32 0.041655596, %v1351_v58  ;;  %v7308_v1 = vand.u32 2147483647, %v5265_v26 }
 0x1c2   :  { %v1494_v17 = vor.u32 4788187, %v1493_v33  ;;  %v1779_v40 = vadd.s32 %v1778_v5, %v1769_v27  ;;  %vm1678_vm0 = vcmp.lt.s32.totalorder %v5499_v56, 2  ;;  %vm1679_vm12 = vcmp.eq.s32.totalorder %v5499_v56, 0 }
 0x1c3   :  { %vm5531_vm14 = vcmp.le.f32.partialorder %v7308_v1, 0.7853982  ;;  %vm1782_vm1 = vc.u32 %v5520_v8, %v5525_v55  ;;  %v1666_v20 = vadd.f32 1.0, %v1665_v15  ;;  %v1353_v46 = vmul.f32 %v1352_v52, %v5145_v4 }
 0x1c4   :  { %v1041_v29 = vmul.f32 -0.001358992, %v5017_v61  ;;  %v1495_v6 = vand.u32 2147483647, %v1494_v17  ;;  %v1497_v11 = vcvt.s32.f32 %v1490_v32  ;;  %v1783_v22 = vadd.s32 1, %v1779_v40 }
 0x1c5   :  { %vm1682_vm3 = vcmp.eq.s32.totalorder %v5499_v56, 2  ;;  %v7311_v3 = vxor.u32 2147483648, %v5449_v34  ;;  %v1683_v19 = vxor.u32 2147483648, %v1666_v20  ;;  %v1354_v59 = vadd.f32 -0.4999988, %v1353_v46 }
 0x1c6   :  { %v1042_v12 = vadd.f32 0.041655596, %v1041_v29  ;;  %v1498_v21 = vmul.f32 %v1497_v11, %v1495_v6  ;;  %v1784_v14 = vsel %vm1782_vm1, %v1783_v22, %v1779_v40  ;;  %vm1365_vm5 = vweird.f32 %v4737_v28 }
 0x1c7   :  { %v1681_v45 = vsel %vm1679_vm12, %v1666_v20, %v7311_v3  ;;  %v1367_v47 = vand.u32 3, %v5318_v24  ;;  %v731_v53 = vmul.f32 -0.001358992, %v4970_v43  ;;  %v1785_v25 = vadd.s32 %v1784_v14, %v1780_v42  ;;  %v7314_v14 = vld [vmem:[#allocation6_spill] sm:$0xff] }
 0x1c8   :  { %v1684_v38 = vsel %vm1682_vm3, %v1683_v19, %v5449_v34  ;;  %v1355_v0 = vmul.f32 %v1354_v59, %v5145_v4  ;;  %v1043_v10 = vmul.f32 %v1042_v12, %v5017_v61  ;;  %v1499_v23 = vxor.u32 2147483648, %v1498_v21 }
 0x1c9   :  { %v1685_v58 = vsel %vm1678_vm0, %v1681_v45, %v1684_v38  ;;  %v1057_v32 = vand.u32 3, %v5315_v49  ;;  %v732_v33 = vadd.f32 0.041655596, %v731_v53  ;;  %v1786_v27 = vadd.s32 536870912, %v1785_v25 }
 0x1ca   :  { %v1686_v24 = vsel %vm1675_vm11, nan, %v1685_v58  ;;  %v1356_v5 = vadd.f32 1.0, %v1355_v0  ;;  %v1044_v15 = vadd.f32 -0.4999988, %v1043_v10  ;;  %v1500_v34 = vsel %vm1379_vm13, %v1499_v23, %v1498_v21 }
 0x1cb   :  { %v5557_v42 = vand.u32 4294901760, %v1686_v24  ;;  %vm1369_vm6 = vcmp.eq.s32.totalorder %v1367_v47, 0  ;;  %v733_v4 = vmul.f32 %v732_v33, %v4970_v43  ;;  %v5563_v56 = vsel %vm5531_vm14, %v5265_v26, %v1500_v34 }
 0x1cc   :  { %v5565_v49 = vshrl.u32 %v1786_v27, 30  ;;  %v7312_v35 = vxor.u32 2147483648, %v5324_v62  ;;  %v1373_v1 = vxor.u32 2147483648, %v1356_v5  ;;  %v5571_v17 = vmul.f32 %v5563_v56, %v5563_v56 }
 0x1cd   :  { %1896 = vmatpush.msrb.mxu0 %v5557_v42  ;;  %2047 = vmatpush.msrb.mxu3 %v5557_v42  ;;  %vm1372_vm7 = vcmp.eq.s32.totalorder %v1367_v47, 2  ;;  %v1045_v40 = vmul.f32 %v1044_v15, %v5017_v61  ;;  %v734_v20 = vadd.f32 -0.4999988, %v733_v4  ;;  %v1191_v46 = vsub.s32 4, %v5321_v7  ;;  %v7316_v15 = vld [vmem:[#allocation7_spill] sm:$0xff] }
 0x1ce   :  { %v1371_v52 = vsel %vm1369_vm6, %v1356_v5, %v7312_v35  ;;  %v1788_v29 = vshll.u32 %v5565_v49, 30  ;;  %vm1368_vm9 = vcmp.lt.s32.totalorder %v1367_v47, 2  ;;  %v1374_v6 = vsel %vm1372_vm7, %v1373_v1, %v5324_v62  ;;  %v7313_v62 = vld [vmem:[#allocation5_spill] sm:$0xff] }
 0x1cf   :  { %v1513_v11 = vmul.f32 -0.00019511016, %v5571_v17  ;;  %v1375_v22 = vsel %vm1368_vm9, %v1371_v52, %v1374_v6  ;;  %v1046_v3 = vadd.f32 1.0, %v1045_v40  ;;  %v735_v45 = vmul.f32 %v734_v20, %v4970_v43 }
 0x1d0   :  { %v896_v19 = vadd.f32 -0.16666654, %v5493_v36  ;;  %v5582_v59 = vsub.s32 %v1785_v25, %v1788_v29  ;;  %v1376_v61 = vsel %vm1365_vm5, nan, %v1375_v22  ;;  %vm1055_vm10 = vweird.f32 %v4643_v51 }
 0x1d1   :  { %v1206_v12 = vadd.f32 -0.16666654, %v5518_v9  ;;  %v5588_v21 = vand.u32 4294901760, %v1376_v61  ;;  %vm1059_vm11 = vcmp.eq.s32.totalorder %v1057_v32, 0  ;;  %vm745_vm0 = vweird.f32 %v7313_v62 }
 0x1d2   :  { %v747_v47 = vand.u32 3, %v7314_v14  ;;  %vm1790_vm12 = vcmp.lt.s32.totalorder %v5582_v59, 0  ;;  %v1791_v43 = vsub.s32 0, %v5582_v59  ;;  %v7315_v36 = vxor.u32 2147483648, %v5300_v30 }
 0x1d3   :  { %v1063_v28 = vxor.u32 2147483648, %v1046_v3  ;;  %v5599_v25 = vsel %vm1069_vm8, %v1191_v46, %v5321_v7  ;;  %v1514_v9 = vadd.f32 0.008332121, %v1513_v11  ;;  %1898 = vmatpush.msrb.mxu0 %v5588_v21  ;;  %2049 = vmatpush.msrb.mxu3 %v5588_v21  ;;  %vm1062_vm1 = vcmp.eq.s32.totalorder %v1057_v32, 2 }
 0x1d4   :  { %v1061_v53 = vsel %vm1059_vm11, %v1046_v3, %v7315_v36  ;;  %v736_v38 = vadd.f32 1.0, %v735_v45  ;;  %v897_v0 = vmul.f32 %v896_v19, %v5399_v39  ;;  %v1792_v10 = vsel %vm1790_vm12, %v1791_v43, %v5582_v59  ;;  %v7318_v45 = vld [vmem:[#allocation8_spill] sm:$0xff] }
 0x1d5   :  { %vm1058_vm3 = vcmp.lt.s32.totalorder %v1057_v32, 2  ;;  %v1064_v23 = vsel %vm1062_vm1, %v1063_v28, %v5300_v30  ;;  %v1207_v58 = vmul.f32 %v1206_v12, %v5484_v13  ;;  %v1793_v33 = vclz %v1792_v10  ;;  %v1843_v28 = vld [vmem:[%s7218_s2 + $0x8] sm:$0xff] }
 0x1d6   :  { %v1065_v27 = vsel %vm1058_vm3, %v1061_v53, %v1064_v23  ;;  %vm749_vm8 = vcmp.eq.s32.totalorder %v747_v47, 0  ;;  %v1501_v7 = vsub.s32 4, %v5473_v44  ;;  %v7317_v34 = vxor.u32 2147483648, %v7316_v15 }
 0x1d7   :  { %v1066_v5 = vsel %vm1055_vm10, nan, %v1065_v27  ;;  %v753_v35 = vxor.u32 2147483648, %v736_v38  ;;  %v1515_v52 = vmul.f32 %v1514_v9, %v5571_v17  ;;  %v4413_v1 = vadd.s32 4294967294, %v1793_v33 }
 0x1d8   :  { %v751_v4 = vsel %vm749_vm8, %v736_v38, %v7317_v34  ;;  %v5613_v32 = vand.u32 4294901760, %v1066_v5  ;;  %vm752_vm5 = vcmp.eq.s32.totalorder %v747_v47, 2  ;;  %v1194_v30 = vsel %vm5423_vm15, 0, %v5599_v25 }
 0x1d9   :  { %v1949_v40 = vsub.f32 %v1686_v24, %v5557_v42  ;;  %vm748_vm6 = vcmp.lt.s32.totalorder %v747_v47, 2  ;;  %v754_v51 = vsel %vm752_vm5, %v753_v35, %v7316_v15  ;;  %v5620_v20 = vadd.f32 1.0, %v897_v0 }
 0x1da   :  { %v5622_v46 = vadd.f32 1.0, %v1207_v58  ;;  %vm4414_vm7 = vcmp.lt.s32.totalorder %v4413_v1, 0  ;;  %1900 = vmatpush.msrb.mxu0 %v5613_v32  ;;  %2051 = vmatpush.msrb.mxu3 %v5613_v32  ;;  %v755_v29 = vsel %vm748_vm6, %v751_v4, %v754_v51  ;;  %v5629_v6 = vsel %vm1379_vm13, %v1501_v7, %v5473_v44  ;;  %v1842_v44 = vld [vmem:[%s7218_s2] sm:$0xff]  ;;  %v1844_v7 = vld [vmem:[%s7218_s2 + $0x10] sm:$0xff]  ;;  %v1845_v51 = vld [vmem:[%s7218_s2 + $0x18] sm:$0xff] }
 0x1db   :  { %v1781_v24 = vadd.s32 %v5525_v55, %v5520_v8  ;;  %v1796_v11 = vsel %vm4414_vm7, 0, %v4413_v1  ;;  %2003 = vmatpush.msrb.mxu2 %v1949_v40  ;;  %v756_v22 = vsel %vm745_vm0, nan, %v755_v29  ;;  %v1516_v3 = vadd.f32 -0.16666654, %v1515_v52 }
 0x1dc   :  { %vm1689_vm9 = vcmp.lt.s32.totalorder %v7318_v45, 0  ;;  %v1797_v19 = vsub.s32 32, %v1796_v11  ;;  %v1801_v12 = vsub.s32 4294967266, %v1796_v11  ;;  %v1811_v14 = vsub.s32 4, %v5565_v49 }
 0x1dd   :  { %v1955_v47 = vsub.f32 %v1376_v61, %v5588_v21  ;;  %v5641_v43 = vand.u32 4294901760, %v756_v22  ;;  %v1961_v8 = vsub.f32 %v1066_v5, %v5613_v32  ;;  %v1950_v55 = vand.u32 4294901760, %v1949_v40 }
 0x1de   :  { %v1798_v62 = vshll.u32 %v5582_v59, %v1796_v11  ;;  %v1799_v36 = vshrl.u32 %v1781_v24, %v1797_v19  ;;  %v1802_v53 = vadd.s32 127, %v1801_v12  ;;  %vm7277_vm13 = vcmask 261120  }
 0x1df   :  { %2006 = vmatpush.msrb.mxu2 %v1955_v47  ;;  %1902 = vmatpush.msrb.mxu0 %v5641_v43  ;;  %v1951_v9 = vsub.f32 %v1949_v40, %v1950_v55  ;;  %v1967_v61 = vsub.f32 %v756_v22, %v5641_v43  ;;  %v1956_v38 = vand.u32 4294901760, %v1955_v47  ;;  %v1872_v0 = vsel %vm7277_vm13, %v1842_v44, 0 }
 0x1e0   :  { %v7319_v10 = vand.u32 2147483647, %v7318_v45  ;;  %v1800_v23 = vor.u32 %v1799_v36, %v1798_v62  ;;  %v1803_v58 = vshll.u32 %v1802_v53, 23  ;;  %2053 = vmatpush.msrb.mxu3 %v5641_v43  ;;  %v5658_v33 = vand.u32 4294901760, %v1872_v0 }
 0x1e1   :  { %2094 = vmatpush.msra.mxu0 %v1950_v55  ;;  %v1962_v27 = vand.u32 4294901760, %v1961_v8  ;;  %2009 = vmatpush.msrb.mxu2 %v1961_v8  ;;  %v1952_v5 = vand.u32 4294901760, %v1951_v9  ;;  %v1957_v15 = vsub.f32 %v1955_v47, %v1956_v38  ;;  %v1968_v34 = vand.u32 4294901760, %v1967_v61  ;;  %v7322_v9 = vld [vmem:[#allocation9_spill] sm:$0xff] }
 0x1e2   :  { %vm5653_vm10 = vcmp.le.f32.partialorder %v7319_v10, 0.7853982  ;;  %v1875_v4 = vsel %vm7277_vm13, %v1843_v28, 0  ;;  %v1517_v35 = vmul.f32 %v1516_v3, %v5571_v17  ;;  %v1804_v52 = vor.u32 4788187, %v1803_v58 }
 0x1e3   :  { %2098 = vmatpush.msra.mxu0 %v1956_v38  ;;  %v5666_v1 = vsub.f32 %v1872_v0, %v5658_v33  ;;  %v1963_v40 = vsub.f32 %v1961_v8, %v1962_v27  ;;  %1953 = vmatpush.msrb.mxu1 %v1952_v5  ;;  %v1958_v29 = vand.u32 4294901760, %v1957_v15  ;;  %v1969_v24 = vsub.f32 %v1967_v61, %v1968_v34 }
 0x1e4   :  { %2012 = vmatpush.msrb.mxu2 %v1967_v61  ;;  %v5671_v11 = vand.u32 4294901760, %v1875_v4  ;;  %v1878_v22 = vsel %vm7277_vm13, %v1844_v7, 0  ;;  %v1805_v19 = vand.u32 2147483647, %v1804_v52  ;;  %v1807_v3 = vcvt.s32.f32 %v1800_v23 }
 0x1e5   :  { %2015 = vmatmul.f32.vlgmr.msrb.gmra.mxu2 %v5666_v1  ;;  %2102 = vmatpush.msra.mxu0 %v1962_v27  ;;  %v5676_v12 = vand.u32 4294901760, %v5666_v1  ;;  %v5678_v44 = vand.u32 4294901760, %v1878_v22  ;;  %v1812_v47 = vsel %vm1689_vm9, %v1811_v14, %v5565_v49  ;;  %v1964_v8 = vand.u32 4294901760, %v1963_v40  ;;  %v1847_v14 = vld [vmem:[%s7219_s3 + $0x8] sm:$0xff] }
 0x1e6   :  { %1959 = vmatpush.msrb.mxu1 %v1958_v29  ;;  %v5684_v55 = vsub.f32 %v1875_v4, %v5671_v11  ;;  %v1881_v62 = vsel %vm7277_vm13, %v1845_v51, 0  ;;  %v1504_v36 = vsel %vm5531_vm14, 0, %v5629_v6  ;;  %v1808_v53 = vmul.f32 %v1807_v3, %v1805_v19  ;;  %1857 = vperm.xlu1 %4454, %v1847_v14  }
 0x1e7   :  { %v1906_v28 = vsub.f32 %v5666_v1, %v5676_v12  ;;  %2106 = vmatpush.msra.mxu0 %v1968_v34  ;;  %2057 = vmatmul.f32.vlgmr.msrb.gmra.mxu3 %v5676_v12  ;;  %v5694_v49 = vsub.f32 %v1878_v22, %v5678_v44  ;;  %v5701_v61 = vmul.f32 %v5620_v20, %v7322_v9  ;;  %v1970_v18 = vand.u32 4294901760, %v1969_v24 }
 0x1e8   :  { %1965 = vmatpush.msrb.mxu1 %v1964_v8  ;;  %v5704_v6 = vand.u32 4294901760, %v5684_v55  ;;  %v5706_v38 = vand.u32 4294901760, %v1881_v62  ;;  %v5710_v0 = vmul.f32 %v5622_v46, %v5454_v54  ;;  %v1518_v10 = vadd.f32 1.0, %v1517_v35 }
 0x1e9   :  { %v1809_v23 = vxor.u32 2147483648, %v1808_v53  ;;  %v5712_v58 = vand.u32 4294901760, %v1906_v28  ;;  %v1521_v27 = vadd.s32 3, %v1504_v36  ;;  %v1814_v20 = vsel %vm5653_vm10, 0, %v1812_v47 }
 0x1ea   :  { %1971 = vmatpush.msrb.mxu1 %v1970_v18  ;;  %v1506_v7 = vmul.f32 -0.001358992, %v5571_v17  ;;  %v1196_v5 = vmul.f32 -0.001358992, %v5484_v13  ;;  %v7323_v15 = vsel %vm5342_vm4, 0, %v5419_v50  ;;  %v1914_v46 = vsub.f32 %v5684_v55, %v5704_v6 }
 0x1eb   :  { %v5722_v34 = vadd.s32 3, %v7323_v15  ;;  %v1810_v54 = vsel %vm1689_vm9, %v1809_v23, %v1808_v53  ;;  %1908 = vmatmul.f32.vlgmr.msrb.gmra.mxu0 %v5712_v58  ;;  %1973 = vmatmul.f32.vlgmr.msrb.gmra.mxu1 %v5658_v33  ;;  %v5731_v4 = vand.u32 4294901760, %v5694_v49  ;;  %v1211_v37 = vadd.s32 3, %v1194_v30 }
 0x1ec   :  { %v5740_v50 = vsel %vm5653_vm10, %v7318_v45, %v1810_v54  ;;  %2137 = vmatpush.msra.mxu1 %v5557_v42  ;;  %v5744_v35 = vsub.f32 %v1881_v62, %v5706_v38  ;;  %v1507_v52 = vadd.f32 0.041655596, %v1506_v7  ;;  %v905_v40 = vxor.u32 2147483648, %v5701_v61  ;;  %v1846_v62 = vld [vmem:[%s7219_s3] sm:$0xff] }
 0x1ed   :  { %v1519_v51 = vmul.f32 %v1518_v10, %v5563_v56  ;;  %v1815_v2 = vmul.f32 %v5740_v50, %v5740_v50  ;;  %v1831_v25 = vadd.s32 3, %v1814_v20  ;;  %2020 = vmatmul.f32.gmra.mxu2 %v5684_v55  ;;  %v1215_v30 = vxor.u32 2147483648, %v5710_v0 }
 0x1ee   :  { %2139 = vmatpush.msra.mxu1 %v5588_v21  ;;  %v1508_v42 = vmul.f32 %v1507_v52, %v5571_v17  ;;  %v1522_v59 = vand.u32 3, %v1521_v27  ;;  %v1197_v29 = vadd.f32 0.041655596, %v1196_v5  ;;  %v5754_v22 = vand.u32 4294901760, %v1914_v46  ;;  %1852 = vperm.xlu1 %4454, %v1846_v62  }
 0x1ef   :  { %v1823_v24 = vmul.f32 -0.00019511016, %v1815_v2  ;;  %2063 = vmatmul.f32.gmra.mxu3 %v5704_v6  ;;  %v1922_v56 = vsub.f32 %v5694_v49, %v5731_v4  ;;  %v1816_v19 = vmul.f32 -0.001358992, %v1815_v2  ;;  %v5761_v3 = vand.u32 4294901760, %v5744_v35 }
 0x1f0   :  { %2141 = vmatpush.msra.mxu1 %v5613_v32  ;;  %v1509_v47 = vadd.f32 -0.4999988, %v1508_v42  ;;  %v1198_v21 = vmul.f32 %v1197_v29, %v5484_v13  ;;  %v886_v8 = vmul.f32 -0.001358992, %v5399_v39  ;;  %v1525_v36 = vxor.u32 2147483648, %v1519_v51 }
 0x1f1   :  { %v1824_v53 = vadd.f32 0.008332121, %v1823_v24  ;;  %v1817_v28 = vadd.f32 0.041655596, %v1816_v19  ;;  %v5768_v14 = vand.u32 3, %v1831_v25  ;;  %vm1520_vm4 = vweird.f32 %v5265_v26 }
 0x1f2   :  { %2143 = vmatpush.msra.mxu1 %v5641_v43  ;;  %v1510_v32 = vmul.f32 %v1509_v47, %v5571_v17  ;;  %v1199_v9 = vadd.f32 -0.4999988, %v1198_v21  ;;  %v1212_v18 = vand.u32 3, %v1211_v37  ;;  %v887_v10 = vadd.f32 0.041655596, %v886_v8 }
 0x1f3   :  { %v1825_v23 = vmul.f32 %v1824_v53, %v1815_v2  ;;  %1916 = vmatmul.f32.gmra.mxu0 %v5754_v22  ;;  %1977 = vmatmul.f32.gmra.mxu1 %v5671_v11  ;;  %v5775_v27 = vand.u32 4294901760, %v1922_v56  ;;  %v1818_v20 = vmul.f32 %v1817_v28, %v1815_v2  ;;  %vm1523_vm15 = vcmp.lt.s32.totalorder %v1522_v59, 2 }
 0x1f4   :  { %vm1210_vm14 = vweird.f32 %v5090_v48  ;;  %v1930_v7 = vsub.f32 %v5744_v35, %v5761_v3  ;;  %v1511_v43 = vadd.f32 1.0, %v1510_v32  ;;  %v1200_v17 = vmul.f32 %v1199_v9, %v5484_v13 }
 0x1f5   :  { %v888_v5 = vmul.f32 %v887_v10, %v5399_v39  ;;  %v1826_v15 = vadd.f32 -0.16666654, %v1825_v23  ;;  %2025 = vmatmul.f32.gmra.mxu2 %v5694_v49  ;;  %v1819_v54 = vadd.f32 -0.4999988, %v1818_v20  ;;  %vm1524_vm11 = vcmp.eq.s32.totalorder %v1522_v59, 0  ;;  %v1848_v23 = vld [vmem:[%s7219_s3 + $0x10] sm:$0xff] }
 0x1f6   :  { %vm1527_vm0 = vcmp.eq.s32.totalorder %v1522_v59, 2  ;;  %v1526_v46 = vsel %vm1524_vm11, %v1511_v43, %v1525_v36  ;;  %v1528_v37 = vxor.u32 2147483648, %v1511_v43  ;;  %v1201_v52 = vadd.f32 1.0, %v1200_v17  ;;  %v1849_v36 = vld [vmem:[%s7219_s3 + $0x18] sm:$0xff] }
 0x1f7   :  { %v889_v25 = vadd.f32 -0.4999988, %v888_v5  ;;  %v1827_v42 = vmul.f32 %v1826_v15, %v1815_v2  ;;  %2069 = vmatmul.f32.gmra.mxu3 %v5731_v4  ;;  %v1820_v29 = vmul.f32 %v1819_v54, %v1815_v2  ;;  %vm1214_vm12 = vcmp.eq.s32.totalorder %v1212_v18, 0  ;;  %1867 = vperm.xlu0 %4453, %v1849_v36  }
 0x1f8   :  { %vm900_vm1 = vweird.f32 %v4990_v41  ;;  %v902_v13 = vand.u32 3, %v5722_v34  ;;  %v1529_v24 = vsel %vm1527_vm0, %v1528_v37, %v1519_v51  ;;  %v1216_v56 = vsel %vm1214_vm12, %v1201_v52, %v1215_v30 }
 0x1f9   :  { %v1218_v19 = vxor.u32 2147483648, %v1201_v52  ;;  %v890_v47 = vmul.f32 %v889_v25, %v5399_v39  ;;  %v1828_v21 = vadd.f32 1.0, %v1827_v42  ;;  %v1821_v8 = vadd.f32 1.0, %v1820_v29 }
 0x1fa   :  { %v1530_v62 = vsel %vm1523_vm15, %v1526_v46, %v1529_v24  ;;  %vm1217_vm3 = vcmp.eq.s32.totalorder %v1212_v18, 2  ;;  %vm1213_vm8 = vcmp.lt.s32.totalorder %v1212_v18, 2  ;;  %vm904_vm5 = vcmp.eq.s32.totalorder %v902_v13, 0 }
 0x1fb   :  { %v1531_v2 = vsel %vm1520_vm4, nan, %v1530_v62  ;;  %v1219_v34 = vsel %vm1217_vm3, %v1218_v19, %v5710_v0  ;;  %v891_v51 = vadd.f32 1.0, %v890_v47  ;;  %v1829_v30 = vmul.f32 %v1828_v21, %v5740_v50  ;;  %1924 = vmatmul.f32.gmra.mxu0 %v5775_v27  ;;  %1981 = vmatmul.f32.gmra.mxu1 %v5678_v44 }
 0x1fc   :  { %v1838_v39 = vxor.u32 2147483648, %v1821_v8  ;;  %v1220_v59 = vsel %vm1213_vm8, %v1216_v56, %v1219_v34  ;;  %vm1833_vm6 = vcmp.lt.s32.totalorder %v5768_v14, 2  ;;  %vm1834_vm7 = vcmp.eq.s32.totalorder %v5768_v14, 0 }
 0x1fd   :  { %v1221_v26 = vsel %vm1210_vm14, nan, %v1220_v59  ;;  %v906_v53 = vsel %vm904_vm5, %v891_v51, %v905_v40  ;;  %v908_v0 = vxor.u32 2147483648, %v891_v51  ;;  %v1835_v28 = vxor.u32 2147483648, %v1829_v30  ;;  %2030 = vmatmul.f32.gmra.mxu2 %v5744_v35 }
 0x1fe   :  { %v5804_v50 = vand.u32 4294901760, %v1531_v2  ;;  %vm907_vm9 = vcmp.eq.s32.totalorder %v902_v13, 2  ;;  %vm1837_vm10 = vcmp.eq.s32.totalorder %v5768_v14, 2  ;;  %v5807_v32 = vand.u32 4294901760, %v1930_v7 }
 0x1ff   :  { %vm903_vm4 = vcmp.lt.s32.totalorder %v902_v13, 2  ;;  %v909_v48 = vsel %vm907_vm9, %v908_v0, %v5701_v61  ;;  %v1836_v9 = vsel %vm1834_vm7, %v1821_v8, %v1835_v28  ;;  %v1839_v18 = vsel %vm1837_vm10, %v1838_v39, %v1829_v30  ;;  %2075 = vmatmul.f32.gmra.mxu3 %v5761_v3  ;;  %1862 = vperm.xlu0 %4453, %v1848_v23  }
 0x200   :  { %v2177_v10 = vand.u32 4294901760, %v1221_v26  ;;  %v910_v40 = vsel %vm903_vm4, %v906_v53, %v909_v48  ;;  %vm1830_vm15 = vweird.f32 %v7318_v45  ;;  %v1840_v20 = vsel %vm1833_vm6, %v1836_v9, %v1839_v18 }
 0x201   :  { %v911_v7 = vsel %vm900_vm1, nan, %v910_v40  ;;  %v1841_v43 = vsel %vm1830_vm15, nan, %v1840_v20  ;;  %v2233_v61 = vsub.f32 %v1531_v2, %v5804_v50  ;;  %v7325_v20 = vmov 920167782  }
 0x202   :  { %v2179_v17 = vand.u32 4294901760, %v911_v7  ;;  %v2173_v5 = vand.u32 4294901760, %v1841_v43  ;;  %v2239_v15 = vsub.f32 %v1221_v26, %v2177_v10 }
 0x203   :  { %1932 = vmatmul.f32.gmra.mxu0 %v5807_v32  ;;  %1985 = vmatmul.f32.gmra.mxu1 %v5706_v38  ;;  %v2234_v14 = vand.u32 4294901760, %v2233_v61 }
 0x204   :  { %2174 = vmatpush.msra.mxu2 %v2173_v5  ;;  %2325 = vmatpush.msrb.mxu1 %v2173_v5  ;;  %v2227_v45 = vsub.f32 %v1841_v43, %v2173_v5  ;;  %v2245_v54 = vsub.f32 %v911_v7, %v2179_v17  ;;  %v2240_v46 = vand.u32 4294901760, %v2239_v15 }
 0x205   :  { %v2235_v52 = vsub.f32 %v2233_v61, %v2234_v14 }
 0x206   :  { %2176 = vmatpush.msra.mxu2 %v5804_v50  ;;  %2281 = vmatpush.msrb.mxu0 %v2227_v45  ;;  %v2228_v41 = vand.u32 4294901760, %v2227_v45  ;;  %v2246_v25 = vand.u32 4294901760, %v2245_v54  ;;  %v2241_v29 = vsub.f32 %v2239_v15, %v2240_v46 }
 0x207   :  { %2327 = vmatpush.msrb.mxu1 %v5804_v50  ;;  %v2236_v13 = vand.u32 4294901760, %v2235_v52 }
 0x208   :  { %2178 = vmatpush.msra.mxu2 %v2177_v10  ;;  %2284 = vmatpush.msrb.mxu0 %v2233_v61  ;;  %v2229_v37 = vsub.f32 %v2227_v45, %v2228_v41  ;;  %v2247_v24 = vsub.f32 %v2245_v54, %v2246_v25  ;;  %v2242_v56 = vand.u32 4294901760, %v2241_v29  ;;  %v7326_v61 = vmov 1326507024  }
 0x209   :  { %2329 = vmatpush.msrb.mxu1 %v2177_v10 }
 0x20a   :  { %2180 = vmatpush.msra.mxu2 %v2179_v17  ;;  %2287 = vmatpush.msrb.mxu0 %v2239_v15  ;;  %v2230_v42 = vand.u32 4294901760, %v2229_v37  ;;  %v2248_v19 = vand.u32 4294901760, %v2247_v24 }
 0x20b   :  { %2331 = vmatpush.msrb.mxu1 %v2179_v17  ;;  %2186 = vmatmul.f32.vlgmr.msra.gmra.mxu2 %v5712_v58 }
 0x20c   :  { %2372 = vmatpush.msrb.mxu2 %v2228_v41  ;;  %2231 = vmatpush.msra.mxu3 %v2230_v42 }
 0x20d   :  { %2290 = vmatpush.msrb.mxu0 %v2245_v54  ;;  %2145 = vmatmul.f32.vlgmr.msra.gmra.mxu1 %v5658_v33 }
 0x20e   :  { %2108 = vmatmul.f32.vlgmr.msra.gmra.mxu0 %v5658_v33  ;;  %2376 = vmatpush.msrb.mxu2 %v2234_v14 }
 0x20f   :  { %2237 = vmatpush.msra.mxu3 %v2236_v13 }
 0x210   :  { %2380 = vmatpush.msrb.mxu2 %v2240_v46 }
 0x211   :  { %2243 = vmatpush.msra.mxu3 %v2242_v56 }
 0x212   :  { %2384 = vmatpush.msrb.mxu2 %v2246_v25 }
 0x213   :  { %2249 = vmatpush.msra.mxu3 %v2248_v19  ;;  %2194 = vmatmul.f32.gmra.mxu2 %v5754_v22 }
 0x214   :  { %2251 = vmatmul.f32.vlgmr.msra.gmra.mxu3 %v5658_v33 }
 0x215   :  { %2415 = vmatpush.msrb.mxu3 %v2173_v5  ;;  %2149 = vmatmul.f32.gmra.mxu1 %v5671_v11 }
 0x216   :  { %2112 = vmatmul.f32.gmra.mxu0 %v5671_v11 }
 0x217   :  { %2417 = vmatpush.msrb.mxu3 %v5804_v50 }
 0x219   :  { %2419 = vmatpush.msrb.mxu3 %v2177_v10 }
 0x21b   :  { %2421 = vmatpush.msrb.mxu3 %v2179_v17  ;;  %2202 = vmatmul.f32.gmra.mxu2 %v5775_v27 }
 0x21c   :  { %2255 = vmatmul.f32.gmra.mxu3 %v5671_v11 }
 0x21d   :  { %2153 = vmatmul.f32.gmra.mxu1 %v5678_v44 }
 0x21e   :  { %2116 = vmatmul.f32.gmra.mxu0 %v5678_v44 }
 0x223   :  { %2210 = vmatmul.f32.gmra.mxu2 %v5807_v32 }
 0x224   :  { %2259 = vmatmul.f32.gmra.mxu3 %v5678_v44 }
 0x225   :  { %2157 = vmatmul.f32.gmra.mxu1 %v5706_v38 }
 0x226   :  { %2120 = vmatmul.f32.gmra.mxu0 %v5706_v38 }
 0x22b   :  { %2386 = vmatmul.f32.vlgmr.msrb.gmra.mxu2 %v5658_v33 }
 0x22c   :  { %2263 = vmatmul.f32.gmra.mxu3 %v5706_v38 }
 0x22d   :  { %2335 = vmatmul.f32.vlgmr.msrb.gmra.mxu1 %v5676_v12 }
 0x22e   :  { %2293 = vmatmul.f32.vlgmr.msrb.gmra.mxu0 %v5666_v1 }
 0x233   :  { %2390 = vmatmul.f32.gmra.mxu2 %v5671_v11 }
 0x234   :  { %2423 = vmatmul.f32.vlgmr.msrb.gmra.mxu3 %v5658_v33 }
 0x235   :  { %2341 = vmatmul.f32.gmra.mxu1 %v5704_v6 }
 0x236   :  { %2298 = vmatmul.f32.gmra.mxu0 %v5684_v55 }
 0x23b   :  { %2394 = vmatmul.f32.gmra.mxu2 %v5678_v44 }
 0x23c   :  { %2427 = vmatmul.f32.gmra.mxu3 %v5671_v11 }
 0x23d   :  { %2347 = vmatmul.f32.gmra.mxu1 %v5731_v4 }
 0x23e   :  { %2303 = vmatmul.f32.gmra.mxu0 %v5694_v49 }
 0x243   :  { %2398 = vmatmul.f32.gmra.mxu2 %v5706_v38 }
 0x244   :  { %2431 = vmatmul.f32.gmra.mxu3 %v5678_v44 }
 0x245   :  { %2353 = vmatmul.f32.gmra.mxu1 %v5761_v3 }
 0x246   :  { %2308 = vmatmul.f32.gmra.mxu0 %v5744_v35 }
 0x24c   :  { %2435 = vmatmul.f32.gmra.mxu3 %v5706_v38 }
 0x258   :  { %v5861_v11 = vpop.permute.xlu1 %1857 }
 0x260   :  { %v5867_v58 = vpop.permute.xlu1 %1852 }
 0x268   :  { %v1909_v33 = vpop.f32.mrf.mxu0  ;;  %v1974_v1 = vpop.f32.mrf.mxu1 }
 0x269   :  { %v1910_v44 = vadd.f32 %v1909_v33, %v5867_v58  ;;  %v2016_v22 = vpop.f32.mrf.mxu2 }
 0x26a   :  { %v2058_v27 = vpop.f32.mrf.mxu3 }
 0x26b   :  { %v1975_v38 = vadd.f32 %v1974_v1, %v1910_v44 }
 0x26d   :  { %v2017_v3 = vadd.f32 %v2016_v22, %v1975_v38 }
 0x26f   :  { %v2059_v47 = vadd.f32 %v2058_v27, %v2017_v3 }
 0x270   :  { %v5857_v12 = vpop.f32.mrf.mxu0  ;;  %v5859_v55 = vpop.f32.mrf.mxu1 }
 0x278   :  { %v5863_v6 = vpop.f32.mrf.mxu0  ;;  %v5865_v49 = vpop.f32.mrf.mxu1 }
 0x280   :  { %v5870_v4 = vpop.f32.mrf.mxu0  ;;  %v5872_v35 = vpop.f32.mrf.mxu1 }
 0x28a   :  { %v2146_v8 = vpop.f32.mrf.mxu1 }
 0x28b   :  { %v2109_v21 = vpop.f32.mrf.mxu0 }
 0x28c   :  { %v2110_v62 = vadd.f32 %v2109_v21, %v2059_v47 }
 0x28e   :  { %v5874_v36 = vadd.f32 %v2146_v8, %v2110_v62 }
 0x290   :  { %7324 = vst [vmem:[#allocation5_spill] sm:$0xff] %v5874_v36  ;;  %v2442_v2 = vand.u32 2139095040, %v5874_v36  ;;  %v2439_v30 = vand.u32 2147483647, %v5874_v36 }
 0x292   :  { %v2443_v34 = vshrl.u32 %v2442_v2, 23  ;;  %v2446_v59 = vand.u32 8388607, %v2439_v30 }
 0x294   :  { %v4415_v51 = vadd.s32 4294967169, %v2443_v34  ;;  %v2447_v28 = vor.u32 8388608, %v2446_v59 }
 0x296   :  { %v2449_v39 = vadd.s32 1, %v4415_v51  ;;  %v5893_v41 = vshll.u32 %v2447_v28, 8 }
 0x298   :  { %vm2450_vm14 = vcmp.gt.s32.totalorder %v2449_v39, 0  ;;  %v2488_v56 = vand.u32 65535, %v5893_v41  ;;  %v2489_v19 = vshrl.u32 %v5893_v41, 16 }
 0x299   :  { %v2451_v26 = vsel %vm2450_vm14, %v2449_v39, 0 }
 0x29a   :  { %v2453_v53 = vand.u32 31, %v2451_v26  ;;  %v5880_v50 = vshrl.u32 %v2451_v26, 5 }
 0x29c   :  { %v2454_v0 = vsub.s32 32, %v2453_v53  ;;  %v2456_v32 = vshll.u32 %v7297_v31, %v2453_v53  ;;  %v2459_v48 = vshll.u32 %v7296_v60, %v2453_v53  ;;  %v2462_v10 = vshll.u32 %v7298_v57, %v2453_v53 }
 0x29d   :  { %v2465_v23 = vshll.u32 %v7299_v16, %v2453_v53  ;;  %v2468_v43 = vshll.u32 %v7325_v20, %v2453_v53  ;;  %vm2471_vm11 = vcmp.lt.s32.totalorder %v5880_v50, 1  ;;  %vm2474_vm0 = vcmp.lt.s32.totalorder %v5880_v50, 4 }
 0x29e   :  { %v2457_v9 = vshrl.u32 %v7296_v60, %v2454_v0  ;;  %v2460_v18 = vshrl.u32 %v7298_v57, %v2454_v0  ;;  %v2463_v40 = vshrl.u32 %v7299_v16, %v2454_v0  ;;  %v2466_v7 = vshrl.u32 %v7325_v20, %v2454_v0 }
 0x29f   :  { %v2469_v17 = vshrl.u32 %v7326_v61, %v2454_v0  ;;  %vm2473_vm12 = vcmp.lt.s32.totalorder %v5880_v50, 3  ;;  %vm2472_vm1 = vcmp.lt.s32.totalorder %v5880_v50, 2 }
 0x2a0   :  { %v2458_v5 = vor.u32 %v2457_v9, %v2456_v32  ;;  %v2461_v15 = vor.u32 %v2460_v18, %v2459_v48  ;;  %v2464_v45 = vor.u32 %v2463_v40, %v2462_v10  ;;  %v2467_v54 = vor.u32 %v2466_v7, %v2465_v23 }
 0x2a1   :  { %v2470_v14 = vor.u32 %v2469_v17, %v2468_v43  ;;  %v2455_v40 = vshrl.u32 %v7297_v31, %v2454_v0  ;;  %v1918_v17 = vadd.f32 %v5857_v12, %v5861_v11 }
 0x2a2   :  { %v2479_v46 = vsel %vm2471_vm11, %v2458_v5, %v2461_v15  ;;  %v2483_v37 = vsel %vm2471_vm11, %v2461_v15, %v2464_v45  ;;  %v2480_v52 = vsel %vm2474_vm0, %v2467_v54, 920167782  ;;  %v2476_v9 = vsel %vm2474_vm0, %v2464_v45, 2102212464 }
 0x2a3   :  { %v2484_v25 = vsel %vm2474_vm0, %v2470_v14, 1326507024  ;;  %v2481_v42 = vsel %vm2473_vm12, %v2464_v45, %v2480_v52  ;;  %v2477_v45 = vsel %vm2473_vm12, %v2461_v15, %v2476_v9  ;;  %v1979_v12 = vadd.f32 %v5859_v55, %v1918_v17  ;;  %v2021_v15 = vpop.f32.mrf.mxu2 }
 0x2a4   :  { %v2485_v29 = vsel %vm2473_vm12, %v2467_v54, %v2484_v25  ;;  %v2482_v13 = vsel %vm2472_vm1, %v2479_v46, %v2481_v42  ;;  %v2475_v46 = vsel %vm2471_vm11, %v2455_v40, %v2458_v5  ;;  %v5929_v25 = vpop.permute.xlu0 %1867 }
 0x2a5   :  { %v2486_v24 = vsel %vm2472_vm1, %v2483_v37, %v2485_v29  ;;  %v2512_v44 = vand.u32 65535, %v2482_v13  ;;  %v2513_v38 = vshrl.u32 %v2482_v13, 16 }
 0x2a6   :  { %v2490_v33 = vand.u32 65535, %v2486_v24  ;;  %v2491_v1 = vshrl.u32 %v2486_v24, 16  ;;  %v2478_v24 = vsel %vm2472_vm1, %v2475_v46, %v2477_v45 }
 0x2a7   :  { %v2515_v27 = vmul.u32 %v2513_v38, %v2488_v56  ;;  %v2516_v47 = vmul.u32 %v2512_v44, %v2489_v19  ;;  %v2514_v2 = vmul.u32 %v2512_v44, %v2488_v56  ;;  %v2517_v59 = vmul.u32 %v2513_v38, %v2489_v19  ;;  %v2064_v44 = vpop.f32.mrf.mxu3 }
 0x2a8   :  { %v2493_v22 = vmul.u32 %v2491_v1, %v2488_v56  ;;  %v2494_v3 = vmul.u32 %v2490_v33, %v2489_v19  ;;  %v2492_v21 = vmul.u32 %v2490_v33, %v2488_v56  ;;  %v2495_v62 = vmul.u32 %v2491_v1, %v2489_v19 }
 0x2a9   :  { %v2518_v34 = vshll.u32 %v2515_v27, 16  ;;  %v2520_v53 = vshll.u32 %v2516_v47, 16  ;;  %v2519_v54 = vshrl.u32 %v2515_v27, 16  ;;  %v2521_v0 = vshrl.u32 %v2516_v47, 16 }
 0x2aa   :  { %v2496_v8 = vshll.u32 %v2493_v22, 16  ;;  %v2498_v51 = vshll.u32 %v2494_v3, 16  ;;  %v2497_v23 = vshrl.u32 %v2493_v22, 16  ;;  %v2499_v37 = vshrl.u32 %v2494_v3, 16  ;;  %v2113_v3 = vpop.f32.mrf.mxu0 }
 0x2ab   :  { %vm2522_vm8 = vc.u32 %v2514_v2, %v2518_v34  ;;  %v2524_v28 = vadd.s32 %v2518_v34, %v2514_v2  ;;  %v2532_v19 = vmul.u32 %v5893_v41, %v2478_v24  ;;  %v2022_v33 = vadd.f32 %v2021_v15, %v1979_v12 }
 0x2ac   :  { %vm2500_vm3 = vc.u32 %v2492_v21, %v2496_v8  ;;  %v2502_v39 = vadd.s32 %v2496_v8, %v2492_v21  ;;  %v2523_v48 = vsel %vm2522_vm8, 1, %v7292_v63  ;;  %v5941_v47 = vpop.permute.xlu0 %1862 }
 0x2ad   :  { %v2501_v26 = vsel %vm2500_vm3, 1, %v7292_v63  ;;  %v2525_v10 = vadd.s32 %v2523_v48, %v2517_v59  ;;  %vm2526_vm6 = vc.u32 %v2524_v28, %v2520_v53  ;;  %v5933_v13 = vadd.s32 %v2524_v28, %v2520_v53  ;;  %v2026_v53 = vpop.f32.mrf.mxu2 }
 0x2ae   :  { %v2503_v32 = vadd.s32 %v2501_v26, %v2495_v62  ;;  %vm2504_vm5 = vc.u32 %v2502_v39, %v2498_v51  ;;  %v2527_v43 = vsel %vm2526_vm6, 1, %v7292_v63  ;;  %v2065_v27 = vadd.f32 %v2064_v44, %v2022_v33  ;;  %v2150_v62 = vpop.f32.mrf.mxu1 }
 0x2af   :  { %v2505_v18 = vsel %vm2504_vm5, 1, %v7292_v63  ;;  %v2529_v14 = vadd.s32 %v2527_v43, %v2525_v10  ;;  %v1926_v8 = vadd.f32 %v5863_v6, %v5941_v47  ;;  %v2070_v9 = vpop.f32.mrf.mxu3 }
 0x2b0   :  { %v2507_v7 = vadd.s32 %v2505_v18, %v2503_v32  ;;  %v2114_v50 = vadd.f32 %v2113_v3, %v2065_v27 }
 0x2b1   :  { %v2530_v42 = vadd.s32 %v2529_v14, %v2519_v54  ;;  %v1983_v39 = vadd.f32 %v5865_v49, %v1926_v8  ;;  %v1934_v8 = vadd.f32 %v5870_v4, %v5929_v25 }
 0x2b2   :  { %v2508_v52 = vadd.s32 %v2507_v7, %v2497_v23  ;;  %v5948_v2 = vadd.f32 %v2150_v62, %v2114_v50  ;;  %v2117_v40 = vpop.f32.mrf.mxu0 }
 0x2b3   :  { %v2531_v56 = vadd.s32 %v2530_v42, %v2521_v0  ;;  %v2027_v48 = vadd.f32 %v2026_v53, %v1983_v39 }
 0x2b4   :  { %v5931_v29 = vadd.s32 %v2508_v52, %v2499_v37  ;;  %7327 = vst [vmem:[#allocation6_spill] sm:$0xff] %v5948_v2  ;;  %v2752_v34 = vand.u32 2139095040, %v5948_v2  ;;  %v2749_v6 = vand.u32 2147483647, %v5948_v2 }
 0x2b5   :  { %v2535_v5 = vadd.s32 1, %v2531_v56  ;;  %v2071_v43 = vadd.f32 %v2070_v9, %v2027_v48 }
 0x2b6   :  { %vm2534_vm7 = vc.u32 %v5931_v29, %v5933_v13  ;;  %v2753_v59 = vshrl.u32 %v2752_v34, 23  ;;  %v2756_v23 = vand.u32 8388607, %v2749_v6  ;;  %v2154_v49 = vpop.f32.mrf.mxu1 }
 0x2b7   :  { %v2536_v1 = vsel %vm2534_vm7, %v2535_v5, %v2531_v56  ;;  %v2118_v54 = vadd.f32 %v2117_v40, %v2071_v43 }
 0x2b8   :  { %v2537_v38 = vadd.s32 %v2536_v1, %v2532_v19  ;;  %v4421_v32 = vadd.s32 4294967169, %v2753_v59  ;;  %v2757_v14 = vor.u32 8388608, %v2756_v23 }
 0x2b9   :  { %v5960_v45 = vadd.f32 %v2154_v49, %v2118_v54 }
 0x2ba   :  { %v2538_v22 = vadd.s32 536870912, %v2537_v38  ;;  %v2759_v18 = vadd.s32 1, %v4421_v32  ;;  %v5976_v3 = vshll.u32 %v2757_v14, 8 }
 0x2bb   :  { %7328 = vst [vmem:[#allocation7_spill] sm:$0xff] %v5960_v45  ;;  %v3062_v59 = vand.u32 2139095040, %v5960_v45 }
 0x2bc   :  { %v5943_v55 = vshrl.u32 %v2538_v22, 30  ;;  %vm2760_vm10 = vcmp.gt.s32.totalorder %v2759_v18, 0  ;;  %v2798_v53 = vand.u32 65535, %v5976_v3 }
 0x2bd   :  { %v2761_v7 = vsel %vm2760_vm10, %v2759_v18, 0  ;;  %v2799_v18 = vshrl.u32 %v5976_v3, 16  ;;  %v3063_v49 = vshrl.u32 %v3062_v59, 23 }
 0x2be   :  { %v2540_v21 = vshll.u32 %v5943_v55, 30  ;;  %v2763_v17 = vand.u32 31, %v2761_v7  ;;  %v5964_v52 = vshrl.u32 %v2761_v7, 5  ;;  %v2533_v7 = vadd.s32 %v5933_v13, %v5931_v29 }
 0x2c0   :  { %v5950_v41 = vsub.s32 %v2537_v38, %v2540_v21  ;;  %v2764_v46 = vsub.s32 32, %v2763_v17  ;;  %v2766_v0 = vshll.u32 %v7297_v31, %v2763_v17  ;;  %v2769_v42 = vshll.u32 %v7296_v60, %v2763_v17 }
 0x2c1   :  { %v2772_v56 = vshll.u32 %v7298_v57, %v2763_v17  ;;  %v2775_v15 = vshll.u32 %v7299_v16, %v2763_v17  ;;  %v2778_v33 = vshll.u32 %v7325_v20, %v2763_v17  ;;  %vm2781_vm15 = vcmp.lt.s32.totalorder %v5964_v52, 1 }
 0x2c2   :  { %vm2542_vm9 = vcmp.lt.s32.totalorder %v5950_v41, 0  ;;  %v2543_v51 = vsub.s32 0, %v5950_v41  ;;  %v2767_v12 = vshrl.u32 %v7296_v60, %v2764_v46  ;;  %v2770_v24 = vshrl.u32 %v7298_v57, %v2764_v46 }
 0x2c3   :  { %v2773_v5 = vshrl.u32 %v7299_v16, %v2764_v46  ;;  %v2776_v19 = vshrl.u32 %v7325_v20, %v2764_v46  ;;  %v2779_v1 = vshrl.u32 %v7326_v61, %v2764_v46  ;;  %vm2784_vm14 = vcmp.lt.s32.totalorder %v5964_v52, 4 }
 0x2c4   :  { %v2544_v26 = vsel %vm2542_vm9, %v2543_v51, %v5950_v41  ;;  %v2768_v44 = vor.u32 %v2767_v12, %v2766_v0  ;;  %v2771_v38 = vor.u32 %v2770_v24, %v2769_v42  ;;  %vm2783_vm11 = vcmp.lt.s32.totalorder %v5964_v52, 3 }
 0x2c5   :  { %v2545_v28 = vclz %v2544_v26  ;;  %v2774_v22 = vor.u32 %v2773_v5, %v2772_v56  ;;  %v2777_v50 = vor.u32 %v2776_v19, %v2775_v15  ;;  %v2780_v21 = vor.u32 %v2779_v1, %v2778_v33 }
 0x2c6   :  { %v2789_v62 = vsel %vm2781_vm15, %v2768_v44, %v2771_v38  ;;  %vm2782_vm0 = vcmp.lt.s32.totalorder %v5964_v52, 2  ;;  %v1987_v17 = vadd.f32 %v5872_v35, %v1934_v8  ;;  %v7253_v0 = vand.u32 2147483647, %v5960_v45 }
 0x2c7   :  { %v4416_v10 = vadd.s32 4294967294, %v2545_v28  ;;  %v2793_v34 = vsel %vm2781_vm15, %v2771_v38, %v2774_v22  ;;  %v2790_v51 = vsel %vm2784_vm14, %v2777_v50, 920167782  ;;  %v2794_v39 = vsel %vm2784_vm14, %v2780_v21, 1326507024 }
 0x2c8   :  { %v2791_v4 = vsel %vm2783_vm11, %v2774_v22, %v2790_v51  ;;  %v2795_v26 = vsel %vm2783_vm11, %v2777_v50, %v2794_v39  ;;  %v2765_v5 = vshrl.u32 %v7297_v31, %v2764_v46  ;;  %v2786_v15 = vsel %vm2784_vm14, %v2774_v22, 2102212464 }
 0x2c9   :  { %vm4417_vm4 = vcmp.lt.s32.totalorder %v4416_v10, 0  ;;  %v2792_v48 = vsel %vm2782_vm0, %v2789_v62, %v2791_v4  ;;  %v2796_v9 = vsel %vm2782_vm0, %v2793_v34, %v2795_v26  ;;  %v4427_v1 = vadd.s32 4294967169, %v3063_v49 }
 0x2ca   :  { %v5962_v37 = vsel %vm4417_vm4, 0, %v4416_v10  ;;  %v2800_v10 = vand.u32 65535, %v2796_v9  ;;  %v2801_v40 = vshrl.u32 %v2796_v9, 16  ;;  %v2823_v23 = vshrl.u32 %v2792_v48, 16 }
 0x2cb   :  { %v2553_v27 = vsub.s32 4294967266, %v5962_v37  ;;  %v2549_v28 = vsub.s32 32, %v5962_v37  ;;  %v2822_v43 = vand.u32 65535, %v2792_v48  ;;  %v2550_v42 = vshll.u32 %v5950_v41, %v5962_v37  ;;  %v2031_v48 = vpop.f32.mrf.mxu2 }
 0x2cc   :  { %v2803_v54 = vmul.u32 %v2801_v40, %v2798_v53  ;;  %v2804_v14 = vmul.u32 %v2800_v10, %v2799_v18  ;;  %v2825_v56 = vmul.u32 %v2823_v23, %v2798_v53  ;;  %v2802_v29 = vmul.u32 %v2800_v10, %v2798_v53 }
 0x2cd   :  { %v2554_v32 = vadd.s32 127, %v2553_v27  ;;  %v2551_v12 = vshrl.u32 %v2533_v7, %v2549_v28  ;;  %v2805_v19 = vmul.u32 %v2801_v40, %v2799_v18  ;;  %v2826_v33 = vmul.u32 %v2822_v43, %v2799_v18 }
 0x2ce   :  { %v2806_v13 = vshll.u32 %v2803_v54, 16  ;;  %v2828_v35 = vshll.u32 %v2825_v56, 16  ;;  %v2808_v27 = vshll.u32 %v2804_v14, 16  ;;  %v2824_v21 = vmul.u32 %v2822_v43, %v2798_v53 }
 0x2cf   :  { %v2555_v24 = vshll.u32 %v2554_v32, 23  ;;  %v2785_v41 = vsel %vm2781_vm15, %v2765_v5, %v2768_v44  ;;  %v2827_v8 = vmul.u32 %v2823_v23, %v2799_v18  ;;  %v2830_v46 = vshll.u32 %v2826_v33, 16 }
 0x2d0   :  { %vm2810_vm12 = vc.u32 %v2802_v29, %v2806_v13  ;;  %v2812_v50 = vadd.s32 %v2806_v13, %v2802_v29  ;;  %vm2832_vm3 = vc.u32 %v2824_v21, %v2828_v35  ;;  %v2834_v22 = vadd.s32 %v2828_v35, %v2824_v21 }
 0x2d1   :  { %v2811_v37 = vsel %vm2810_vm12, 1, %v7292_v63  ;;  %v2787_v34 = vsel %vm2783_vm11, %v2771_v38, %v2786_v15  ;;  %v2833_v39 = vsel %vm2832_vm3, 1, %v7292_v63  ;;  %v3069_v59 = vadd.s32 1, %v4427_v1 }
 0x2d2   :  { %v2813_v62 = vadd.s32 %v2811_v37, %v2805_v19  ;;  %vm2814_vm1 = vc.u32 %v2812_v50, %v2808_v27  ;;  %v2807_v4 = vshrl.u32 %v2803_v54, 16  ;;  %v2835_v53 = vadd.s32 %v2833_v39, %v2827_v8  ;;  %v2076_v8 = vpop.f32.mrf.mxu3 }
 0x2d3   :  { %v2815_v51 = vsel %vm2814_vm1, 1, %v7292_v63  ;;  %vm2836_vm8 = vc.u32 %v2834_v22, %v2830_v46  ;;  %v2809_v44 = vshrl.u32 %v2804_v14, 16  ;;  %v3066_v32 = vand.u32 8388607, %v7253_v0 }
 0x2d4   :  { %v2817_v26 = vadd.s32 %v2815_v51, %v2813_v62  ;;  %v2837_v28 = vsel %vm2836_vm8, 1, %v7292_v63  ;;  %vm3070_vm5 = vcmp.gt.s32.totalorder %v3069_v59, 0  ;;  %v2829_v18 = vshrl.u32 %v2825_v56, 16 }
 0x2d5   :  { %v2839_v38 = vadd.s32 %v2837_v28, %v2835_v53  ;;  %v3071_v10 = vsel %vm3070_vm5, %v3069_v59, 0  ;;  %v2552_v40 = vor.u32 %v2551_v12, %v2550_v42  ;;  %v2032_v23 = vadd.f32 %v2031_v48, %v1987_v17 }
 0x2d6   :  { %v2818_v9 = vadd.s32 %v2817_v26, %v2807_v4  ;;  %v3073_v7 = vand.u32 31, %v3071_v10  ;;  %v2556_v43 = vor.u32 4788187, %v2555_v24  ;;  %v2831_v54 = vshrl.u32 %v2826_v33, 16 }
 0x2d7   :  { %v2840_v5 = vadd.s32 %v2839_v38, %v2829_v18  ;;  %v2788_v14 = vsel %vm2782_vm0, %v2785_v41, %v2787_v34  ;;  %v6028_v15 = vadd.s32 %v2834_v22, %v2830_v46  ;;  %v3067_v29 = vor.u32 8388608, %v3066_v32 }
 0x2d8   :  { %v6024_v49 = vadd.s32 %v2818_v9, %v2809_v44  ;;  %v6030_v13 = vsub.s32 32, %v3073_v7  ;;  %v6032_v56 = vshrl.u32 %v3071_v10, 5  ;;  %v3076_v42 = vshll.u32 %v7297_v31, %v3073_v7 }
 0x2d9   :  { %v2841_v19 = vadd.s32 %v2840_v5, %v2831_v54  ;;  %v3079_v17 = vshll.u32 %v7296_v60, %v3073_v7  ;;  %v3082_v24 = vshll.u32 %v7298_v57, %v3073_v7  ;;  %v3085_v1 = vshll.u32 %v7299_v16, %v3073_v7  ;;  %v2121_v5 = vpop.f32.mrf.mxu0 }
 0x2da   :  { %vm2844_vm6 = vc.u32 %v6024_v49, %v6028_v15  ;;  %v3077_v12 = vshrl.u32 %v7296_v60, %v6030_v13  ;;  %v3080_v52 = vshrl.u32 %v7298_v57, %v6030_v13  ;;  %v3083_v35 = vshrl.u32 %v7299_v16, %v6030_v13 }
 0x2db   :  { %v2845_v33 = vadd.s32 1, %v2841_v19  ;;  %v3086_v27 = vshrl.u32 %v7325_v20, %v6030_v13  ;;  %v2842_v50 = vmul.u32 %v5976_v3, %v2788_v14  ;;  %v3088_v37 = vshll.u32 %v7325_v20, %v3073_v7 }
 0x2dc   :  { %v6049_v21 = vor.u32 %v3077_v12, %v3076_v42  ;;  %v6051_v41 = vor.u32 %v3080_v52, %v3079_v17  ;;  %v6054_v62 = vor.u32 %v3083_v35, %v3082_v24  ;;  %v3089_v34 = vshrl.u32 %v7326_v61, %v6030_v13  ;;  %v6089_v17 = vpop.f32.mrf.mxu2 }
 0x2dd   :  { %v2846_v46 = vsel %vm2844_vm6, %v2845_v33, %v2841_v19  ;;  %v3087_v22 = vor.u32 %v3086_v27, %v3085_v1  ;;  %v2557_v51 = vand.u32 2147483647, %v2556_v43  ;;  %v2559_v39 = vcvt.s32.f32 %v2552_v40  ;;  %v2158_v1 = vpop.f32.mrf.mxu1 }
 0x2de   :  { %v2847_v59 = vadd.s32 %v2846_v46, %v2842_v50  ;;  %vm3091_vm7 = vcmp.lt.s32.totalorder %v6032_v56, 1  ;;  %v3090_v3 = vor.u32 %v3089_v34, %v3088_v37  ;;  %vm3094_vm9 = vcmp.lt.s32.totalorder %v6032_v56, 4  ;;  %v6095_v50 = vpop.f32.mrf.mxu3 }
 0x2df   :  { %v3099_v4 = vsel %vm3091_vm7, %v6049_v21, %v6051_v41  ;;  %v6064_v26 = vshll.u32 %v3067_v29, 8  ;;  %vm3093_vm10 = vcmp.lt.s32.totalorder %v6032_v56, 3  ;;  %v3100_v44 = vsel %vm3094_vm9, %v3087_v22, 920167782 }
 0x2e0   :  { %v2848_v53 = vadd.s32 536870912, %v2847_v59  ;;  %v3103_v28 = vsel %vm3091_vm7, %v6051_v41, %v6054_v62  ;;  %vm3092_vm4 = vcmp.lt.s32.totalorder %v6032_v56, 2  ;;  %v3101_v32 = vsel %vm3093_vm10, %v6054_v62, %v3100_v44 }
 0x2e1   :  { %v3104_v48 = vsel %vm3094_vm9, %v3090_v3, 1326507024  ;;  %v2560_v9 = vmul.f32 %v2559_v39, %v2557_v51  ;;  %v3102_v38 = vsel %vm3092_vm4, %v3099_v4, %v3101_v32  ;;  %v3108_v7 = vand.u32 65535, %v6064_v26 }
 0x2e2   :  { %v6079_v18 = vshrl.u32 %v2848_v53, 30  ;;  %v3105_v10 = vsel %vm3093_vm10, %v3087_v22, %v3104_v48  ;;  %v3132_v43 = vand.u32 65535, %v3102_v38  ;;  %v3133_v54 = vshrl.u32 %v3102_v38, 16 }
 0x2e3   :  { %v3106_v40 = vsel %vm3092_vm4, %v3103_v28, %v3105_v10  ;;  %v2077_v14 = vadd.f32 %v2076_v8, %v2032_v23  ;;  %v3109_v12 = vshrl.u32 %v6064_v26, 16  ;;  %vm2441_vm15 = vcmp.lt.s32.totalorder %v5874_v36, 0 }
 0x2e4   :  { %v2850_v29 = vshll.u32 %v6079_v18, 30  ;;  %v3110_v19 = vand.u32 65535, %v3106_v40  ;;  %v3111_v42 = vshrl.u32 %v3106_v40, 16  ;;  %v3135_v52 = vmul.u32 %v3133_v54, %v3108_v7 }
 0x2e5   :  { %v2122_v35 = vadd.f32 %v2121_v5, %v2077_v14  ;;  %v2561_v27 = vxor.u32 2147483648, %v2560_v9  ;;  %v3136_v37 = vmul.u32 %v3132_v43, %v3109_v12  ;;  %v3134_v39 = vmul.u32 %v3132_v43, %v3108_v7 }
 0x2e6   :  { %v6093_v24 = vsub.s32 %v2847_v59, %v2850_v29  ;;  %v3113_v33 = vmul.u32 %v3111_v42, %v3108_v7  ;;  %v3114_v23 = vmul.u32 %v3110_v19, %v3109_v12  ;;  %v3138_v8 = vshll.u32 %v3135_v52, 16 }
 0x2e7   :  { %v3112_v22 = vmul.u32 %v3110_v19, %v3108_v7  ;;  %v3115_v51 = vmul.u32 %v3111_v42, %v3109_v12  ;;  %v3137_v3 = vmul.u32 %v3133_v54, %v3109_v12  ;;  %v6099_v59 = vadd.f32 %v2158_v1, %v2122_v35  ;;  %v6116_v12 = vpop.f32.mrf.mxu2 }
 0x2e8   :  { %vm2852_vm14 = vcmp.lt.s32.totalorder %v6093_v24, 0  ;;  %v2853_v46 = vsub.s32 0, %v6093_v24  ;;  %v3116_v34 = vshll.u32 %v3113_v33, 16  ;;  %v3118_v53 = vshll.u32 %v3114_v23, 16 }
 0x2e9   :  { %7329 = vst [vmem:[#allocation8_spill] sm:$0xff] %v6099_v59  ;;  %v3140_v48 = vshll.u32 %v3136_v37, 16  ;;  %vm3142_vm0 = vc.u32 %v3134_v39, %v3138_v8  ;;  %v3144_v40 = vadd.s32 %v3138_v8, %v3134_v39  ;;  %v2562_v7 = vsel %vm2441_vm15, %v2561_v27, %v2560_v9 }
 0x2ea   :  { %v2854_v4 = vsel %vm2852_vm14, %v2853_v46, %v6093_v24  ;;  %vm3120_vm11 = vc.u32 %v3112_v22, %v3116_v34  ;;  %v3122_v44 = vadd.s32 %v3116_v34, %v3112_v22  ;;  %v3143_v10 = vsel %vm3142_vm0, 1, %v7292_v63  ;;  %v6133_v22 = vpop.f32.mrf.mxu3 }
 0x2eb   :  { %v2855_v28 = vclz %v2854_v4  ;;  %v3121_v32 = vsel %vm3120_vm11, 1, %v7292_v63  ;;  %v3096_v43 = vsel %vm3094_vm9, %v6054_v62, 2102212464  ;;  %v3145_v5 = vadd.s32 %v3143_v10, %v3137_v3 }
 0x2ec   :  { %v3123_v38 = vadd.s32 %v3121_v32, %v3115_v51  ;;  %vm3124_vm12 = vc.u32 %v3122_v44, %v3118_v53  ;;  %v3117_v29 = vshrl.u32 %v3113_v33, 16  ;;  %vm3146_vm1 = vc.u32 %v3144_v40, %v3140_v48 }
 0x2ed   :  { %v3125_v54 = vsel %vm3124_vm12, 1, %v7292_v63  ;;  %v4422_v14 = vadd.s32 4294967294, %v2855_v28  ;;  %vm6112_vm3 = vcmp.le.f32.partialorder %v2439_v30, 0.7853982  ;;  %v3075_v9 = vshrl.u32 %v7297_v31, %v6030_v13 }
 0x2ee   :  { %v3127_v19 = vadd.s32 %v3125_v54, %v3123_v38  ;;  %v3147_v62 = vsel %vm3146_vm1, 1, %v7292_v63  ;;  %v3372_v35 = vand.u32 2139095040, %v6099_v59  ;;  %v3119_v1 = vshrl.u32 %v3114_v23, 16 }
 0x2ef   :  { %v3139_v33 = vshrl.u32 %v3135_v52, 16  ;;  %v3149_v8 = vadd.s32 %v3147_v62, %v3145_v5  ;;  %v6125_v30 = vsel %vm6112_vm3, %v5874_v36, %v2562_v7  ;;  %v3095_v46 = vsel %vm3091_vm7, %v3075_v9, %v6049_v21  ;;  %v6150_v56 = vpop.f32.mrf.mxu2 }
 0x2f0   :  { %v3128_v27 = vadd.s32 %v3127_v19, %v3117_v29  ;;  %v3097_v13 = vsel %vm3093_vm10, %v6051_v41, %v3096_v43  ;;  %v3373_v34 = vshrl.u32 %v3372_v35, 23  ;;  %vm4423_vm8 = vcmp.lt.s32.totalorder %v4422_v14, 0 }
 0x2f1   :  { %v3141_v52 = vshrl.u32 %v3136_v37, 16  ;;  %v3150_v51 = vadd.s32 %v3149_v8, %v3139_v33  ;;  %v6137_v39 = vadd.s32 %v3144_v40, %v3140_v48  ;;  %v6141_v4 = vmul.f32 %v6125_v30, %v6125_v30 }
 0x2f2   :  { %v6135_v23 = vadd.s32 %v3128_v27, %v3119_v1  ;;  %v4433_v3 = vadd.s32 4294967169, %v3373_v34  ;;  %v3098_v21 = vsel %vm3092_vm4, %v3095_v46, %v3097_v13  ;;  %v2858_v41 = vsel %vm4423_vm8, 0, %v4422_v14 }
 0x2f3   :  { %7332 = vst [vmem:[#allocation9_spill] sm:$0xff] %v6141_v4  ;;  %v3151_v53 = vadd.s32 %v3150_v51, %v3141_v52  ;;  %v3152_v37 = vmul.u32 %v6064_v26, %v3098_v21  ;;  %v7252_v32 = vand.u32 2147483647, %v6099_v59  ;;  %v2575_v48 = vmul.f32 -0.00019511016, %v6141_v4  ;;  %v6157_v26 = vpop.f32.mrf.mxu3 }
 0x2f4   :  { %vm3154_vm5 = vc.u32 %v6135_v23, %v6137_v39  ;;  %v3379_v44 = vadd.s32 1, %v4433_v3  ;;  %v2863_v38 = vsub.s32 4294967266, %v2858_v41  ;;  %v2563_v54 = vsub.s32 4, %v5943_v55 }
 0x2f5   :  { %v3155_v28 = vadd.s32 1, %v3151_v53  ;;  %v3376_v14 = vand.u32 8388607, %v7252_v32  ;;  %v2576_v19 = vadd.f32 0.008332121, %v2575_v48  ;;  %v2843_v9 = vadd.s32 %v6028_v15, %v6024_v49 }
 0x2f6   :  { %vm3380_vm6 = vcmp.gt.s32.totalorder %v3379_v44, 0  ;;  %v2859_v62 = vsub.s32 32, %v2858_v41  ;;  %v2864_v35 = vadd.s32 127, %v2863_v38  ;;  %vm2751_vm14 = vcmp.lt.s32.totalorder %v5948_v2, 0 }
 0x2f7   :  { %v3156_v10 = vsel %vm3154_vm5, %v3155_v28, %v3151_v53  ;;  %v3381_v40 = vsel %vm3380_vm6, %v3379_v44, 0  ;;  %v3377_v34 = vor.u32 8388608, %v3376_v14  ;;  %v6192_v14 = vsel %vm2441_vm15, %v2563_v54, %v5943_v55 }
 0x2f8   :  { %v3157_v7 = vadd.s32 %v3156_v10, %v3152_v37  ;;  %v3383_v43 = vand.u32 31, %v3381_v40  ;;  %v6175_v52 = vshrl.u32 %v3381_v40, 5  ;;  %v2865_v21 = vshll.u32 %v2864_v35, 23 }
 0x2f9   :  { %v2861_v37 = vshrl.u32 %v2843_v9, %v2859_v62  ;;  %v2188_v10 = vadd.f32 %v6089_v17, %v5867_v58  ;;  %v2577_v35 = vmul.f32 %v2576_v19, %v6141_v4  ;;  %v6204_v17 = vshll.u32 %v3377_v34, 8 }
 0x2fa   :  { %v3158_v5 = vadd.s32 536870912, %v3157_v7  ;;  %v6155_v29 = vsub.s32 32, %v3383_v43  ;;  %v3386_v27 = vshll.u32 %v7297_v31, %v3383_v43  ;;  %v3389_v8 = vshll.u32 %v7296_v60, %v3383_v43 }
 0x2fb   :  { %v3392_v51 = vshll.u32 %v7298_v57, %v3383_v43  ;;  %v3395_v3 = vshll.u32 %v7299_v16, %v3383_v43  ;;  %v3398_v28 = vshll.u32 %v7325_v20, %v3383_v43  ;;  %vm3401_vm7 = vcmp.lt.s32.totalorder %v6175_v52, 1  ;;  %v6197_v43 = vpop.f32.mrf.mxu2  ;;  %v6213_v54 = vpop.f32.mrf.mxu3 }
 0x2fc   :  { %v6161_v1 = vshrl.u32 %v3158_v5, 30  ;;  %v3387_v33 = vshrl.u32 %v7296_v60, %v6155_v29  ;;  %v3390_v46 = vshrl.u32 %v7298_v57, %v6155_v29  ;;  %v3393_v13 = vshrl.u32 %v7299_v16, %v6155_v29 }
 0x2fd   :  { %v3396_v49 = vshrl.u32 %v7325_v20, %v6155_v29  ;;  %v3399_v15 = vshrl.u32 %v7326_v61, %v6155_v29  ;;  %v2866_v9 = vor.u32 4788187, %v2865_v21  ;;  %vm3404_vm9 = vcmp.lt.s32.totalorder %v6175_v52, 4 }
 0x2fe   :  { %v6179_v53 = vor.u32 %v3387_v33, %v3386_v27  ;;  %v6181_v44 = vor.u32 %v3390_v46, %v3389_v8  ;;  %v6184_v48 = vor.u32 %v3393_v13, %v3392_v51  ;;  %v3160_v40 = vshll.u32 %v6161_v1, 30  ;;  %v2294_v8 = vpop.f32.mrf.mxu0 }
 0x2ff   :  { %v3397_v38 = vor.u32 %v3396_v49, %v3395_v3  ;;  %v3400_v5 = vor.u32 %v3399_v15, %v3398_v28  ;;  %v2860_v27 = vshll.u32 %v6093_v24, %v2858_v41  ;;  %vm3403_vm10 = vcmp.lt.s32.totalorder %v6175_v52, 3 }
 0x300   :  { %v3409_v58 = vsel %vm3401_vm7, %v6179_v53, %v6181_v44  ;;  %v3413_v41 = vsel %vm3401_vm7, %v6181_v44, %v6184_v48  ;;  %v6215_v19 = vsub.s32 %v3157_v7, %v3160_v40  ;;  %vm3402_vm4 = vcmp.lt.s32.totalorder %v6175_v52, 2 }
 0x301   :  { %v2862_v55 = vor.u32 %v2861_v37, %v2860_v27  ;;  %v3410_v24 = vsel %vm3404_vm9, %v3397_v38, 920167782  ;;  %v3414_v33 = vsel %vm3404_vm9, %v3400_v5, 1326507024  ;;  %v2196_v46 = vadd.f32 %v6116_v12, %v5861_v11  ;;  %v2336_v11 = vpop.f32.mrf.mxu1 }
 0x302   :  { %v3411_v62 = vsel %vm3403_vm10, %v6184_v48, %v3410_v24  ;;  %v2253_v13 = vadd.f32 %v6095_v50, %v2188_v10  ;;  %v3415_v7 = vsel %vm3403_vm10, %v3397_v38, %v3414_v33  ;;  %v2578_v15 = vadd.f32 -0.16666654, %v2577_v35 }
 0x303   :  { %v3412_v49 = vsel %vm3402_vm4, %v3409_v58, %v3411_v62  ;;  %v2867_v34 = vand.u32 2147483647, %v2866_v9  ;;  %v3416_v51 = vsel %vm3402_vm4, %v3413_v41, %v3415_v7  ;;  %v3418_v21 = vand.u32 65535, %v6204_v17  ;;  %v2387_v62 = vpop.f32.mrf.mxu2 }
 0x304   :  { %v3443_v3 = vshrl.u32 %v3412_v49, 16  ;;  %v3420_v28 = vand.u32 65535, %v3416_v51  ;;  %v3421_v37 = vshrl.u32 %v3416_v51, 16  ;;  %v2295_v40 = vadd.f32 %v2294_v8, %v2253_v13 }
 0x305   :  { %v2869_v12 = vcvt.s32.f32 %v2862_v55  ;;  %v3163_v50 = vsub.s32 0, %v6215_v19  ;;  %v3419_v10 = vshrl.u32 %v6204_v17, 16  ;;  %v3442_v5 = vand.u32 65535, %v3412_v49 }
 0x306   :  { %vm3162_vm15 = vcmp.lt.s32.totalorder %v6215_v19, 0  ;;  %v3423_v38 = vmul.u32 %v3421_v37, %v3418_v21  ;;  %v3445_v9 = vmul.u32 %v3443_v3, %v3418_v21  ;;  %v2337_v58 = vadd.f32 %v2336_v11, %v2295_v40 }
 0x307   :  { %v2870_v35 = vmul.f32 %v2869_v12, %v2867_v34  ;;  %v3424_v27 = vmul.u32 %v3420_v28, %v3419_v10  ;;  %v3422_v41 = vmul.u32 %v3420_v28, %v3418_v21  ;;  %v2579_v33 = vmul.f32 %v2578_v15, %v6141_v4  ;;  %v2424_v28 = vpop.f32.mrf.mxu3 }
 0x308   :  { %v3426_v55 = vshll.u32 %v3423_v38, 16  ;;  %v3164_v8 = vsel %vm3162_vm15, %v3163_v50, %v6215_v19  ;;  %v2257_v13 = vadd.f32 %v6133_v22, %v2196_v46  ;;  %v3446_v49 = vmul.u32 %v3442_v5, %v3419_v10 }
 0x309   :  { %vm6245_vm11 = vcmp.le.f32.partialorder %v2749_v6, 0.7853982  ;;  %v3425_v34 = vmul.u32 %v3421_v37, %v3419_v10  ;;  %v3428_v51 = vshll.u32 %v3424_v27, 16  ;;  %v2871_v11 = vxor.u32 2147483648, %v2870_v35 }
 0x30a   :  { %vm3430_vm0 = vc.u32 %v3422_v41, %v3426_v55  ;;  %v3432_v40 = vadd.s32 %v3426_v55, %v3422_v41  ;;  %v3448_v15 = vshll.u32 %v3445_v9, 16  ;;  %v2388_v32 = vadd.f32 %v2387_v62, %v2337_v58 }
 0x30b   :  { %v3431_v12 = vsel %vm3430_vm0, 1, %v7292_v63  ;;  %v3165_v50 = vclz %v3164_v8  ;;  %v3444_v22 = vmul.u32 %v3442_v5, %v3418_v21  ;;  %v3427_v46 = vshrl.u32 %v3423_v38, 16  ;;  %v2299_v5 = vpop.f32.mrf.mxu0 }
 0x30c   :  { %v3433_v0 = vadd.s32 %v3431_v12, %v3425_v34  ;;  %vm3434_vm12 = vc.u32 %v3432_v40, %v3428_v51  ;;  %v3447_v24 = vmul.u32 %v3443_v3, %v3419_v10  ;;  %v6251_v36 = vadd.f32 %v2424_v28, %v2388_v32  ;;  %v2342_v51 = vpop.f32.mrf.mxu1 }
 0x30d   :  { %v3435_v6 = vsel %vm3434_vm12, 1, %v7292_v63  ;;  %v3450_v4 = vshll.u32 %v3446_v49, 16  ;;  %vm3452_vm1 = vc.u32 %v3444_v22, %v3448_v15  ;;  %v3454_v41 = vadd.s32 %v3448_v15, %v3444_v22 }
 0x30e   :  { %v3437_v37 = vadd.s32 %v3435_v6, %v3433_v0  ;;  %v2580_v55 = vadd.f32 1.0, %v2579_v33  ;;  %v2872_v59 = vsel %vm2751_vm14, %v2871_v11, %v2870_v35  ;;  %v3406_v58 = vsel %vm3404_vm9, %v6184_v48, 2102212464 }
 0x30f   :  { %v3453_v21 = vsel %vm3452_vm1, 1, %v7292_v63  ;;  %v4428_v38 = vadd.s32 4294967294, %v3165_v50  ;;  %vm3456_vm8 = vc.u32 %v3454_v41, %v3450_v4  ;;  %v2873_v0 = vsub.s32 4, %v6079_v18  ;;  %v2391_v50 = vpop.f32.mrf.mxu2 }
 0x310   :  { %v3438_v62 = vadd.s32 %v3437_v37, %v3427_v46  ;;  %v3455_v3 = vadd.s32 %v3453_v21, %v3447_v24  ;;  %v3385_v32 = vshrl.u32 %v7297_v31, %v6155_v29  ;;  %v3429_v10 = vshrl.u32 %v3424_v27, 16  ;;  %v2428_v37 = vpop.f32.mrf.mxu3 }
 0x311   :  { %v3457_v33 = vsel %vm3456_vm8, 1, %v7292_v63  ;;  %v3449_v35 = vshrl.u32 %v3445_v9, 16  ;;  %v2300_v34 = vadd.f32 %v2299_v5, %v2257_v13  ;;  %v2597_v48 = vand.u32 2139095040, %v6251_v36 }
 0x312   :  { %v3459_v8 = vadd.s32 %v3457_v33, %v3455_v3  ;;  %v6267_v40 = vsel %vm6245_vm11, %v5948_v2, %v2872_v59  ;;  %v3405_v24 = vsel %vm3401_vm7, %v3385_v32, %v6179_v53  ;;  %v3407_v29 = vsel %vm3403_vm10, %v6181_v44, %v3406_v58 }
 0x313   :  { %v6275_v27 = vadd.s32 %v3438_v62, %v3429_v10  ;;  %vm4429_vm5 = vcmp.lt.s32.totalorder %v4428_v38, 0  ;;  %v3451_v9 = vshrl.u32 %v3446_v49, 16  ;;  %v2598_v28 = vshrl.u32 %v2597_v48, 23 }
 0x314   :  { %v3460_v13 = vadd.s32 %v3459_v8, %v3449_v35  ;;  %v2874_v11 = vsel %vm2751_vm14, %v2873_v0, %v6079_v18  ;;  %v6280_v59 = vadd.s32 %v3454_v41, %v3450_v4  ;;  %v2343_v12 = vadd.f32 %v2342_v51, %v2300_v34 }
 0x315   :  { %v6284_v53 = vmul.f32 %v6267_v40, %v6267_v40  ;;  %v3408_v44 = vsel %vm3402_vm4, %v3405_v24, %v3407_v29  ;;  %v4418_v22 = vadd.s32 4294967169, %v2598_v28  ;;  %v7335_v49 = vsel %vm6112_vm3, 0, %v6192_v14 }
 0x316   :  { %v3461_v15 = vadd.s32 %v3460_v13, %v3451_v9  ;;  %v6292_v46 = vadd.s32 3, %v7335_v49  ;;  %v6294_v18 = vsel %vm4429_vm5, 0, %v4428_v38  ;;  %vm3464_vm6 = vc.u32 %v6275_v27, %v6280_v59 }
 0x317   :  { %v6299_v4 = vmul.f32 %v2580_v55, %v6125_v30  ;;  %vm3061_vm7 = vcmp.lt.s32.totalorder %v5960_v45, 0  ;;  %v2604_v6 = vadd.s32 1, %v4418_v22  ;;  %v2876_v42 = vsel %vm6245_vm11, 0, %v2874_v11 }
 0x318   :  { %v3465_v52 = vadd.s32 1, %v3461_v15  ;;  %v3183_v14 = vsub.s32 4, %v6161_v1  ;;  %v3462_v41 = vmul.u32 %v6204_v17, %v3408_v44  ;;  %v2392_v58 = vadd.f32 %v2391_v50, %v2343_v12 }
 0x319   :  { %7336 = vst [vmem:[#allocation10_spill] sm:$0xff] %v6299_v4  ;;  %v2885_v21 = vmul.f32 -0.00019511016, %v6284_v53  ;;  %v3173_v5 = vsub.s32 4294967266, %v6294_v18  ;;  %vm2605_vm3 = vcmp.gt.s32.totalorder %v2604_v6, 0  ;;  %v6312_v0 = vadd.s32 3, %v2876_v42 }
 0x31a   :  { %v3466_v38 = vsel %vm3464_vm6, %v3465_v52, %v3461_v15  ;;  %v7262_v55 = vand.u32 2147483647, %v6251_v36  ;;  %v2606_v62 = vsel %vm2605_vm3, %v2604_v6, 0  ;;  %v6309_v3 = vadd.f32 %v2428_v37, %v2392_v58 }
 0x31b   :  { %v3467_v30 = vadd.s32 %v3466_v38, %v3462_v41  ;;  %v2204_v17 = vadd.f32 %v6150_v56, %v5941_v47  ;;  %v2608_v32 = vand.u32 31, %v2606_v62  ;;  %v7337_v10 = vand.u32 2147483647, %v5960_v45 }
 0x31c   :  { %v3153_v35 = vadd.s32 %v6137_v39, %v6135_v23  ;;  %v3184_v8 = vsel %vm3061_vm7, %v3183_v14, %v6161_v1  ;;  %v2212_v51 = vadd.f32 %v6197_v43, %v5929_v25  ;;  %v2886_v48 = vadd.f32 0.008332121, %v2885_v21 }
 0x31d   :  { %vm6318_vm9 = vcmp.le.f32.partialorder %v7337_v10, 0.7853982  ;;  %v3468_v34 = vadd.s32 536870912, %v3467_v30  ;;  %v3169_v47 = vsub.s32 32, %v6294_v18  ;;  %v3174_v56 = vadd.s32 127, %v3173_v5 }
 0x31e   :  { %v6330_v24 = vsub.s32 32, %v2608_v32  ;;  %v2601_v9 = vand.u32 8388607, %v7262_v55  ;;  %v2611_v23 = vshll.u32 %v7297_v31, %v2608_v32  ;;  %v2907_v39 = vand.u32 2139095040, %v6309_v3 }
 0x31f   :  { %v6332_v29 = vshrl.u32 %v3468_v34, 30  ;;  %v2614_v25 = vshll.u32 %v7296_v60, %v2608_v32  ;;  %v6346_v11 = vshrl.u32 %v2606_v62, 5  ;;  %v2620_v12 = vshll.u32 %v7299_v16, %v2608_v32 }
 0x320   :  { %v2612_v1 = vshrl.u32 %v7296_v60, %v6330_v24  ;;  %v2615_v43 = vshrl.u32 %v7298_v57, %v6330_v24  ;;  %v2618_v13 = vshrl.u32 %v7299_v16, %v6330_v24  ;;  %v2621_v44 = vshrl.u32 %v7325_v20, %v6330_v24 }
 0x321   :  { %v3470_v28 = vshll.u32 %v6332_v29, 30  ;;  %v2617_v22 = vshll.u32 %v7298_v57, %v2608_v32  ;;  %v2624_v49 = vshrl.u32 %v7326_v61, %v6330_v24  ;;  %v3171_v52 = vshrl.u32 %v3153_v35, %v3169_v47 }
 0x322   :  { %v2613_v15 = vor.u32 %v2612_v1, %v2611_v23  ;;  %v2616_v50 = vor.u32 %v2615_v43, %v2614_v25  ;;  %v2602_v6 = vor.u32 8388608, %v2601_v9  ;;  %v2622_v37 = vor.u32 %v2621_v44, %v2620_v12 }
 0x323   :  { %v2623_v42 = vshll.u32 %v7325_v20, %v2608_v32  ;;  %v3170_v14 = vshll.u32 %v6215_v19, %v6294_v18  ;;  %v3175_v41 = vshll.u32 %v3174_v56, 23  ;;  %v6358_v58 = vadd.f32 %v6157_v26, %v2204_v17 }
 0x324   :  { %v2619_v21 = vor.u32 %v2618_v13, %v2617_v22  ;;  %v6360_v5 = vsub.s32 %v3467_v30, %v3470_v28  ;;  %vm2626_vm10 = vcmp.lt.s32.totalorder %v6346_v11, 1  ;;  %v2908_v62 = vshrl.u32 %v2907_v39, 23 }
 0x325   :  { %v2625_v38 = vor.u32 %v2624_v49, %v2623_v42  ;;  %v2887_v10 = vmul.f32 %v2886_v48, %v6284_v53  ;;  %v3186_v35 = vsel %vm6318_vm9, 0, %v3184_v8  ;;  %vm2629_vm4 = vcmp.lt.s32.totalorder %v6346_v11, 4 }
 0x326   :  { %v2634_v19 = vsel %vm2626_vm10, %v2613_v15, %v2616_v50  ;;  %v6369_v18 = vor.u32 %v3171_v52, %v3170_v14  ;;  %vm2628_vm15 = vcmp.lt.s32.totalorder %v6346_v11, 3  ;;  %v2635_v26 = vsel %vm2629_vm4, %v2622_v37, 920167782 }
 0x327   :  { %v6374_v30 = vshll.u32 %v2602_v6, 8  ;;  %v6376_v17 = vor.u32 4788187, %v3175_v41  ;;  %vm2627_vm14 = vcmp.lt.s32.totalorder %v6346_v11, 2  ;;  %v2636_v32 = vsel %vm2628_vm15, %v2619_v21, %v2635_v26 }
 0x328   :  { %v2638_v8 = vsel %vm2626_vm10, %v2616_v50, %v2619_v21  ;;  %v3473_v34 = vsub.s32 0, %v6360_v5  ;;  %v2637_v48 = vsel %vm2627_vm14, %v2634_v19, %v2636_v32  ;;  %v2639_v47 = vsel %vm2629_vm4, %v2625_v38, 1326507024 }
 0x329   :  { %v4424_v56 = vadd.s32 4294967169, %v2908_v62  ;;  %vm3472_vm11 = vcmp.lt.s32.totalorder %v6360_v5, 0  ;;  %v2640_v9 = vsel %vm2628_vm15, %v2622_v37, %v2639_v47  ;;  %v2667_v23 = vand.u32 65535, %v2637_v48 }
 0x32a   :  { %v2668_v39 = vshrl.u32 %v2637_v48, 16  ;;  %v6391_v1 = vadd.s32 3, %v3186_v35  ;;  %v6394_v25 = vadd.f32 %v6213_v54, %v2212_v51  ;;  %v2641_v43 = vsel %vm2627_vm14, %v2638_v8, %v2640_v9 }
 0x32b   :  { %v2643_v13 = vand.u32 65535, %v6374_v30  ;;  %v2888_v28 = vadd.f32 -0.16666654, %v2887_v10  ;;  %v2644_v12 = vshrl.u32 %v6374_v30, 16  ;;  %v2645_v44 = vand.u32 65535, %v2641_v43 }
 0x32c   :  { %v2646_v22 = vshrl.u32 %v2641_v43, 16  ;;  %v3474_v49 = vsel %vm3472_vm11, %v3473_v34, %v6360_v5  ;;  %v2631_v52 = vsel %vm2629_vm4, %v2619_v21, 2102212464  ;;  %v2914_v37 = vadd.s32 1, %v4424_v56 }
 0x32d   :  { %v2670_v6 = vmul.u32 %v2668_v39, %v2643_v13  ;;  %v3177_v54 = vand.u32 2147483647, %v6376_v17  ;;  %v3179_v51 = vcvt.s32.f32 %v6369_v18  ;;  %v2610_v42 = vshrl.u32 %v7297_v31, %v6330_v24 }
 0x32e   :  { %v2671_v14 = vmul.u32 %v2667_v23, %v2644_v12  ;;  %v2648_v41 = vmul.u32 %v2646_v22, %v2643_v13  ;;  %v2649_v38 = vmul.u32 %v2645_v44, %v2644_v12  ;;  %v7261_v10 = vand.u32 2147483647, %v6309_v3 }
 0x32f   :  { %v2673_v62 = vshll.u32 %v2670_v6, 16  ;;  %v3475_v35 = vclz %v3474_v49  ;;  %v2630_v19 = vsel %vm2626_vm10, %v2610_v42, %v2613_v15  ;;  %v2632_v21 = vsel %vm2628_vm15, %v2616_v50, %v2631_v52 }
 0x330   :  { %v2669_v26 = vmul.u32 %v2667_v23, %v2643_v13  ;;  %v2647_v17 = vmul.u32 %v2645_v44, %v2643_v13  ;;  %v2651_v32 = vshll.u32 %v2648_v41, 16  ;;  %v2672_v18 = vmul.u32 %v2668_v39, %v2644_v12 }
 0x331   :  { %vm2915_vm0 = vcmp.gt.s32.totalorder %v2914_v37, 0  ;;  %v2650_v8 = vmul.u32 %v2646_v22, %v2644_v12  ;;  %v2653_v24 = vshll.u32 %v2649_v38, 16  ;;  %v2675_v34 = vshll.u32 %v2671_v14, 16 }
 0x332   :  { %vm2677_vm12 = vc.u32 %v2669_v26, %v2673_v62  ;;  %vm2655_vm1 = vc.u32 %v2647_v17, %v2651_v32  ;;  %v2657_v48 = vadd.s32 %v2651_v32, %v2647_v17  ;;  %v2679_v56 = vadd.s32 %v2673_v62, %v2669_v26 }
 0x333   :  { %v2678_v47 = vsel %vm2677_vm12, 1, %v7292_v63  ;;  %v2633_v15 = vsel %vm2627_vm14, %v2630_v19, %v2632_v21  ;;  %v2656_v9 = vsel %vm2655_vm1, 1, %v7292_v63  ;;  %v2911_v23 = vand.u32 8388607, %v7261_v10 }
 0x334   :  { %v2680_v50 = vadd.s32 %v2678_v47, %v2672_v18  ;;  %v4434_v39 = vadd.s32 4294967294, %v3475_v35  ;;  %v2658_v43 = vadd.s32 %v2656_v9, %v2650_v8  ;;  %vm2659_vm8 = vc.u32 %v2657_v48, %v2653_v24 }
 0x335   :  { %vm2681_vm5 = vc.u32 %v2679_v56, %v2675_v34  ;;  %v2660_v13 = vsel %vm2659_vm8, 1, %v7292_v63  ;;  %v2674_v12 = vshrl.u32 %v2670_v6, 16  ;;  %v2916_v22 = vsel %vm2915_vm0, %v2914_v37, 0 }
 0x336   :  { %v2682_v44 = vsel %vm2681_vm5, 1, %v7292_v63  ;;  %v2652_v49 = vshrl.u32 %v2648_v41, 16  ;;  %v2662_v11 = vadd.s32 %v2660_v13, %v2658_v43  ;;  %v2918_v42 = vand.u32 31, %v2916_v22 }
 0x337   :  { %v2684_v52 = vadd.s32 %v2682_v44, %v2680_v50  ;;  %v2889_v62 = vmul.f32 %v2888_v28, %v6284_v53  ;;  %v3180_v19 = vmul.f32 %v3179_v51, %v3177_v54  ;;  %v2654_v21 = vshrl.u32 %v2649_v38, 16 }
 0x338   :  { %v2912_v26 = vor.u32 8388608, %v2911_v23  ;;  %v2663_v35 = vadd.s32 %v2662_v11, %v2652_v49  ;;  %v2676_v17 = vshrl.u32 %v2671_v14, 16  ;;  %v6422_v18 = vsub.s32 32, %v2918_v42 }
 0x339   :  { %v2685_v32 = vadd.s32 %v2684_v52, %v2674_v12  ;;  %vm4435_vm6 = vcmp.lt.s32.totalorder %v4434_v39, 0  ;;  %v6424_v6 = vadd.s32 %v2679_v56, %v2675_v34  ;;  %v2687_v8 = vmul.u32 %v6374_v30, %v2633_v15  ;;  %v2304_v56 = vpop.f32.mrf.mxu0 }
 0x33a   :  { %v2921_v37 = vshll.u32 %v7297_v31, %v2918_v42  ;;  %v6428_v41 = vadd.s32 %v2663_v35, %v2654_v21  ;;  %v2922_v28 = vshrl.u32 %v7296_v60, %v6422_v18  ;;  %v2924_v54 = vshll.u32 %v7296_v60, %v2918_v42  ;;  %v2348_v35 = vpop.f32.mrf.mxu1 }
 0x33b   :  { %v2686_v24 = vadd.s32 %v2685_v32, %v2676_v17  ;;  %v2925_v51 = vshrl.u32 %v7298_v57, %v6422_v18  ;;  %v2927_v14 = vshll.u32 %v7298_v57, %v2918_v42  ;;  %v2928_v38 = vshrl.u32 %v7299_v16, %v6422_v18 }
 0x33c   :  { %v2931_v30 = vshrl.u32 %v7325_v20, %v6422_v18  ;;  %v3478_v34 = vsel %vm4435_vm6, 0, %v4434_v39  ;;  %vm2689_vm3 = vc.u32 %v6428_v41, %v6424_v6  ;;  %v2930_v47 = vshll.u32 %v7299_v16, %v2918_v42 }
 0x33d   :  { %v2690_v48 = vadd.s32 1, %v2686_v24  ;;  %v6443_v15 = vshrl.u32 %v2916_v22, 5  ;;  %v6445_v9 = vor.u32 %v2922_v28, %v2921_v37  ;;  %v6447_v50 = vor.u32 %v2925_v51, %v2924_v54 }
 0x33e   :  { %v6449_v23 = vor.u32 %v2928_v38, %v2927_v14  ;;  %v2932_v13 = vor.u32 %v2931_v30, %v2930_v47  ;;  %v2933_v12 = vshll.u32 %v7325_v20, %v2918_v42  ;;  %v2934_v39 = vshrl.u32 %v7326_v61, %v6422_v18  ;;  %v2395_v38 = vpop.f32.mrf.mxu2 }
 0x33f   :  { %v2691_v43 = vsel %vm2689_vm3, %v2690_v48, %v2686_v24  ;;  %v6454_v44 = vadd.f32 1.0, %v2889_v62  ;;  %v3181_v49 = vxor.u32 2147483648, %v3180_v19  ;;  %v3483_v11 = vsub.s32 4294967266, %v3478_v34 }
 0x340   :  { %v2692_v52 = vadd.s32 %v2691_v43, %v2687_v8  ;;  %v3479_v22 = vsub.s32 32, %v3478_v34  ;;  %v2305_v21 = vadd.f32 %v2304_v56, %v6358_v58  ;;  %v2935_v17 = vor.u32 %v2934_v39, %v2933_v12  ;;  %v2432_v39 = vpop.f32.mrf.mxu3 }
 0x341   :  { %v6457_v32 = vshll.u32 %v2912_v26, 8  ;;  %vm2936_vm10 = vcmp.lt.s32.totalorder %v6443_v15, 1  ;;  %vm2938_vm4 = vcmp.lt.s32.totalorder %v6443_v15, 3  ;;  %vm2939_vm15 = vcmp.lt.s32.totalorder %v6443_v15, 4 }
 0x342   :  { %v2693_v37 = vadd.s32 536870912, %v2692_v52  ;;  %v2944_v42 = vsel %vm2936_vm10, %v6445_v9, %v6447_v50  ;;  %v2945_v62 = vsel %vm2939_vm15, %v2932_v13, 920167782  ;;  %v2948_v58 = vsel %vm2936_vm10, %v6447_v50, %v6449_v23 }
 0x343   :  { %v2949_v26 = vsel %vm2939_vm15, %v2935_v17, 1326507024  ;;  %v3484_v8 = vadd.s32 127, %v3483_v11  ;;  %v2349_v28 = vadd.f32 %v2348_v35, %v2305_v21  ;;  %v2946_v54 = vsel %vm2938_vm4, %v6449_v23, %v2945_v62 }
 0x344   :  { %v6474_v24 = vshrl.u32 %v2693_v37, 30  ;;  %v3182_v51 = vsel %vm3061_vm7, %v3181_v49, %v3180_v19  ;;  %v3463_v14 = vadd.s32 %v6280_v59, %v6275_v27  ;;  %vm2937_vm14 = vcmp.lt.s32.totalorder %v6443_v15, 2 }
 0x345   :  { %v2950_v30 = vsel %vm2938_vm4, %v2932_v13, %v2949_v26  ;;  %v2947_v47 = vsel %vm2937_vm14, %v2944_v42, %v2946_v54  ;;  %v2953_v43 = vand.u32 65535, %v6457_v32  ;;  %v2954_v12 = vshrl.u32 %v6457_v32, 16 }
 0x346   :  { %v2695_v48 = vshll.u32 %v6474_v24, 30  ;;  %v2951_v56 = vsel %vm2937_vm14, %v2948_v58, %v2950_v30  ;;  %v3481_v19 = vshrl.u32 %v3463_v14, %v3479_v22  ;;  %v6496_v13 = vsel %vm6318_vm9, %v5960_v45, %v3182_v51 }
 0x347   :  { %v2955_v27 = vand.u32 65535, %v2951_v56  ;;  %v2956_v59 = vshrl.u32 %v2951_v56, 16  ;;  %v3485_v49 = vshll.u32 %v3484_v8, 23  ;;  %v2396_v21 = vadd.f32 %v2395_v38, %v2349_v28 }
 0x348   :  { %v6498_v11 = vsub.s32 %v2692_v52, %v2695_v48  ;;  %v3480_v35 = vshll.u32 %v6360_v5, %v3478_v34  ;;  %v2978_v42 = vshrl.u32 %v2947_v47, 16  ;;  %v2977_v62 = vand.u32 65535, %v2947_v47 }
 0x349   :  { %v2958_v17 = vmul.u32 %v2956_v59, %v2953_v43  ;;  %v2959_v37 = vmul.u32 %v2955_v27, %v2954_v12  ;;  %v6503_v58 = vadd.f32 %v2432_v39, %v2396_v21  ;;  %v6507_v33 = vmul.f32 %v6496_v13, %v6496_v13 }
 0x34a   :  { %vm2697_vm7 = vcmp.lt.s32.totalorder %v6498_v11, 0  ;;  %v2698_v22 = vsub.s32 0, %v6498_v11  ;;  %v3482_v26 = vor.u32 %v3481_v19, %v3480_v35  ;;  %v2957_v52 = vmul.u32 %v2955_v27, %v2953_v43 }
 0x34b   :  { %v2961_v8 = vshll.u32 %v2958_v17, 16  ;;  %v3486_v28 = vor.u32 4788187, %v3485_v49  ;;  %v2960_v34 = vmul.u32 %v2956_v59, %v2954_v12  ;;  %v2963_v54 = vshll.u32 %v2959_v37, 16 }
 0x34c   :  { %v2699_v5 = vsel %vm2697_vm7, %v2698_v22, %v6498_v11  ;;  %v2980_v38 = vmul.u32 %v2978_v42, %v2953_v43  ;;  %v2979_v48 = vmul.u32 %v2977_v62, %v2953_v43  ;;  %v2981_v47 = vmul.u32 %v2977_v62, %v2954_v12 }
 0x34d   :  { %v2700_v51 = vclz %v2699_v5  ;;  %vm2965_vm9 = vc.u32 %v2957_v52, %v2961_v8  ;;  %v2967_v14 = vadd.s32 %v2961_v8, %v2957_v52  ;;  %v3217_v56 = vand.u32 2139095040, %v6503_v58 }
 0x34e   :  { %v2966_v30 = vsel %vm2965_vm9, 1, %v7292_v63  ;;  %v2983_v19 = vshll.u32 %v2980_v38, 16  ;;  %v2920_v27 = vshrl.u32 %v7297_v31, %v6422_v18  ;;  %v2941_v59 = vsel %vm2939_vm15, %v6449_v23, 2102212464 }
 0x34f   :  { %v4419_v39 = vadd.s32 4294967294, %v2700_v51  ;;  %v2968_v21 = vadd.s32 %v2966_v30, %v2960_v34  ;;  %vm2969_vm11 = vc.u32 %v2967_v14, %v2963_v54  ;;  %v2962_v49 = vshrl.u32 %v2958_v17, 16 }
 0x350   :  { %v2970_v35 = vsel %vm2969_vm11, 1, %v7292_v63  ;;  %v2982_v52 = vmul.u32 %v2978_v42, %v2954_v12  ;;  %vm2987_vm0 = vc.u32 %v2979_v48, %v2983_v19  ;;  %v2989_v43 = vadd.s32 %v2983_v19, %v2979_v48  ;;  %v2309_v12 = vpop.f32.mrf.mxu0 }
 0x351   :  { %v2972_v22 = vadd.s32 %v2970_v35, %v2968_v21  ;;  %vm4420_vm12 = vcmp.lt.s32.totalorder %v4419_v39, 0  ;;  %v2985_v62 = vshll.u32 %v2981_v47, 16  ;;  %v2988_v8 = vsel %vm2987_vm0, 1, %v7292_v63 }
 0x352   :  { %v3218_v5 = vshrl.u32 %v3217_v56, 23  ;;  %v3487_v34 = vand.u32 2147483647, %v3486_v28  ;;  %v3489_v54 = vcvt.s32.f32 %v3482_v26  ;;  %v2940_v18 = vsel %vm2936_vm10, %v2920_v27, %v6445_v9 }
 0x353   :  { %v2973_v51 = vadd.s32 %v2972_v22, %v2962_v49  ;;  %v2942_v23 = vsel %vm2938_vm4, %v6447_v50, %v2941_v59  ;;  %v2990_v17 = vadd.s32 %v2988_v8, %v2982_v52  ;;  %vm2991_vm1 = vc.u32 %v2989_v43, %v2985_v62 }
 0x354   :  { %v4430_v42 = vadd.s32 4294967169, %v3218_v5  ;;  %v6525_v14 = vsel %vm4420_vm12, 0, %v4419_v39  ;;  %v2964_v30 = vshrl.u32 %v2959_v37, 16  ;;  %v2992_v48 = vsel %vm2991_vm1, 1, %v7292_v63  ;;  %v2354_v39 = vpop.f32.mrf.mxu1 }
 0x355   :  { %v7260_v26 = vand.u32 2147483647, %v6503_v58  ;;  %v3195_v28 = vmul.f32 -0.00019511016, %v6507_v33  ;;  %v2984_v56 = vshrl.u32 %v2980_v38, 16  ;;  %v2994_v9 = vadd.s32 %v2992_v48, %v2990_v17 }
 0x356   :  { %v3224_v21 = vadd.s32 1, %v4430_v42  ;;  %v3490_v19 = vmul.f32 %v3489_v54, %v3487_v34  ;;  %v2943_v50 = vsel %vm2937_vm14, %v2940_v18, %v2942_v23  ;;  %v6532_v27 = vadd.s32 %v2973_v51, %v2964_v30  ;;  %v7340_v54 = vld [vmem:[#allocation8_spill] sm:$0xff] }
 0x357   :  { %v2310_v59 = vadd.f32 %v2309_v12, %v6394_v25  ;;  %v2708_v37 = vsub.s32 4294967266, %v6525_v14  ;;  %v2986_v49 = vshrl.u32 %v2981_v47, 16  ;;  %v2995_v35 = vadd.s32 %v2994_v9, %v2984_v56  ;;  %v2399_v9 = vpop.f32.mrf.mxu2 }
 0x358   :  { %vm3225_vm8 = vcmp.gt.s32.totalorder %v3224_v21, 0  ;;  %v6538_v22 = vmul.f32 %v6454_v44, %v6267_v40  ;;  %v6540_v38 = vadd.s32 %v2989_v43, %v2985_v62  ;;  %v3221_v15 = vand.u32 8388607, %v7260_v26 }
 0x359   :  { %v3226_v52 = vsel %vm3225_vm8, %v3224_v21, 0  ;;  %v3196_v8 = vadd.f32 0.008332121, %v3195_v28  ;;  %v2996_v5 = vadd.s32 %v2995_v35, %v2986_v49  ;;  %v2355_v34 = vadd.f32 %v2354_v39, %v2310_v59 }
 0x35a   :  { %v3228_v25 = vand.u32 31, %v3226_v52  ;;  %vm3371_vm5 = vcmp.lt.s32.totalorder %v7340_v54, 0  ;;  %v3491_v18 = vxor.u32 2147483648, %v3490_v19  ;;  %v2688_v47 = vadd.s32 %v6424_v6, %v6428_v41 }
 0x35b   :  { %v2997_v51 = vmul.u32 %v6457_v32, %v2943_v50  ;;  %vm2999_vm6 = vc.u32 %v6532_v27, %v6540_v38  ;;  %v2704_v40 = vsub.s32 32, %v6525_v14  ;;  %v2709_v44 = vadd.s32 127, %v2708_v37 }
 0x35c   :  { %v3000_v43 = vadd.s32 1, %v2996_v5  ;;  %v6551_v62 = vsub.s32 32, %v3228_v25  ;;  %v3222_v23 = vor.u32 8388608, %v3221_v15  ;;  %v6553_v17 = vshrl.u32 %v3226_v52, 5 }
 0x35d   :  { %v3231_v12 = vshll.u32 %v7297_v31, %v3228_v25  ;;  %v3234_v42 = vshll.u32 %v7296_v60, %v3228_v25  ;;  %v3237_v32 = vshll.u32 %v7298_v57, %v3228_v25  ;;  %v7341_v48 = vand.u32 2147483647, %v7340_v54 }
 0x35e   :  { %v3001_v30 = vsel %vm2999_vm6, %v3000_v43, %v2996_v5  ;;  %v3232_v6 = vshrl.u32 %v7296_v60, %v6551_v62  ;;  %v3235_v41 = vshrl.u32 %v7298_v57, %v6551_v62  ;;  %v3238_v21 = vshrl.u32 %v7299_v16, %v6551_v62 }
 0x35f   :  { %vm6564_vm3 = vcmp.le.f32.partialorder %v7341_v48, 0.7853982  ;;  %v3002_v56 = vadd.s32 %v3001_v30, %v2997_v51  ;;  %v3240_v50 = vshll.u32 %v7299_v16, %v3228_v25  ;;  %v3241_v59 = vshrl.u32 %v7325_v20, %v6551_v62 }
 0x360   :  { %v6573_v39 = vor.u32 %v3232_v6, %v3231_v12  ;;  %v6575_v37 = vor.u32 %v3235_v41, %v3234_v42  ;;  %v3243_v49 = vshll.u32 %v7325_v20, %v3228_v25  ;;  %v3244_v35 = vshrl.u32 %v7326_v61, %v6551_v62 }
 0x361   :  { %v2706_v15 = vshrl.u32 %v2688_v47, %v2704_v40  ;;  %v2710_v52 = vshll.u32 %v2709_v44, 23  ;;  %v3003_v5 = vadd.s32 536870912, %v3002_v56  ;;  %v3242_v51 = vor.u32 %v3241_v59, %v3240_v50 }
 0x362   :  { %v3197_v43 = vmul.f32 %v3196_v8, %v6507_v33  ;;  %v2400_v30 = vadd.f32 %v2399_v9, %v2355_v34  ;;  %v6581_v48 = vor.u32 %v3238_v21, %v3237_v32  ;;  %v3245_v7 = vor.u32 %v3244_v35, %v3243_v49 }
 0x363   :  { %v2705_v12 = vshll.u32 %v6498_v11, %v6525_v14  ;;  %v6585_v42 = vshrl.u32 %v3003_v5, 30  ;;  %vm3246_vm10 = vcmp.lt.s32.totalorder %v6553_v17, 1  ;;  %vm3249_vm4 = vcmp.lt.s32.totalorder %v6553_v17, 4  ;;  %v2436_v11 = vpop.f32.mrf.mxu3 }
 0x364   :  { %v3492_v25 = vsel %vm3371_vm5, %v3491_v18, %v3490_v19  ;;  %v3254_v8 = vsel %vm3246_vm10, %v6573_v39, %v6575_v37  ;;  %v3255_v34 = vsel %vm3249_vm4, %v3242_v51, 920167782  ;;  %v6597_v47 = vshll.u32 %v3222_v23, 8 }
 0x365   :  { %v2707_v14 = vor.u32 %v2706_v15, %v2705_v12  ;;  %v2711_v40 = vor.u32 4788187, %v2710_v52  ;;  %v3005_v44 = vshll.u32 %v6585_v42, 30  ;;  %vm3248_vm15 = vcmp.lt.s32.totalorder %v6553_v17, 3 }
 0x366   :  { %v6601_v6 = vadd.f32 -0.16666654, %v3197_v43  ;;  %vm3247_vm14 = vcmp.lt.s32.totalorder %v6553_v17, 2  ;;  %v3256_v19 = vsel %vm3248_vm15, %v6581_v48, %v3255_v34  ;;  %v3259_v18 = vsel %vm3249_vm4, %v3245_v7, 1326507024 }
 0x367   :  { %v3006_v23 = vsub.s32 %v3002_v56, %v3005_v44  ;;  %v3257_v41 = vsel %vm3247_vm14, %v3254_v8, %v3256_v19  ;;  %v3258_v32 = vsel %vm3246_vm10, %v6575_v37, %v6581_v48  ;;  %v6615_v9 = vadd.f32 %v2436_v11, %v2400_v30 }
 0x368   :  { %v6620_v21 = vsel %vm6564_vm3, %v7340_v54, %v3492_v25  ;;  %v3260_v50 = vsel %vm3248_vm15, %v3242_v51, %v3259_v18  ;;  %v3263_v7 = vand.u32 65535, %v6597_v47  ;;  %v3288_v56 = vshrl.u32 %v3257_v41, 16 }
 0x369   :  { %v2712_v59 = vand.u32 2147483647, %v2711_v40  ;;  %v2714_v49 = vcvt.s32.f32 %v2707_v14  ;;  %vm3007_vm7 = vcmp.lt.s32.totalorder %v3006_v23, 0  ;;  %v3008_v35 = vsub.s32 0, %v3006_v23 }
 0x36a   :  { %v3261_v15 = vsel %vm3247_vm14, %v3258_v32, %v3260_v50  ;;  %v3264_v52 = vshrl.u32 %v6597_v47, 16  ;;  %v3287_v5 = vand.u32 65535, %v3257_v41  ;;  %v3290_v43 = vmul.u32 %v3288_v56, %v3263_v7 }
 0x36b   :  { %v3009_v30 = vsel %vm3007_vm7, %v3008_v35, %v3006_v23  ;;  %v3265_v12 = vand.u32 65535, %v3261_v15  ;;  %v3266_v25 = vshrl.u32 %v3261_v15, 16  ;;  %v3527_v8 = vand.u32 2139095040, %v6615_v9 }
 0x36c   :  { %v6631_v51 = vmul.f32 %v6620_v21, %v6620_v21  ;;  %v2998_v34 = vadd.s32 %v6540_v38, %v6532_v27  ;;  %v3010_v11 = vclz %v3009_v30  ;;  %v3293_v14 = vshll.u32 %v3290_v43, 16 }
 0x36d   :  { %v6635_v40 = vmul.f32 %v2714_v49, %v2712_v59  ;;  %v3268_v44 = vmul.u32 %v3266_v25, %v3263_v7  ;;  %v3269_v19 = vmul.u32 %v3265_v12, %v3264_v52  ;;  %v3230_v32 = vshrl.u32 %v7297_v31, %v6551_v62 }
 0x36e   :  { %v4425_v41 = vadd.s32 4294967294, %v3010_v11  ;;  %v3289_v50 = vmul.u32 %v3287_v5, %v3263_v7  ;;  %v3291_v35 = vmul.u32 %v3287_v5, %v3264_v52  ;;  %v3267_v15 = vmul.u32 %v3265_v12, %v3263_v7 }
 0x36f   :  { %v3271_v26 = vshll.u32 %v3268_v44, 16  ;;  %v3292_v10 = vmul.u32 %v3288_v56, %v3264_v52  ;;  %v3528_v55 = vshrl.u32 %v3527_v8, 23  ;;  %v3270_v27 = vmul.u32 %v3266_v25, %v3264_v52 }
 0x370   :  { %vm4426_vm9 = vcmp.lt.s32.totalorder %v4425_v41, 0  ;;  %v3273_v38 = vshll.u32 %v3269_v19, 16  ;;  %vm3297_vm11 = vc.u32 %v3289_v50, %v3293_v14  ;;  %v3299_v30 = vadd.s32 %v3293_v14, %v3289_v50 }
 0x371   :  { %v3013_v59 = vsel %vm4426_vm9, 0, %v4425_v41  ;;  %vm3275_vm0 = vc.u32 %v3267_v15, %v3271_v26  ;;  %v3277_v49 = vadd.s32 %v3271_v26, %v3267_v15  ;;  %v3295_v2 = vshll.u32 %v3291_v35, 16 }
 0x372   :  { %v3014_v4 = vsub.s32 32, %v3013_v59  ;;  %v3018_v18 = vsub.s32 4294967266, %v3013_v59  ;;  %v3276_v11 = vsel %vm3275_vm0, 1, %v7292_v63  ;;  %v3015_v62 = vshll.u32 %v3006_v23, %v3013_v59 }
 0x373   :  { %v3278_v45 = vadd.s32 %v3276_v11, %v3270_v27  ;;  %vm3279_vm12 = vc.u32 %v3277_v49, %v3273_v38  ;;  %v3298_v7 = vsel %vm3297_vm11, 1, %v7292_v63  ;;  %v3251_v26 = vsel %vm3249_vm4, %v6581_v48, 2102212464 }
 0x374   :  { %v3016_v56 = vshrl.u32 %v2998_v34, %v3014_v4  ;;  %v3019_v5 = vadd.s32 127, %v3018_v18  ;;  %v3280_v52 = vsel %vm3279_vm12, 1, %v7292_v63  ;;  %v3300_v12 = vadd.s32 %v3298_v7, %v3292_v10 }
 0x375   :  { %v3272_v25 = vshrl.u32 %v3268_v44, 16  ;;  %v3282_v8 = vadd.s32 %v3280_v52, %v3278_v45  ;;  %vm3301_vm1 = vc.u32 %v3299_v30, %v3295_v2  ;;  %v4436_v50 = vadd.s32 4294967169, %v3528_v55 }
 0x376   :  { %v3017_v14 = vor.u32 %v3016_v56, %v3015_v62  ;;  %v3020_v41 = vshll.u32 %v3019_v5, 23  ;;  %v3302_v23 = vsel %vm3301_vm1, 1, %v7292_v63  ;;  %v3274_v15 = vshrl.u32 %v3269_v19, 16 }
 0x377   :  { %v3283_v27 = vadd.s32 %v3282_v8, %v3272_v25  ;;  %v3294_v38 = vshrl.u32 %v3290_v43, 16  ;;  %v3304_v4 = vadd.s32 %v3302_v23, %v3300_v12  ;;  %v3250_v10 = vsel %vm3246_vm10, %v3230_v32, %v6573_v39 }
 0x378   :  { %v3021_v34 = vor.u32 4788187, %v3020_v41  ;;  %v3252_v48 = vsel %vm3248_vm15, %v6575_v37, %v3251_v26  ;;  %v3534_v45 = vadd.s32 1, %v4436_v50  ;;  %v2716_v44 = vxor.u32 2147483648, %v6635_v40 }
 0x379   :  { %v6654_v18 = vadd.s32 %v3283_v27, %v3274_v15  ;;  %v3296_v59 = vshrl.u32 %v3291_v35, 16  ;;  %v3305_v55 = vadd.s32 %v3304_v4, %v3294_v38  ;;  %v3024_v49 = vcvt.s32.f32 %v3017_v14 }
 0x37a   :  { %v3022_v19 = vand.u32 2147483647, %v3021_v34  ;;  %v6656_v43 = vadd.s32 %v3299_v30, %v3295_v2  ;;  %vm3535_vm8 = vcmp.gt.s32.totalorder %v3534_v45, 0  ;;  %v3253_v11 = vsel %vm3247_vm14, %v3250_v10, %v3252_v48 }
 0x37b   :  { %v3306_v39 = vadd.s32 %v3305_v55, %v3296_v59  ;;  %v7344_v32 = vand.u32 2147483647, %v6615_v9  ;;  %v3536_v37 = vsel %vm3535_vm8, %v3534_v45, 0  ;;  %v7345_v7 = vand.u32 2147483647, %v6251_v36 }
 0x37c   :  { %v3025_v35 = vmul.f32 %v3024_v49, %v3022_v19  ;;  %vm3309_vm10 = vc.u32 %v6654_v18, %v6656_v43  ;;  %v3538_v2 = vand.u32 31, %v3536_v37  ;;  %v3199_v17 = vmul.f32 %v6601_v6, %v6507_v33 }
 0x37d   :  { %v3531_v62 = vand.u32 8388607, %v7344_v32  ;;  %vm6664_vm6 = vcmp.le.f32.partialorder %v7345_v7, 0.7853982  ;;  %vm2596_vm4 = vcmp.lt.s32.totalorder %v6251_v36, 0  ;;  %vm2906_vm15 = vcmp.lt.s32.totalorder %v6309_v3, 0 }
 0x37e   :  { %v3310_v30 = vadd.s32 1, %v3306_v39  ;;  %v3505_v5 = vmul.f32 -0.00019511016, %v6631_v51  ;;  %v2717_v52 = vsel %vm2596_vm4, %v2716_v44, %v6635_v40  ;;  %v3307_v12 = vmul.u32 %v6597_v47, %v3253_v11 }
 0x37f   :  { %v6679_v26 = vsub.s32 32, %v3538_v2  ;;  %v3026_v25 = vxor.u32 2147483648, %v3025_v35  ;;  %v3532_v14 = vor.u32 8388608, %v3531_v62  ;;  %v6681_v41 = vshrl.u32 %v3536_v37, 5 }
 0x380   :  { %v3311_v8 = vsel %vm3309_vm10, %v3310_v30, %v3306_v39  ;;  %v3541_v23 = vshll.u32 %v7297_v31, %v3538_v2  ;;  %v3544_v15 = vshll.u32 %v7296_v60, %v3538_v2  ;;  %v3550_v27 = vshll.u32 %v7299_v16, %v3538_v2 }
 0x381   :  { %v3312_v6 = vadd.s32 %v3311_v8, %v3307_v12  ;;  %v3542_v50 = vshrl.u32 %v7296_v60, %v6679_v26  ;;  %v3545_v40 = vshrl.u32 %v7298_v57, %v6679_v26  ;;  %v3548_v47 = vshrl.u32 %v7299_v16, %v6679_v26 }
 0x382   :  { %v3551_v38 = vshrl.u32 %v7325_v20, %v6679_v26  ;;  %v3547_v34 = vshll.u32 %v7298_v57, %v3538_v2  ;;  %v3553_v10 = vshll.u32 %v7325_v20, %v3538_v2  ;;  %v3554_v48 = vshrl.u32 %v7326_v61, %v6679_v26 }
 0x383   :  { %v3313_v4 = vadd.s32 536870912, %v3312_v6  ;;  %v6701_v45 = vsel %vm6664_vm6, %v6251_v36, %v2717_v52  ;;  %v3027_v44 = vsel %vm2906_vm15, %v3026_v25, %v3025_v35  ;;  %v6705_v59 = vor.u32 %v3542_v50, %v3541_v23 }
 0x384   :  { %v3552_v55 = vor.u32 %v3551_v38, %v3550_v27  ;;  %v6709_v49 = vor.u32 %v3545_v40, %v3544_v15  ;;  %v6711_v11 = vor.u32 %v3548_v47, %v3547_v34  ;;  %v3555_v39 = vor.u32 %v3554_v48, %v3553_v10 }
 0x385   :  { %v6707_v19 = vshrl.u32 %v3313_v4, 30  ;;  %v3200_v32 = vadd.f32 1.0, %v3199_v17  ;;  %v3493_v62 = vsub.s32 4, %v6332_v29  ;;  %v3506_v37 = vadd.f32 0.008332121, %v3505_v5 }
 0x386   :  { %v7348_v7 = vand.u32 2147483647, %v6309_v3  ;;  %v6722_v35 = vmul.f32 %v6701_v45, %v6701_v45  ;;  %vm3559_vm7 = vcmp.lt.s32.totalorder %v6681_v41, 4  ;;  %v6726_v52 = vshll.u32 %v3532_v14, 8 }
 0x387   :  { %v3315_v30 = vshll.u32 %v6707_v19, 30  ;;  %vm3556_vm9 = vcmp.lt.s32.totalorder %v6681_v41, 1  ;;  %v3565_v5 = vsel %vm3559_vm7, %v3552_v55, 920167782  ;;  %v3569_v12 = vsel %vm3559_vm7, %v3555_v39, 1326507024 }
 0x388   :  { %vm6716_vm14 = vcmp.le.f32.partialorder %v7348_v7, 0.7853982  ;;  %vm3558_vm11 = vcmp.lt.s32.totalorder %v6681_v41, 3  ;;  %v3564_v8 = vsel %vm3556_vm9, %v6705_v59, %v6709_v49  ;;  %v3568_v14 = vsel %vm3556_vm9, %v6709_v49, %v6711_v11 }
 0x389   :  { %v6731_v17 = vsel %vm6716_vm14, %v6309_v3, %v3027_v44  ;;  %v3316_v25 = vsub.s32 %v3312_v6, %v3315_v30  ;;  %v6750_v23 = vsel %vm3371_vm5, %v3493_v62, %v6332_v29  ;;  %v3507_v50 = vmul.f32 %v3506_v37, %v6631_v51 }
 0x38a   :  { %7351 = vst [vmem:[#allocation8_spill] sm:$0xff] %v6731_v17  ;;  %v3566_v6 = vsel %vm3558_vm11, %v6711_v11, %v3565_v5  ;;  %v3570_v15 = vsel %vm3558_vm11, %v3552_v55, %v3569_v12  ;;  %v2730_v40 = vmul.f32 -0.00019511016, %v6722_v35  ;;  %vm3557_vm12 = vcmp.lt.s32.totalorder %v6681_v41, 2 }
 0x38b   :  { %vm3317_vm0 = vcmp.lt.s32.totalorder %v3316_v25, 0  ;;  %v3318_v47 = vsub.s32 0, %v3316_v25  ;;  %v6762_v27 = vmul.f32 %v6731_v17, %v6731_v17  ;;  %v3567_v29 = vsel %vm3557_vm12, %v3564_v8, %v3566_v6 }
 0x38c   :  { %v3571_v38 = vsel %vm3557_vm12, %v3568_v14, %v3570_v15  ;;  %v3573_v4 = vand.u32 65535, %v6726_v52  ;;  %v3574_v10 = vshrl.u32 %v6726_v52, 16  ;;  %v3597_v62 = vand.u32 65535, %v3567_v29 }
 0x38d   :  { %v3319_v34 = vsel %vm3317_vm0, %v3318_v47, %v3316_v25  ;;  %v3575_v48 = vand.u32 65535, %v3571_v38  ;;  %v3576_v44 = vshrl.u32 %v3571_v38, 16  ;;  %v3598_v37 = vshrl.u32 %v3567_v29, 16 }
 0x38e   :  { %v3320_v39 = vclz %v3319_v34  ;;  %v6774_v7 = vmul.f32 %v3200_v32, %v6496_v13  ;;  %v3508_v30 = vadd.f32 -0.16666654, %v3507_v50  ;;  %v2731_v8 = vadd.f32 0.008332121, %v2730_v40 }
 0x38f   :  { %v3578_v5 = vmul.u32 %v3576_v44, %v3573_v4  ;;  %v3579_v12 = vmul.u32 %v3575_v48, %v3574_v10  ;;  %v3308_v14 = vadd.s32 %v6656_v43, %v6654_v18  ;;  %v3540_v15 = vshrl.u32 %v7297_v31, %v6679_v26 }
 0x390   :  { %v4431_v6 = vadd.s32 4294967294, %v3320_v39  ;;  %v3040_v47 = vmul.f32 -0.00019511016, %v6762_v27  ;;  %v3577_v38 = vmul.u32 %v3575_v48, %v3573_v4  ;;  %v3600_v55 = vmul.u32 %v3598_v37, %v3573_v4 }
 0x391   :  { %v3581_v34 = vshll.u32 %v3578_v5, 16  ;;  %v3580_v29 = vmul.u32 %v3576_v44, %v3574_v10  ;;  %v3583_v13 = vshll.u32 %v3579_v12, 16  ;;  %v3599_v32 = vmul.u32 %v3597_v62, %v3573_v4 }
 0x392   :  { %vm4432_vm5 = vcmp.lt.s32.totalorder %v4431_v6, 0  ;;  %v3601_v40 = vmul.u32 %v3597_v62, %v3574_v10  ;;  %v3582_v18 = vshrl.u32 %v3578_v5, 16  ;;  %v3602_v26 = vmul.u32 %v3598_v37, %v3574_v10 }
 0x393   :  { %v3323_v50 = vsel %vm4432_vm5, 0, %v4431_v6  ;;  %vm3585_vm1 = vc.u32 %v3577_v38, %v3581_v34  ;;  %v3587_v61 = vadd.s32 %v3581_v34, %v3577_v38  ;;  %v3603_v57 = vshll.u32 %v3600_v55, 16 }
 0x394   :  { %v3324_v20 = vsub.s32 32, %v3323_v50  ;;  %v3328_v16 = vsub.s32 4294967266, %v3323_v50  ;;  %v3586_v43 = vsel %vm3585_vm1, 1, %v7292_v63  ;;  %v3325_v48 = vshll.u32 %v3316_v25, %v3323_v50 }
 0x395   :  { %v3588_v39 = vadd.s32 %v3586_v43, %v3580_v29  ;;  %vm3589_vm8 = vc.u32 %v3587_v61, %v3583_v13  ;;  %v3605_v4 = vshll.u32 %v3601_v40, 16  ;;  %vm3607_vm10 = vc.u32 %v3599_v32, %v3603_v57 }
 0x396   :  { %v3326_v60 = vshrl.u32 %v3308_v14, %v3324_v20  ;;  %v3329_v31 = vadd.s32 127, %v3328_v16  ;;  %v3590_v44 = vsel %vm3589_vm8, 1, %v7292_v63  ;;  %v3609_v6 = vadd.s32 %v3603_v57, %v3599_v32 }
 0x397   :  { %v3592_v17 = vadd.s32 %v3590_v44, %v3588_v39  ;;  %v3561_v5 = vsel %vm3559_vm7, %v6711_v11, 2102212464  ;;  %v3608_v34 = vsel %vm3607_vm10, 1, %v7292_v63  ;;  %vm3216_vm0 = vcmp.lt.s32.totalorder %v6503_v58, 0 }
 0x398   :  { %v3327_v38 = vor.u32 %v3326_v60, %v3325_v48  ;;  %v3330_v62 = vshll.u32 %v3329_v31, 23  ;;  %v3610_v25 = vadd.s32 %v3608_v34, %v3602_v26  ;;  %vm3611_vm5 = vc.u32 %v3609_v6, %v3605_v4 }
 0x399   :  { %v3593_v61 = vadd.s32 %v3592_v17, %v3582_v18  ;;  %v3498_v16 = vmul.f32 -0.001358992, %v6631_v51  ;;  %v3509_v20 = vmul.f32 %v3508_v30, %v6631_v51  ;;  %v3584_v37 = vshrl.u32 %v3579_v12, 16 }
 0x39a   :  { %v3331_v10 = vor.u32 4788187, %v3330_v62  ;;  %v3612_v60 = vsel %vm3611_vm5, 1, %v7292_v63  ;;  %v2732_v31 = vmul.f32 %v2731_v8, %v6722_v35  ;;  %v3560_v57 = vsel %vm3556_vm9, %v3540_v15, %v6705_v59 }
 0x39b   :  { %v3604_v11 = vshrl.u32 %v3600_v55, 16  ;;  %v3614_v14 = vadd.s32 %v3612_v60, %v3610_v25  ;;  %v3334_v17 = vcvt.s32.f32 %v3327_v38  ;;  %v3562_v13 = vsel %vm3558_vm11, %v6709_v49, %v3561_v5 }
 0x39c   :  { %v3332_v29 = vand.u32 2147483647, %v3331_v10  ;;  %v6798_v32 = vadd.s32 %v3593_v61, %v3584_v37  ;;  %v3041_v30 = vadd.f32 0.008332121, %v3040_v47  ;;  %v3606_v12 = vshrl.u32 %v3601_v40, 16  ;;  %v7355_v61 = vld [vmem:[#allocation9_spill] sm:$0xff] }
 0x39d   :  { %v3615_v50 = vadd.s32 %v3614_v14, %v3604_v11  ;;  %v3499_v18 = vadd.f32 0.041655596, %v3498_v16  ;;  %v2718_v8 = vsub.s32 4, %v6474_v24  ;;  %v7352_v43 = vand.u32 2147483647, %v6503_v58 }
 0x39e   :  { %v3335_v55 = vmul.f32 %v3334_v17, %v3332_v29  ;;  %v3613_v15 = vadd.s32 %v3609_v6, %v3605_v4  ;;  %v3510_v39 = vadd.f32 1.0, %v3509_v20  ;;  %v3563_v49 = vsel %vm3557_vm12, %v3560_v57, %v3562_v13 }
 0x39f   :  { %vm6803_vm7 = vcmp.le.f32.partialorder %v7352_v43, 0.7853982  ;;  %v3616_v26 = vadd.s32 %v3615_v50, %v3606_v12  ;;  %v3188_v47 = vmul.f32 -0.001358992, %v6507_v33  ;;  %v2733_v40 = vadd.f32 -0.16666654, %v2732_v31 }
 0x3a0   :  { %v3336_v48 = vxor.u32 2147483648, %v3335_v55  ;;  %vm3619_vm9 = vc.u32 %v6798_v32, %v3613_v15  ;;  %v2878_v44 = vmul.f32 -0.001358992, %v6284_v53  ;;  %v3042_v38 = vmul.f32 %v3041_v30, %v6762_v27 }
 0x3a1   :  { %v3620_v62 = vadd.s32 1, %v3616_v26  ;;  %v3500_v5 = vmul.f32 %v3499_v18, %v6631_v51  ;;  %v3189_v34 = vadd.f32 0.041655596, %v3188_v47  ;;  %v3617_v41 = vmul.u32 %v6726_v52, %v3563_v49 }
 0x3a2   :  { %v3337_v4 = vsel %vm3216_vm0, %v3336_v48, %v3335_v55  ;;  %v2879_v6 = vadd.f32 0.041655596, %v2878_v44  ;;  %v2568_v25 = vmul.f32 -0.001358992, %v7355_v61  ;;  %v3338_v16 = vsub.s32 4, %v6707_v19 }
 0x3a3   :  { %v6822_v20 = vsel %vm6803_vm7, %v6503_v58, %v3337_v4  ;;  %v3621_v10 = vsel %vm3619_vm9, %v3620_v62, %v3616_v26  ;;  %v3190_v37 = vmul.f32 %v3189_v34, %v6507_v33  ;;  %v6831_v11 = vmul.f32 %v3510_v39, %v6620_v21 }
 0x3a4   :  { %v6827_v60 = vmul.f32 %v6822_v20, %v6822_v20  ;;  %v3622_v31 = vadd.s32 %v3621_v10, %v3617_v41  ;;  %v2880_v52 = vmul.f32 %v2879_v6, %v6284_v53  ;;  %v2569_v57 = vadd.f32 0.041655596, %v2568_v25 }
 0x3a5   :  { %v6836_v14 = vsel %vm2596_vm4, %v2718_v8, %v6474_v24  ;;  %v3043_v29 = vadd.f32 -0.16666654, %v3042_v38  ;;  %v3501_v17 = vadd.f32 -0.4999988, %v3500_v5  ;;  %v3028_v13 = vsub.s32 4, %v6585_v42 }
 0x3a6   :  { %v3623_v30 = vadd.s32 536870912, %v3622_v31  ;;  %v3191_v12 = vadd.f32 -0.4999988, %v3190_v37  ;;  %v2570_v50 = vmul.f32 %v2569_v57, %v7355_v61  ;;  %v2897_v18 = vxor.u32 2147483648, %v6538_v22  ;;  %v7358_v57 = vld [vmem:[#allocation6_spill] sm:$0xff] }
 0x3a7   :  { %v7356_v21 = vsel %vm6564_vm3, 0, %v6750_v23  ;;  %v2734_v55 = vmul.f32 %v2733_v40, %v6722_v35  ;;  %v2881_v39 = vadd.f32 -0.4999988, %v2880_v52  ;;  %v6849_v24 = vsel %vm3216_vm0, %v3338_v16, %v6707_v19 }
 0x3a8   :  { %v3513_v43 = vadd.s32 3, %v7356_v21  ;;  %v3350_v8 = vmul.f32 -0.00019511016, %v6827_v60  ;;  %v6852_v49 = vshrl.u32 %v3623_v30, 30  ;;  %v2571_v26 = vadd.f32 -0.4999988, %v2570_v50 }
 0x3a9   :  { %v3207_v47 = vxor.u32 2147483648, %v6774_v7  ;;  %v2721_v28 = vsel %vm6664_vm6, 0, %v6836_v14  ;;  %v3044_v23 = vmul.f32 %v3043_v29, %v6762_v27  ;;  %v3502_v40 = vmul.f32 %v3501_v17, %v6631_v51  ;;  %v7359_v17 = vld [vmem:[#allocation5_spill] sm:$0xff] }
 0x3aa   :  { %v3517_v48 = vxor.u32 2147483648, %v6831_v11  ;;  %v6864_v19 = vsel %vm2906_vm15, %v3028_v13, %v6585_v42  ;;  %v3625_v44 = vshll.u32 %v6852_v49, 30  ;;  %v3192_v38 = vmul.f32 %v3191_v12, %v6507_v33 }
 0x3ab   :  { %v6868_v62 = vadd.f32 1.0, %v2734_v55  ;;  %v3341_v5 = vsel %vm6803_vm7, 0, %v6849_v24  ;;  %v3514_v34 = vand.u32 3, %v3513_v43  ;;  %v2882_v51 = vmul.f32 %v2881_v39, %v6284_v53 }
 0x3ac   :  { %v3351_v4 = vadd.f32 0.008332121, %v3350_v8  ;;  %v6874_v41 = vsub.s32 %v3622_v31, %v3625_v44  ;;  %v3204_v6 = vand.u32 3, %v6391_v1  ;;  %v2572_v42 = vmul.f32 %v2571_v26, %v7355_v61 }
 0x3ad   :  { %v6878_v25 = vadd.f32 1.0, %v3044_v23  ;;  %v3503_v16 = vadd.f32 1.0, %v3502_v40  ;;  %v2894_v33 = vand.u32 3, %v6312_v0  ;;  %v2584_v10 = vand.u32 3, %v6292_v46  ;;  %v7357_v0 = vld [vmem:[#allocation7_spill] sm:$0xff]  ;;  %v7361_v40 = vld [vmem:[#allocation10_spill] sm:$0xff] }
 0x3ae   :  { %v3618_v37 = vadd.s32 %v3613_v15, %v6798_v32  ;;  %vm3627_vm3 = vcmp.lt.s32.totalorder %v6874_v41, 0  ;;  %v3628_v53 = vsub.s32 0, %v6874_v41  ;;  %v3193_v31 = vadd.f32 1.0, %v3192_v38 }
 0x3af   :  { %vm3516_vm11 = vcmp.eq.s32.totalorder %v3514_v34, 0  ;;  %vm3519_vm12 = vcmp.eq.s32.totalorder %v3514_v34, 2  ;;  %v2883_v1 = vadd.f32 1.0, %v2882_v51  ;;  %v3352_v61 = vmul.f32 %v3351_v4, %v6827_v60 }
 0x3b0   :  { %v3629_v52 = vsel %vm3627_vm3, %v3628_v53, %v6874_v41  ;;  %v2573_v46 = vadd.f32 1.0, %v2572_v42  ;;  %v3520_v15 = vxor.u32 2147483648, %v3503_v16  ;;  %vm3206_vm10 = vcmp.eq.s32.totalorder %v3204_v6, 0 }
 0x3b1   :  { %v3630_v32 = vclz %v3629_v52  ;;  %vm3209_vm0 = vcmp.eq.s32.totalorder %v3204_v6, 2  ;;  %vm2892_vm5 = vweird.f32 %v7358_v57  ;;  %v3210_v29 = vxor.u32 2147483648, %v3193_v31 }
 0x3b2   :  { %vm2895_vm9 = vcmp.lt.s32.totalorder %v2894_v33, 2  ;;  %vm2896_vm2 = vcmp.eq.s32.totalorder %v2894_v33, 0  ;;  %vm2899_vm13 = vcmp.eq.s32.totalorder %v2894_v33, 2  ;;  %v2900_v30 = vxor.u32 2147483648, %v2883_v1 }
 0x3b3   :  { %v4437_v13 = vadd.s32 4294967294, %v3630_v32  ;;  %vm2585_vm15 = vcmp.lt.s32.totalorder %v2584_v10, 2  ;;  %vm2586_vm3 = vcmp.eq.s32.totalorder %v2584_v10, 0  ;;  %v3353_v12 = vadd.f32 -0.16666654, %v3352_v61 }
 0x3b4   :  { %v3521_v50 = vsel %vm3519_vm12, %v3520_v15, %v6831_v11  ;;  %vm2589_vm1 = vcmp.eq.s32.totalorder %v2584_v10, 2  ;;  %v2590_v21 = vxor.u32 2147483648, %v2573_v46  ;;  %v3518_v43 = vsel %vm3516_vm11, %v3503_v16, %v3517_v48 }
 0x3b5   :  { %vm4438_vm8 = vcmp.lt.s32.totalorder %v4437_v13, 0  ;;  %v3211_v55 = vsel %vm3209_vm0, %v3210_v29, %v6774_v7  ;;  %v2901_v39 = vsel %vm2899_vm13, %v2900_v30, %v6538_v22  ;;  %vm7360_vm4 = vcmp.lt.s32.totalorder %v3514_v34, 2 }
 0x3b6   :  { %v3633_v8 = vsel %vm4438_vm8, 0, %v4437_v13  ;;  %v3522_v26 = vsel %vm7360_vm4, %v3518_v43, %v3521_v50  ;;  %v3208_v23 = vsel %vm3206_vm10, %v3193_v31, %v3207_v47  ;;  %v2591_v44 = vsel %vm2589_vm1, %v2590_v21, %v7361_v40 }
 0x3b7   :  { %v3634_v38 = vsub.s32 32, %v3633_v8  ;;  %v3635_v11 = vshll.u32 %v6874_v41, %v3633_v8  ;;  %v3638_v51 = vsub.s32 4294967266, %v3633_v8  ;;  %vm7362_vm12 = vweird.f32 %v7340_v54 }
 0x3b8   :  { %v3523_v4 = vsel %vm7362_vm12, nan, %v3522_v26  ;;  %vm7363_vm11 = vcmp.lt.s32.totalorder %v3204_v6, 2  ;;  %v2898_v34 = vsel %vm2896_vm2, %v2883_v1, %v2897_v18  ;;  %v7364_v42 = vxor.u32 2147483648, %v7361_v40  ;;  %v3679_v6 = vld [vmem:[%s7220_s4] sm:$0x7] }
 0x3b9   :  { %v6903_v48 = vand.u32 4294901760, %v3523_v4  ;;  %v3212_v7 = vsel %vm7363_vm11, %v3208_v23, %v3211_v55  ;;  %v3636_v16 = vshrl.u32 %v3618_v37, %v3634_v38  ;;  %v3639_v53 = vadd.s32 127, %v3638_v51 }
 0x3ba   :  { %v2588_v47 = vsel %vm2586_vm3, %v2573_v46, %v7364_v42  ;;  %vm7365_vm13 = vweird.f32 %v7357_v0  ;;  %v2902_v54 = vsel %vm2895_vm9, %v2898_v34, %v2901_v39  ;;  %vm3526_vm2 = vcmp.lt.s32.totalorder %v6615_v9, 0 }
 0x3bb   :  { %v3213_v41 = vsel %vm7365_vm13, nan, %v3212_v7  ;;  %3702 = vmatpush.msra.mxu0 %v6903_v48  ;;  %3802 = vmatpush.msra.mxu3 %v6903_v48  ;;  %v3731_v18 = vsub.f32 %v3523_v4, %v6903_v48  ;;  %v2903_v37 = vsel %vm2892_vm5, nan, %v2902_v54  ;;  %v2592_v31 = vsel %vm2585_vm15, %v2588_v47, %v2591_v44 }
 0x3bc   :  { %v6920_v22 = vand.u32 4294901760, %v3213_v41  ;;  %v3637_v33 = vor.u32 %v3636_v16, %v3635_v11  ;;  %v3640_v1 = vshll.u32 %v3639_v53, 23  ;;  %v6927_v61 = vand.u32 4294901760, %v2903_v37 }
 0x3bd   :  { %vm7366_vm4 = vweird.f32 %v7359_v17  ;;  %3773 = vmatpush.msra.mxu2 %v3731_v18  ;;  %v3732_v32 = vand.u32 4294901760, %v3731_v18  ;;  %vm7367_vm1 = vcmask 261120   ;;  %v3354_v15 = vmul.f32 %v3353_v12, %v6827_v60 }
 0x3be   :  { %v2593_v52 = vsel %vm7366_vm4, nan, %v2592_v31  ;;  %3704 = vmatpush.msra.mxu0 %v6920_v22  ;;  %v3737_v0 = vsub.f32 %v3213_v41, %v6920_v22  ;;  %v3687_v10 = vsel %vm7367_vm1, %v3679_v6, 0  ;;  %v7368_v57 = vand.u32 2147483647, %v6615_v9  ;;  %3804 = vmatpush.msra.mxu3 %v6920_v22 }
 0x3bf   :  { %v6933_v46 = vand.u32 4294901760, %v2593_v52  ;;  %v3641_v17 = vor.u32 4788187, %v3640_v1  ;;  %v3743_v13 = vsub.f32 %v2903_v37, %v6927_v61  ;;  %v6945_v30 = vand.u32 4294901760, %v3687_v10 }
 0x3c0   :  { %vm6939_vm15 = vcmp.le.f32.partialorder %v7368_v57, 0.7853982  ;;  %v3644_v50 = vcvt.s32.f32 %v3637_v33  ;;  %3706 = vmatpush.msra.mxu0 %v6927_v61  ;;  %3776 = vmatpush.msra.mxu2 %v3737_v0  ;;  %v3733_v21 = vsub.f32 %v3731_v18, %v3732_v32  ;;  %v3738_v43 = vand.u32 4294901760, %v3737_v0 }
 0x3c1   :  { %v3749_v12 = vsub.f32 %v2593_v52, %v6933_v46  ;;  %v3642_v55 = vand.u32 2147483647, %v3641_v17  ;;  %3806 = vmatpush.msra.mxu3 %v6927_v61  ;;  %v6951_v39 = vsub.f32 %v3687_v10, %v6945_v30  ;;  %v3744_v8 = vand.u32 4294901760, %v3743_v13 }
 0x3c2   :  { %v3343_v26 = vmul.f32 -0.001358992, %v6827_v60  ;;  %v3648_v23 = vsub.s32 4, %v6852_v49  ;;  %3708 = vmatpush.msra.mxu0 %v6933_v46  ;;  %3779 = vmatpush.msra.mxu2 %v3743_v13  ;;  %v3734_v40 = vand.u32 4294901760, %v3733_v21  ;;  %v3739_v44 = vsub.f32 %v3737_v0, %v3738_v43 }
 0x3c3   :  { %v3750_v38 = vand.u32 4294901760, %v3749_v12  ;;  %v3355_v11 = vadd.f32 1.0, %v3354_v15  ;;  %v3645_v51 = vmul.f32 %v3644_v50, %v3642_v55  ;;  %3808 = vmatpush.msra.mxu3 %v6933_v46  ;;  %v3745_v4 = vsub.f32 %v3743_v13, %v3744_v8 }
 0x3c4   :  { %3831 = vmatpush.msrb.mxu0 %v3732_v32  ;;  %v6958_v7 = vand.u32 4294901760, %v6951_v39  ;;  %v3031_v34 = vsel %vm6716_vm14, 0, %v6864_v19  ;;  %3735 = vmatpush.msra.mxu1 %v3734_v40  ;;  %v3740_v42 = vand.u32 4294901760, %v3739_v44  ;;  %v3344_v16 = vadd.f32 0.041655596, %v3343_v26 }
 0x3c5   :  { %3782 = vmatpush.msra.mxu2 %v3749_v12  ;;  %v3751_v47 = vsub.f32 %v3749_v12, %v3750_v38  ;;  %v6965_v53 = vmul.f32 %v6868_v62, %v6701_v45  ;;  %v3358_v41 = vadd.s32 3, %v3341_v5  ;;  %v3646_v54 = vxor.u32 2147483648, %v3645_v51  ;;  %v3680_v19 = vld [vmem:[%s7221_s5] sm:$0x7]  ;;  %s4489_s5 = smov [#allocation2]  }
 0x3c6   :  { %3835 = vmatpush.msrb.mxu0 %v3738_v43  ;;  %3785 = vmatmul.f32.vlgmr.msra.gmra.mxu2 %v6951_v39  ;;  %v3712_v2 = vsub.f32 %v6951_v39, %v6958_v7  ;;  %v3649_v45 = vsel %vm3526_vm2, %v3648_v23, %v6852_v49  ;;  %v3746_v59 = vand.u32 4294901760, %v3745_v4  ;;  %v3345_v24 = vmul.f32 %v3344_v16, %v6827_v60  ;;  %v7371_v5 = vld [vmem:[#allocation8_spill] sm:$0xff]  ;;  %s4380_s24 = sshll.u32 %s4489_s5, 4  ;;  %s4381_s24 = int_to_ptr.vmem [resolvable:$true] %s4380_s24 }
 0x3c7   :  { %3741 = vmatpush.msra.mxu1 %v3740_v42  ;;  %3812 = vmatmul.f32.vlgmr.msra.gmra.mxu3 %v6958_v7  ;;  %v3033_v62 = vmul.f32 -0.001358992, %v6762_v27  ;;  %v6985_v6 = vmul.f32 %v6878_v25, %v7371_v5  ;;  %v3356_v18 = vmul.f32 %v3355_v11, %v6822_v20  ;;  %v3647_v37 = vsel %vm3526_vm2, %v3646_v54, %v3645_v51 }
 0x3c8   :  { %3839 = vmatpush.msrb.mxu0 %v3744_v8  ;;  %v6990_v31 = vand.u32 4294901760, %v3712_v2  ;;  %3683 = vperm.xlu2 %4455, %v3680_v19   ;;  %v6995_v49 = vsel %vm6939_vm15, %v6615_v9, %v3647_v37  ;;  %v3752_v33 = vand.u32 4294901760, %v3751_v47  ;;  %v3346_v1 = vadd.f32 -0.4999988, %v3345_v24 }
 0x3c9   :  { %3747 = vmatpush.msra.mxu1 %v3746_v59  ;;  %v3034_v52 = vadd.f32 0.041655596, %v3033_v62  ;;  %v2738_v20 = vadd.s32 3, %v2721_v28  ;;  %v3048_v25 = vadd.s32 3, %v3031_v34  ;;  %v3651_v0 = vsel %vm6939_vm15, 0, %v3649_v45 }
 0x3ca   :  { %v3652_v32 = vmul.f32 %v6995_v49, %v6995_v49  ;;  %3714 = vmatmul.f32.vlgmr.msra.gmra.mxu0 %v6990_v31  ;;  %v3347_v10 = vmul.f32 %v3346_v1, %v6827_v60  ;;  %v3359_v15 = vand.u32 3, %v3358_v41  ;;  %v2723_v56 = vmul.f32 -0.001358992, %v6722_v35 }
 0x3cb   :  { %3843 = vmatpush.msrb.mxu0 %v3750_v38  ;;  %3753 = vmatpush.msra.mxu1 %v3752_v33  ;;  %v3035_v57 = vmul.f32 %v3034_v52, %v6762_v27  ;;  %v2742_v14 = vxor.u32 2147483648, %v6965_v53  ;;  %v3362_v28 = vxor.u32 2147483648, %v3356_v18  ;;  %v3052_v13 = vxor.u32 2147483648, %v6985_v6 }
 0x3cc   :  { %v3660_v17 = vmul.f32 -0.00019511016, %v3652_v32  ;;  %3755 = vmatmul.f32.vlgmr.msra.gmra.mxu1 %v6945_v30  ;;  %v3653_v29 = vmul.f32 -0.001358992, %v3652_v32  ;;  %v3348_v50 = vadd.f32 1.0, %v3347_v10  ;;  %v3668_v43 = vadd.s32 3, %v3651_v0 }
 0x3cd   :  { %3862 = vmatpush.msrb.mxu1 %v6903_v48  ;;  %v3036_v21 = vadd.f32 -0.4999988, %v3035_v57  ;;  %v2724_v12 = vadd.f32 0.041655596, %v2723_v56  ;;  %v3049_v8 = vand.u32 3, %v3048_v25  ;;  %vm3361_vm6 = vcmp.eq.s32.totalorder %v3359_v15, 0 }
 0x3ce   :  { %v3661_v60 = vadd.f32 0.008332121, %v3660_v17  ;;  %v3654_v55 = vadd.f32 0.041655596, %v3653_v29  ;;  %v3365_v26 = vxor.u32 2147483648, %v3348_v50  ;;  %vm3360_vm14 = vcmp.lt.s32.totalorder %v3359_v15, 2 }
 0x3cf   :  { %3864 = vmatpush.msrb.mxu1 %v6920_v22  ;;  %v3037_v23 = vmul.f32 %v3036_v21, %v6762_v27  ;;  %v2725_v40 = vmul.f32 %v2724_v12, %v6722_v35  ;;  %v3363_v11 = vsel %vm3361_vm6, %v3348_v50, %v3362_v28  ;;  %vm3364_vm7 = vcmp.eq.s32.totalorder %v3359_v15, 2 }
 0x3d0   :  { %v3662_v44 = vmul.f32 %v3661_v60, %v3652_v32  ;;  %v3655_v38 = vmul.f32 %v3654_v55, %v3652_v32  ;;  %v2739_v4 = vand.u32 3, %v2738_v20  ;;  %v3366_v42 = vsel %vm3364_vm7, %v3365_v26, %v3356_v18 }
 0x3d1   :  { %3866 = vmatpush.msrb.mxu1 %v6927_v61  ;;  %v3038_v48 = vadd.f32 1.0, %v3037_v23  ;;  %v2726_v51 = vadd.f32 -0.4999988, %v2725_v40  ;;  %vm3051_vm8 = vcmp.eq.s32.totalorder %v3049_v8, 0  ;;  %v3367_v27 = vsel %vm3360_vm14, %v3363_v11, %v3366_v42 }
 0x3d2   :  { %v3663_v34 = vadd.f32 -0.16666654, %v3662_v44  ;;  %3845 = vmatmul.f32.vlgmr.msrb.gmra.mxu0 %v6945_v30  ;;  %v3656_v22 = vadd.f32 -0.4999988, %v3655_v38  ;;  %vm3357_vm10 = vweird.f32 %v6503_v58  ;;  %vm3054_vm0 = vcmp.eq.s32.totalorder %v3049_v8, 2 }
 0x3d3   :  { %3868 = vmatpush.msrb.mxu1 %v6933_v46  ;;  %v3053_v47 = vsel %vm3051_vm8, %v3038_v48, %v3052_v13  ;;  %v3055_v16 = vxor.u32 2147483648, %v3038_v48  ;;  %v2727_v41 = vmul.f32 %v2726_v51, %v6722_v35  ;;  %vm3050_vm5 = vcmp.lt.s32.totalorder %v3049_v8, 2 }
 0x3d4   :  { %v3664_v54 = vmul.f32 %v3663_v34, %v3652_v32  ;;  %3870 = vmatmul.f32.vlgmr.msrb.gmra.mxu1 %v6945_v30  ;;  %v3657_v61 = vmul.f32 %v3656_v22, %v3652_v32  ;;  %vm2741_vm9 = vcmp.eq.s32.totalorder %v2739_v4, 0  ;;  %v3368_v46 = vsel %vm3357_vm10, nan, %v3367_v27 }
 0x3d5   :  { %v3056_v2 = vsel %vm3054_vm0, %v3055_v16, %v6985_v6  ;;  %v2728_v19 = vadd.f32 1.0, %v2727_v41  ;;  %v3669_v62 = vand.u32 3, %v3668_v43  ;;  %vm3047_vm3 = vweird.f32 %v6309_v3 }
 0x3d6   :  { %v3665_v45 = vadd.f32 1.0, %v3664_v54  ;;  %v3658_v59 = vadd.f32 1.0, %v3657_v61  ;;  %v3057_v24 = vsel %vm3050_vm5, %v3053_v47, %v3056_v2  ;;  %vm2744_vm12 = vcmp.eq.s32.totalorder %v2739_v4, 2 }
 0x3d7   :  { %v2743_v35 = vsel %vm2741_vm9, %v2728_v19, %v2742_v14  ;;  %v2745_v5 = vxor.u32 2147483648, %v2728_v19  ;;  %v3058_v33 = vsel %vm3047_vm3, nan, %v3057_v24  ;;  %v3888_v58 = vand.u32 4294901760, %v3368_v46 }
 0x3d8   :  { %v3666_v18 = vmul.f32 %v3665_v45, %v6995_v49  ;;  %v3675_v37 = vxor.u32 2147483648, %v3658_v59  ;;  %vm2740_vm11 = vcmp.lt.s32.totalorder %v2739_v4, 2  ;;  %vm2737_vm13 = vweird.f32 %v6251_v36 }
 0x3d9   :  { %v2746_v6 = vsel %vm2744_vm12, %v2745_v5, %v6965_v53  ;;  %vm3671_vm2 = vcmp.eq.s32.totalorder %v3669_v62, 0  ;;  %vm3674_vm4 = vcmp.eq.s32.totalorder %v3669_v62, 2  ;;  %v3890_v20 = vand.u32 4294901760, %v3058_v33 }
 0x3da   :  { %v3672_v1 = vxor.u32 2147483648, %v3666_v18  ;;  %v2747_v52 = vsel %vm2740_vm11, %v2743_v35, %v2746_v6  ;;  %vm3670_vm1 = vcmp.lt.s32.totalorder %v3669_v62, 2  ;;  %v3676_v0 = vsel %vm3674_vm4, %v3675_v37, %v3666_v18 }
 0x3db   :  { %v2748_v25 = vsel %vm2737_vm13, nan, %v2747_v52  ;;  %vm3667_vm15 = vweird.f32 %v6615_v9  ;;  %v3922_v32 = vsub.f32 %v3368_v46, %v3888_v58  ;;  %v3928_v56 = vsub.f32 %v3058_v33, %v3890_v20 }
 0x3dc   :  { %v3673_v3 = vsel %vm3671_vm2, %v3658_v59, %v3672_v1  ;;  %v3892_v10 = vand.u32 4294901760, %v2748_v25  ;;  %v7372_v19 = vmov 683565275   ;;  %v7373_v59 = vmov 2475754826  }
 0x3dd   :  { %v3677_v49 = vsel %vm3670_vm1, %v3673_v3, %v3676_v0  ;;  %v3923_v14 = vand.u32 4294901760, %v3922_v32  ;;  %v3929_v17 = vand.u32 4294901760, %v3928_v56  ;;  %v7374_v24 = vmov 2131351028  }
 0x3de   :  { %v3678_v15 = vsel %vm3667_vm15, nan, %v3677_v49  ;;  %v3934_v36 = vsub.f32 %v2748_v25, %v3892_v10  ;;  %v7375_v35 = vmov 2102212464   ;;  %v7376_v18 = vmov 920167782  }
 0x3df   :  { %v3886_v57 = vand.u32 4294901760, %v3678_v15  ;;  %v3924_v9 = vsub.f32 %v3922_v32, %v3923_v14  ;;  %v3930_v21 = vsub.f32 %v3928_v56, %v3929_v17  ;;  %v7377_v52 = vmov 1326507024  }
 0x3e0   :  { %v3935_v13 = vand.u32 4294901760, %v3934_v36 }
 0x3e1   :  { %3887 = vmatpush.msrb.mxu2 %v3886_v57  ;;  %3987 = vmatpush.msra.mxu1 %v3886_v57  ;;  %v3916_v53 = vsub.f32 %v3678_v15, %v3886_v57  ;;  %v3925_v12 = vand.u32 4294901760, %v3924_v9  ;;  %v3931_v43 = vand.u32 4294901760, %v3930_v21 }
 0x3e2   :  { %v3936_v60 = vsub.f32 %v3934_v36, %v3935_v13 }
 0x3e3   :  { %3889 = vmatpush.msrb.mxu2 %v3888_v58  ;;  %3958 = vmatpush.msra.mxu0 %v3916_v53  ;;  %v3917_v28 = vand.u32 4294901760, %v3916_v53 }
 0x3e4   :  { %3989 = vmatpush.msra.mxu1 %v3888_v58  ;;  %v3937_v55 = vand.u32 4294901760, %v3936_v60 }
 0x3e5   :  { %3891 = vmatpush.msrb.mxu2 %v3890_v20  ;;  %3961 = vmatpush.msra.mxu0 %v3922_v32  ;;  %v3918_v29 = vsub.f32 %v3916_v53, %v3917_v28 }
 0x3e6   :  { %3991 = vmatpush.msra.mxu1 %v3890_v20 }
 0x3e7   :  { %3893 = vmatpush.msrb.mxu2 %v3892_v10  ;;  %3964 = vmatpush.msra.mxu0 %v3928_v56  ;;  %v3919_v50 = vand.u32 4294901760, %v3918_v29 }
 0x3e8   :  { %3993 = vmatpush.msra.mxu1 %v3892_v10  ;;  %3899 = vmatmul.f32.vlgmr.msrb.gmra.mxu2 %v6990_v31 }
 0x3e9   :  { %4016 = vmatpush.msra.mxu2 %v3917_v28  ;;  %3920 = vmatpush.msrb.mxu3 %v3919_v50 }
 0x3ea   :  { %3967 = vmatpush.msra.mxu0 %v3934_v36  ;;  %3997 = vmatmul.f32.vlgmr.msra.gmra.mxu1 %v6958_v7 }
 0x3eb   :  { %4020 = vmatpush.msra.mxu2 %v3923_v14  ;;  %3970 = vmatmul.f32.vlgmr.msra.gmra.mxu0 %v6951_v39 }
 0x3ec   :  { %3926 = vmatpush.msrb.mxu3 %v3925_v12 }
 0x3ed   :  { %4024 = vmatpush.msra.mxu2 %v3929_v17 }
 0x3ee   :  { %3932 = vmatpush.msrb.mxu3 %v3931_v43 }
 0x3ef   :  { %4028 = vmatpush.msra.mxu2 %v3935_v13 }
 0x3f0   :  { %3938 = vmatpush.msrb.mxu3 %v3937_v55  ;;  %4030 = vmatmul.f32.vlgmr.msra.gmra.mxu2 %v6945_v30 }
 0x3f1   :  { %3940 = vmatmul.f32.vlgmr.msrb.gmra.mxu3 %v6945_v30 }
 0x3f2   :  { %4047 = vmatpush.msra.mxu3 %v3886_v57 }
 0x3f4   :  { %4049 = vmatpush.msra.mxu3 %v3888_v58 }
 0x3f6   :  { %4051 = vmatpush.msra.mxu3 %v3890_v20 }
 0x3f8   :  { %4053 = vmatpush.msra.mxu3 %v3892_v10 }
 0x3f9   :  { %4055 = vmatmul.f32.vlgmr.msra.gmra.mxu3 %v6945_v30 }
 0x422   :  { %v7034_v39 = vpop.permute.xlu2 %3683 }
 0x447   :  { %v3715_v31 = vpop.f32.mrf.mxu0 }
 0x448   :  { %v3716_v8 = vadd.f32 %v3715_v31, %v7034_v39 }
 0x449   :  { %v3756_v7 = vpop.f32.mrf.mxu1  ;;  %v3786_v26 = vpop.f32.mrf.mxu2 }
 0x44a   :  { %v3757_v23 = vadd.f32 %v3756_v7, %v3716_v8  ;;  %v3813_v40 = vpop.f32.mrf.mxu3 }
 0x44c   :  { %v3787_v44 = vadd.f32 %v3786_v26, %v3757_v23 }
 0x44e   :  { %v3814_v38 = vadd.f32 %v3813_v40, %v3787_v44 }
 0x44f   :  { %v3846_v11 = vpop.f32.mrf.mxu0 }
 0x450   :  { %v3847_v48 = vadd.f32 %v3846_v11, %v3814_v38 }
 0x451   :  { %v3871_v51 = vpop.f32.mrf.mxu1 }
 0x452   :  { %v7037_v4 = vadd.f32 %v3871_v51, %v3847_v48 }
 0x454   :  { %v4062_v34 = vand.u32 2139095040, %v7037_v4  ;;  %v4059_v30 = vand.u32 2147483647, %v7037_v4 }
 0x456   :  { %v4063_v22 = vshrl.u32 %v4062_v34, 23  ;;  %v4066_v47 = vand.u32 8388607, %v4059_v30 }
 0x458   :  { %v4439_v42 = vadd.s32 4294967169, %v4063_v22  ;;  %v4067_v54 = vor.u32 8388608, %v4066_v47 }
 0x45a   :  { %v4069_v27 = vadd.s32 1, %v4439_v42  ;;  %v7056_v25 = vshll.u32 %v4067_v54, 8 }
 0x45c   :  { %vm4070_vm6 = vcmp.gt.s32.totalorder %v4069_v27, 0  ;;  %v4108_v28 = vand.u32 65535, %v7056_v25  ;;  %v4109_v17 = vshrl.u32 %v7056_v25, 16 }
 0x45d   :  { %v4071_v16 = vsel %vm4070_vm6, %v4069_v27, 0 }
 0x45e   :  { %v4073_v41 = vand.u32 31, %v4071_v16  ;;  %v7043_v61 = vshrl.u32 %v4071_v16, 5 }
 0x460   :  { %v4074_v2 = vsub.s32 32, %v4073_v41  ;;  %v4076_v45 = vshll.u32 %v7372_v19, %v4073_v41  ;;  %v4079_v46 = vshll.u32 %v7373_v59, %v4073_v41  ;;  %v4082_v62 = vshll.u32 %v7374_v24, %v4073_v41 }
 0x461   :  { %v4085_v5 = vshll.u32 %v7375_v35, %v4073_v41  ;;  %v4088_v37 = vshll.u32 %v7376_v18, %v4073_v41  ;;  %vm4091_vm14 = vcmp.lt.s32.totalorder %v7043_v61, 1  ;;  %vm4094_vm7 = vcmp.lt.s32.totalorder %v7043_v61, 4 }
 0x462   :  { %v4077_v33 = vshrl.u32 %v7373_v59, %v4074_v2  ;;  %v4080_v58 = vshrl.u32 %v7374_v24, %v4074_v2  ;;  %v4083_v6 = vshrl.u32 %v7375_v35, %v4074_v2  ;;  %v4086_v1 = vshrl.u32 %v7376_v18, %v4074_v2 }
 0x463   :  { %v4089_v20 = vshrl.u32 %v7377_v52, %v4074_v2  ;;  %vm4093_vm8 = vcmp.lt.s32.totalorder %v7043_v61, 3  ;;  %vm4092_vm10 = vcmp.lt.s32.totalorder %v7043_v61, 2  ;;  %v4075_v60 = vshrl.u32 %v7372_v19, %v4074_v2 }
 0x464   :  { %v4078_v3 = vor.u32 %v4077_v33, %v4076_v45  ;;  %v4081_v0 = vor.u32 %v4080_v58, %v4079_v46  ;;  %v4084_v49 = vor.u32 %v4083_v6, %v4082_v62  ;;  %v4087_v32 = vor.u32 %v4086_v1, %v4085_v5 }
 0x465   :  { %v4090_v10 = vor.u32 %v4089_v20, %v4088_v37 }
 0x466   :  { %v4099_v15 = vsel %vm4091_vm14, %v4078_v3, %v4081_v0  ;;  %v4103_v57 = vsel %vm4091_vm14, %v4081_v0, %v4084_v49  ;;  %v4100_v56 = vsel %vm4094_vm7, %v4087_v32, 920167782  ;;  %v4095_v51 = vsel %vm4091_vm14, %v4075_v60, %v4078_v3 }
 0x467   :  { %v4104_v53 = vsel %vm4094_vm7, %v4090_v10, 1326507024  ;;  %v4101_v36 = vsel %vm4093_vm8, %v4084_v49, %v4100_v56  ;;  %v4096_v22 = vsel %vm4094_vm7, %v4084_v49, 2102212464 }
 0x468   :  { %v4105_v14 = vsel %vm4093_vm8, %v4087_v32, %v4104_v53  ;;  %v4102_v29 = vsel %vm4092_vm10, %v4099_v15, %v4101_v36  ;;  %v4097_v46 = vsel %vm4093_vm8, %v4081_v0, %v4096_v22 }
 0x469   :  { %v4106_v9 = vsel %vm4092_vm10, %v4103_v57, %v4105_v14  ;;  %v4132_v21 = vand.u32 65535, %v4102_v29  ;;  %v4133_v12 = vshrl.u32 %v4102_v29, 16  ;;  %v4098_v20 = vsel %vm4092_vm10, %v4095_v51, %v4097_v46 }
 0x46a   :  { %v4110_v13 = vand.u32 65535, %v4106_v9  ;;  %v4111_v50 = vshrl.u32 %v4106_v9, 16  ;;  %v4152_v10 = vmul.u32 %v7056_v25, %v4098_v20  ;;  %v3998_v9 = vpop.f32.mrf.mxu1 }
 0x46b   :  { %v4134_v8 = vmul.u32 %v4132_v21, %v4108_v28  ;;  %v4135_v7 = vmul.u32 %v4133_v12, %v4108_v28  ;;  %v4136_v26 = vmul.u32 %v4132_v21, %v4109_v17  ;;  %v4137_v38 = vmul.u32 %v4133_v12, %v4109_v17  ;;  %v3900_v53 = vpop.f32.mrf.mxu2 }
 0x46c   :  { %v4112_v43 = vmul.u32 %v4110_v13, %v4108_v28  ;;  %v4113_v55 = vmul.u32 %v4111_v50, %v4108_v28  ;;  %v4114_v31 = vmul.u32 %v4110_v13, %v4109_v17  ;;  %v4115_v23 = vmul.u32 %v4111_v50, %v4109_v17  ;;  %v3971_v28 = vpop.f32.mrf.mxu0 }
 0x46d   :  { %v4138_v11 = vshll.u32 %v4135_v7, 16  ;;  %v4140_v48 = vshll.u32 %v4136_v26, 16  ;;  %v4139_v2 = vshrl.u32 %v4135_v7, 16  ;;  %v4141_v33 = vshrl.u32 %v4136_v26, 16 }
 0x46e   :  { %v4116_v40 = vshll.u32 %v4113_v55, 16  ;;  %v4118_v44 = vshll.u32 %v4114_v31, 16  ;;  %v4117_v47 = vshrl.u32 %v4113_v55, 16  ;;  %v4119_v62 = vshrl.u32 %v4114_v31, 16 }
 0x46f   :  { %vm4142_vm5 = vc.u32 %v4134_v8, %v4138_v11  ;;  %v4144_v27 = vadd.s32 %v4138_v11, %v4134_v8  ;;  %v3901_v61 = vadd.f32 %v3900_v53, %v7034_v39 }
 0x470   :  { %vm4120_vm0 = vc.u32 %v4112_v43, %v4116_v40  ;;  %v4122_v34 = vadd.s32 %v4116_v40, %v4112_v43  ;;  %v4143_v41 = vsel %vm4142_vm5, 1, %v7292_v63  ;;  %vm4061_vm5 = vcmp.lt.s32.totalorder %v7037_v4, 0 }
 0x471   :  { %v4121_v42 = vsel %vm4120_vm0, 1, %v7292_v63  ;;  %v4145_v45 = vadd.s32 %v4143_v41, %v4137_v38  ;;  %vm4146_vm3 = vc.u32 %v4144_v27, %v4140_v48  ;;  %v7090_v1 = vadd.s32 %v4144_v27, %v4140_v48 }
 0x472   :  { %v4123_v16 = vadd.s32 %v4121_v42, %v4115_v23  ;;  %vm4124_vm9 = vc.u32 %v4122_v34, %v4118_v44  ;;  %v4147_v37 = vsel %vm4146_vm3, 1, %v7292_v63  ;;  %vm7185_vm3 = vcmp.le.f32.partialorder %v4059_v30, 0.7853982 }
 0x473   :  { %v4125_v54 = vsel %vm4124_vm9, 1, %v7292_v63  ;;  %v4149_v58 = vadd.s32 %v4147_v37, %v4145_v45  ;;  %v4031_v21 = vpop.f32.mrf.mxu2 }
 0x474   :  { %v4127_v5 = vadd.s32 %v4125_v54, %v4123_v16  ;;  %v3941_v36 = vpop.f32.mrf.mxu3 }
 0x475   :  { %v4150_v3 = vadd.s32 %v4149_v58, %v4139_v2  ;;  %v3942_v29 = vadd.f32 %v3941_v36, %v3901_v61 }
 0x476   :  { %v4128_v6 = vadd.s32 %v4127_v5, %v4117_v47 }
 0x477   :  { %v4151_v32 = vadd.s32 %v4150_v3, %v4141_v33  ;;  %v3972_v13 = vadd.f32 %v3971_v28, %v3942_v29 }
 0x478   :  { %v7094_v49 = vadd.s32 %v4128_v6, %v4119_v62 }
 0x479   :  { %v4155_v0 = vadd.s32 1, %v4151_v32  ;;  %v3999_v50 = vadd.f32 %v3998_v9, %v3972_v13 }
 0x47a   :  { %vm4154_vm12 = vc.u32 %v7094_v49, %v7090_v1 }
 0x47b   :  { %v4156_v15 = vsel %vm4154_vm12, %v4155_v0, %v4151_v32  ;;  %v4032_v60 = vadd.f32 %v4031_v21, %v3999_v50  ;;  %v4153_v21 = vadd.s32 %v7090_v1, %v7094_v49 }
 0x47c   :  { %v4157_v57 = vadd.s32 %v4156_v15, %v4152_v10  ;;  %v4056_v12 = vpop.f32.mrf.mxu3 }
 0x47d   :  { %v7107_v55 = vadd.f32 %v4056_v12, %v4032_v60 }
 0x47e   :  { %v4158_v56 = vadd.s32 536870912, %v4157_v57 }
 0x47f   :  { %v4217_v39 = vand.u32 2139095040, %v7107_v55  ;;  %v4214_v23 = vand.u32 2147483647, %v7107_v55 }
 0x480   :  { %v7099_v14 = vshrl.u32 %v4158_v56, 30 }
 0x481   :  { %v4218_v8 = vshrl.u32 %v4217_v39, 23  ;;  %v4221_v38 = vand.u32 8388607, %v4214_v23 }
 0x482   :  { %v4160_v17 = vshll.u32 %v7099_v14, 30 }
 0x483   :  { %v4442_v26 = vadd.s32 4294967169, %v4218_v8  ;;  %v4222_v34 = vor.u32 8388608, %v4221_v38 }
 0x484   :  { %v7103_v25 = vsub.s32 %v4157_v57, %v4160_v17 }
 0x485   :  { %v4224_v40 = vadd.s32 1, %v4442_v26  ;;  %v7136_v6 = vshll.u32 %v4222_v34, 8 }
 0x486   :  { %v4163_v43 = vsub.s32 0, %v7103_v25  ;;  %vm4162_vm11 = vcmp.lt.s32.totalorder %v7103_v25, 0 }
 0x487   :  { %vm4225_vm13 = vcmp.gt.s32.totalorder %v4224_v40, 0  ;;  %v4263_v15 = vand.u32 65535, %v7136_v6  ;;  %v4264_v56 = vshrl.u32 %v7136_v6, 16 }
 0x488   :  { %v4164_v31 = vsel %vm4162_vm11, %v4163_v43, %v7103_v25  ;;  %v4226_v11 = vsel %vm4225_vm13, %v4224_v40, 0  ;;  %vm4216_vm11 = vcmp.lt.s32.totalorder %v7107_v55, 0  ;;  %vm7196_vm13 = vcmp.le.f32.partialorder %v4214_v23, 0.7853982 }
 0x489   :  { %v4165_v7 = vclz %v4164_v31  ;;  %v4228_v48 = vand.u32 31, %v4226_v11  ;;  %v7116_v22 = vshrl.u32 %v4226_v11, 5 }
 0x48b   :  { %v4440_v44 = vadd.s32 4294967294, %v4165_v7  ;;  %v7114_v51 = vsub.s32 32, %v4228_v48  ;;  %v4231_v42 = vshll.u32 %v7372_v19, %v4228_v48  ;;  %v4234_v27 = vshll.u32 %v7373_v59, %v4228_v48 }
 0x48c   :  { %v4237_v41 = vshll.u32 %v7374_v24, %v4228_v48  ;;  %v4240_v2 = vshll.u32 %v7375_v35, %v4228_v48  ;;  %v4243_v46 = vshll.u32 %v7376_v18, %v4228_v48  ;;  %vm4246_vm4 = vcmp.lt.s32.totalorder %v7116_v22, 1 }
 0x48d   :  { %vm4441_vm2 = vcmp.lt.s32.totalorder %v4440_v44, 0  ;;  %v4232_v47 = vshrl.u32 %v7373_v59, %v7114_v51  ;;  %v4235_v16 = vshrl.u32 %v7374_v24, %v7114_v51  ;;  %v4238_v54 = vshrl.u32 %v7375_v35, %v7114_v51 }
 0x48e   :  { %v4241_v45 = vshrl.u32 %v7376_v18, %v7114_v51  ;;  %v4244_v62 = vshrl.u32 %v7377_v52, %v7114_v51  ;;  %v7133_v5 = vsel %vm4441_vm2, 0, %v4440_v44  ;;  %vm4249_vm1 = vcmp.lt.s32.totalorder %v7116_v22, 4 }
 0x48f   :  { %v4233_v59 = vor.u32 %v4232_v47, %v4231_v42  ;;  %v4236_v37 = vor.u32 %v4235_v16, %v4234_v27  ;;  %v4239_v33 = vor.u32 %v4238_v54, %v4237_v41  ;;  %v4173_v18 = vsub.s32 4294967266, %v7133_v5 }
 0x490   :  { %v4242_v58 = vor.u32 %v4241_v45, %v4240_v2  ;;  %v4245_v24 = vor.u32 %v4244_v62, %v4243_v46  ;;  %vm4248_vm15 = vcmp.lt.s32.totalorder %v7116_v22, 3  ;;  %vm4247_vm6 = vcmp.lt.s32.totalorder %v7116_v22, 2 }
 0x491   :  { %v4254_v35 = vsel %vm4246_vm4, %v4233_v59, %v4236_v37  ;;  %v4258_v20 = vsel %vm4246_vm4, %v4236_v37, %v4239_v33  ;;  %v4174_v61 = vadd.s32 127, %v4173_v18  ;;  %v4169_v12 = vsub.s32 32, %v7133_v5 }
 0x492   :  { %v4255_v52 = vsel %vm4249_vm1, %v4242_v58, 920167782  ;;  %v4259_v32 = vsel %vm4249_vm1, %v4245_v24, 1326507024  ;;  %v4251_v1 = vsel %vm4249_vm1, %v4239_v33, 2102212464  ;;  %v4230_v42 = vshrl.u32 %v7372_v19, %v7114_v51 }
 0x493   :  { %v4256_v3 = vsel %vm4248_vm15, %v4239_v33, %v4255_v52  ;;  %v4260_v0 = vsel %vm4248_vm15, %v4242_v58, %v4259_v32  ;;  %v4175_v39 = vshll.u32 %v4174_v61, 23  ;;  %v4171_v16 = vshrl.u32 %v4153_v21, %v4169_v12 }
 0x494   :  { %v4257_v10 = vsel %vm4247_vm6, %v4254_v35, %v4256_v3  ;;  %v4261_v57 = vsel %vm4247_vm6, %v4258_v20, %v4260_v0  ;;  %v4250_v45 = vsel %vm4246_vm4, %v4230_v42, %v4233_v59  ;;  %v4252_v46 = vsel %vm4248_vm15, %v4236_v37, %v4251_v1 }
 0x495   :  { %v4287_v53 = vand.u32 65535, %v4257_v10  ;;  %v4288_v36 = vshrl.u32 %v4257_v10, 16  ;;  %v4265_v28 = vand.u32 65535, %v4261_v57  ;;  %v4266_v17 = vshrl.u32 %v4261_v57, 16 }
 0x496   :  { %v4170_v19 = vshll.u32 %v7103_v25, %v7133_v5  ;;  %v4176_v51 = vor.u32 4788187, %v4175_v39 }
 0x497   :  { %v4290_v29 = vmul.u32 %v4288_v36, %v4263_v15  ;;  %v4291_v9 = vmul.u32 %v4287_v53, %v4264_v56  ;;  %v4268_v13 = vmul.u32 %v4266_v17, %v4263_v15  ;;  %v4269_v50 = vmul.u32 %v4265_v28, %v4264_v56 }
 0x498   :  { %v4289_v60 = vmul.u32 %v4287_v53, %v4263_v15  ;;  %v4267_v31 = vmul.u32 %v4265_v28, %v4263_v15  ;;  %v4292_v7 = vmul.u32 %v4288_v36, %v4264_v56  ;;  %v4270_v26 = vmul.u32 %v4266_v17, %v4264_v56 }
 0x499   :  { %v4293_v43 = vshll.u32 %v4290_v29, 16  ;;  %v4271_v8 = vshll.u32 %v4268_v13, 16  ;;  %v4295_v40 = vshll.u32 %v4291_v9, 16  ;;  %v4273_v38 = vshll.u32 %v4269_v50, 16 }
 0x49a   :  { %v4294_v54 = vshrl.u32 %v4290_v29, 16  ;;  %v4272_v62 = vshrl.u32 %v4268_v13, 16  ;;  %v4296_v58 = vshrl.u32 %v4291_v9, 16  ;;  %v4274_v35 = vshrl.u32 %v4269_v50, 16 }
 0x49b   :  { %vm4297_vm14 = vc.u32 %v4289_v60, %v4293_v43  ;;  %v4299_v44 = vadd.s32 %v4293_v43, %v4289_v60  ;;  %vm4275_vm7 = vc.u32 %v4267_v31, %v4271_v8  ;;  %v4277_v11 = vadd.s32 %v4271_v8, %v4267_v31 }
 0x49c   :  { %v4298_v48 = vsel %vm4297_vm14, 1, %v7292_v63  ;;  %v4276_v49 = vsel %vm4275_vm7, 1, %v7292_v63  ;;  %v4172_v52 = vor.u32 %v4171_v16, %v4170_v19  ;;  %v4177_v32 = vand.u32 2147483647, %v4176_v51 }
 0x49d   :  { %v4300_v34 = vadd.s32 %v4298_v48, %v4292_v7  ;;  %vm4301_vm8 = vc.u32 %v4299_v44, %v4295_v40  ;;  %v4278_v27 = vadd.s32 %v4276_v49, %v4270_v26  ;;  %vm4279_vm10 = vc.u32 %v4277_v11, %v4273_v38 }
 0x49e   :  { %v4302_v47 = vsel %vm4301_vm8, 1, %v7292_v63  ;;  %v4280_v41 = vsel %vm4279_vm10, 1, %v7292_v63  ;;  %v4253_v63 = vsel %vm4247_vm6, %v4250_v45, %v4252_v46  ;;  %v4303_v59 = vadd.s32 %v4299_v44, %v4295_v40 }
 0x49f   :  { %v4304_v2 = vadd.s32 %v4302_v47, %v4300_v34  ;;  %v4282_v33 = vadd.s32 %v4280_v41, %v4278_v27  ;;  %v4307_v37 = vmul.u32 %v7136_v6, %v4253_v63  ;;  %v4179_v0 = vcvt.s32.f32 %v4172_v52 }
 0x4a0   :  { %v4183_v47 = vsub.s32 4, %v7099_v14  ;;  %vm4357_vm7 = vweird.f32 %v7107_v55  ;;  %vm4202_vm8 = vweird.f32 %v7037_v4  ;;  %vm7382_vm10 = vcmask 1043456  }
 0x4a1   :  { %v4305_v24 = vadd.s32 %v4304_v2, %v4294_v54  ;;  %v4283_v18 = vadd.s32 %v4282_v33, %v4272_v62  ;;  %v4180_v5 = vmul.f32 %v4179_v0, %v4177_v32 }
 0x4a2   :  { %v4184_v33 = vsel %vm4061_vm5, %v4183_v47, %v7099_v14 }
 0x4a3   :  { %v4306_v20 = vadd.s32 %v4305_v24, %v4296_v58  ;;  %v4284_v3 = vadd.s32 %v4283_v18, %v4274_v35  ;;  %v4181_v53 = vxor.u32 2147483648, %v4180_v5  ;;  %v4186_v35 = vsel %vm7185_vm3, 0, %v4184_v33 }
 0x4a4   :  { %v4203_v32 = vadd.s32 3, %v4186_v35 }
 0x4a5   :  { %v4310_v10 = vadd.s32 1, %v4306_v20  ;;  %vm4309_vm0 = vc.u32 %v4284_v3, %v4303_v59  ;;  %v4182_v61 = vsel %vm4061_vm5, %v4181_v53, %v4180_v5  ;;  %v4308_v12 = vadd.s32 %v4303_v59, %v4284_v3 }
 0x4a6   :  { %v4185_v17 = vsel %vm7185_vm3, %v7037_v4, %v4182_v61 }
 0x4a7   :  { %v4311_v15 = vsel %vm4309_vm0, %v4310_v10, %v4306_v20  ;;  %v4187_v13 = vmul.f32 %v4185_v17, %v4185_v17 }
 0x4a8   :  { %v4312_v25 = vadd.s32 %v4311_v15, %v4307_v37 }
 0x4a9   :  { %v4195_v39 = vmul.f32 -0.00019511016, %v4187_v13  ;;  %v4188_v38 = vmul.f32 -0.001358992, %v4187_v13 }
 0x4aa   :  { %v4313_v57 = vadd.s32 536870912, %v4312_v25 }
 0x4ab   :  { %v4196_v40 = vadd.f32 0.008332121, %v4195_v39  ;;  %v4189_v34 = vadd.f32 0.041655596, %v4188_v38 }
 0x4ac   :  { %v4314_v56 = vshrl.u32 %v4313_v57, 30  ;;  %v4204_v57 = vand.u32 3, %v4203_v32 }
 0x4ad   :  { %v4197_v1 = vmul.f32 %v4196_v40, %v4187_v13  ;;  %v4190_v54 = vmul.f32 %v4189_v34, %v4187_v13 }
 0x4ae   :  { %v4315_v36 = vshll.u32 %v4314_v56, 30  ;;  %v4338_v2 = vsub.s32 4, %v4314_v56  ;;  %vm4206_vm2 = vcmp.eq.s32.totalorder %v4204_v57, 0  ;;  %vm4205_vm4 = vcmp.lt.s32.totalorder %v4204_v57, 2 }
 0x4af   :  { %v4198_v27 = vadd.f32 -0.16666654, %v4197_v1  ;;  %v4191_v51 = vadd.f32 -0.4999988, %v4190_v54  ;;  %vm4209_vm1 = vcmp.eq.s32.totalorder %v4204_v57, 2 }
 0x4b0   :  { %v4316_v22 = vsub.s32 %v4312_v25, %v4315_v36  ;;  %v4339_v23 = vsel %vm4216_vm11, %v4338_v2, %v4314_v56 }
 0x4b1   :  { %v4199_v62 = vmul.f32 %v4198_v27, %v4187_v13  ;;  %v4341_v63 = vsel %vm7196_vm13, 0, %v4339_v23  ;;  %v4192_v3 = vmul.f32 %v4191_v51, %v4187_v13 }
 0x4b2   :  { %vm4317_vm9 = vcmp.lt.s32.totalorder %v4316_v22, 0  ;;  %v4318_v28 = vsub.s32 0, %v4316_v22  ;;  %v4358_v0 = vadd.s32 3, %v4341_v63 }
 0x4b3   :  { %v4200_v18 = vadd.f32 1.0, %v4199_v62  ;;  %v4193_v25 = vadd.f32 1.0, %v4192_v3 }
 0x4b4   :  { %v4319_v29 = vsel %vm4317_vm9, %v4318_v28, %v4316_v22 }
 0x4b5   :  { %v4320_v9 = vclz %v4319_v29  ;;  %v4201_v37 = vmul.f32 %v4200_v18, %v4185_v17  ;;  %v4210_v28 = vxor.u32 2147483648, %v4193_v25 }
 0x4b7   :  { %v4443_v50 = vadd.s32 4294967294, %v4320_v9  ;;  %v4207_v53 = vxor.u32 2147483648, %v4201_v37  ;;  %v4211_v17 = vsel %vm4209_vm1, %v4210_v28, %v4201_v37 }
 0x4b9   :  { %vm4444_vm12 = vcmp.lt.s32.totalorder %v4443_v50, 0  ;;  %v4208_v9 = vsel %vm4206_vm2, %v4193_v25, %v4207_v53 }
 0x4ba   :  { %v4323_v21 = vsel %vm4444_vm12, 0, %v4443_v50 }
 0x4bb   :  { %v4324_v60 = vsub.s32 32, %v4323_v21  ;;  %v4328_v43 = vsub.s32 4294967266, %v4323_v21  ;;  %v4325_v31 = vshll.u32 %v4316_v22, %v4323_v21  ;;  %v4359_v22 = vand.u32 3, %v4358_v0 }
 0x4bc   :  { %v4212_v21 = vsel %vm4205_vm4, %v4208_v9, %v4211_v17 }
 0x4bd   :  { %v4326_v8 = vshrl.u32 %v4308_v12, %v4324_v60  ;;  %v4329_v30 = vadd.s32 127, %v4328_v43  ;;  %vm4361_vm15 = vcmp.eq.s32.totalorder %v4359_v22, 0  ;;  %vm4364_vm6 = vcmp.eq.s32.totalorder %v4359_v22, 2 }
 0x4be   :  { %vm4360_vm14 = vcmp.lt.s32.totalorder %v4359_v22, 2  ;;  %v4213_v39 = vsel %vm4202_vm8, nan, %v4212_v21 }
 0x4bf   :  { %v4327_v7 = vor.u32 %v4326_v8, %v4325_v31  ;;  %v4330_v26 = vshll.u32 %v4329_v30, 23 }
 0x4c1   :  { %v4331_v44 = vor.u32 4788187, %v4330_v26  ;;  %v4334_v48 = vcvt.s32.f32 %v4327_v7 }
 0x4c3   :  { %v4332_v11 = vand.u32 2147483647, %v4331_v44 }
 0x4c5   :  { %v4335_v49 = vmul.f32 %v4334_v48, %v4332_v11 }
 0x4c7   :  { %v4336_v42 = vxor.u32 2147483648, %v4335_v49 }
 0x4c9   :  { %v4337_v41 = vsel %vm4216_vm11, %v4336_v42, %v4335_v49 }
 0x4ca   :  { %v4340_v45 = vsel %vm7196_vm13, %v7107_v55, %v4337_v41 }
 0x4cb   :  { %v4342_v46 = vmul.f32 %v4340_v45, %v4340_v45 }
 0x4cd   :  { %v4350_v19 = vmul.f32 -0.00019511016, %v4342_v46  ;;  %v4343_v58 = vmul.f32 -0.001358992, %v4342_v46 }
 0x4cf   :  { %v4351_v24 = vadd.f32 0.008332121, %v4350_v19  ;;  %v4344_v52 = vadd.f32 0.041655596, %v4343_v58 }
 0x4d1   :  { %v4352_v20 = vmul.f32 %v4351_v24, %v4342_v46  ;;  %v4345_v59 = vmul.f32 %v4344_v52, %v4342_v46 }
 0x4d3   :  { %v4353_v10 = vadd.f32 -0.16666654, %v4352_v20  ;;  %v4346_v14 = vadd.f32 -0.4999988, %v4345_v59 }
 0x4d5   :  { %v4354_v15 = vmul.f32 %v4353_v10, %v4342_v46  ;;  %v4347_v5 = vmul.f32 %v4346_v14, %v4342_v46 }
 0x4d7   :  { %v4355_v56 = vadd.f32 1.0, %v4354_v15  ;;  %v4348_v36 = vadd.f32 1.0, %v4347_v5 }
 0x4d9   :  { %v4356_v61 = vmul.f32 %v4355_v56, %v4340_v45  ;;  %v4365_v6 = vxor.u32 2147483648, %v4348_v36 }
 0x4db   :  { %v4362_v29 = vxor.u32 2147483648, %v4356_v61  ;;  %v4366_v50 = vsel %vm4364_vm6, %v4365_v6, %v4356_v61 }
 0x4dd   :  { %v4363_v13 = vsel %vm4361_vm15, %v4348_v36, %v4362_v29 }
 0x4de   :  { %v4367_v12 = vsel %vm4360_vm14, %v4363_v13, %v4366_v50 }
 0x4df   :  { %v4368_v60 = vsel %vm4357_vm7, nan, %v4367_v12 }
 0x4e0   :  { %v4371_v43 = vrot.slane %v4368_v60, 4 }
 0x4e2   :  { %v4372_v31 = vsel %vm7382_vm10, %v4213_v39, %v4371_v43 }
 0x4e3   :  { %4374 = vst [vmem:[#allocation2] sm:$0x77] %v4372_v31 }
 0x4e4   :  { %4385 = dma.vmem_to_hbm [thread:$0]  %s4381_s24, 128, %s4383_s27, [#allocation3]  }
 0x4e5   :  { %4480 = dma.done.wait [#allocation3], 128  }
 0x4e6   :  { %4481 = vsyncadd [#allocation3], 4294967168 }
 0x4e7   :  { %4390 = vsyncpa [#allocation3], 1 }

</bundles_post_ra>
